<compile_context>
chip_gen: v6e
topology: v6e:2x2x1
jax: 0.10.0
libtpu: 0.0.40
codegen_flags: <defaults>
</compile_context>

<pallas_src>
import functools

import jax
import jax.numpy as jnp
import numpy as np
from jax.experimental import pallas as pl
from jax.experimental.pallas import tpu as pltpu


def _round_up(a, m):
    return ((a + m - 1) // m) * m


# ---------------------------------------------------------------------------
# Fused MSBlock kernel: conv3x3 -> 3 dilated conv3x3 -> sum -> conv1x1.
# One image per grid step; all intermediates stay in VMEM / vregs.
# ---------------------------------------------------------------------------
def _msblock_kernel(x_ref, w0_ref, b0_ref, w1_ref, b1_ref, w2_ref, b2_ref,
                    w3_ref, b3_ref, wf_ref, bf_ref, out_ref,
                    xpad_ref, opad_ref, *, H, W, cin, dils, pad0, padf,
                    compute_dtype):
    L = H * W
    f32 = jnp.float32
    cdt = compute_dtype
    cin_p, Lx = xpad_ref.shape
    # pltpu.roll is used for 32-bit taps; packed (bf16) taps keep windowed
    # loads until packed-dtype lane rotates are verified on the target Mosaic.
    use_roll = jnp.dtype(cdt).itemsize == 4

    # Column index of every flattened H*W position, built once per kernel
    # (iota + modulo at (1, L) only); each conv just broadcasts + compares.
    col1 = jax.lax.broadcasted_iota(jnp.int32, (1, L), 1) % W

    def conv3x3(load_tap, pad, d, c_rows, w_ref, b_ref):
        """3x3 conv (+bias, +ReLU) on a flat-padded channel-major activation.

        load_tap(s) -> (c_rows, L) window starting at flat offset `s` of the
        padded activation (compute dtype).  w_ref: (3, c_out, 3*c_rows) with
        the K dim ordered (kw, c).  Returns (c_out, L) float32.
        """
        col = jnp.broadcast_to(col1, (c_rows, L))   # cheap int broadcast, no mod
        m_lo = col >= d                             # valid lanes for dc = -d tap
        m_hi = col < (W - d)                        # valid lanes for dc = +d tap
        acc = None
        for kh in range(3):
            base = pad + (kh - 1) * d * W
            center = load_tap(base)                 # (c_rows, L)
            if use_roll:
                # kw taps from the centre window via XLU rolls; m_lo/m_hi zero
                # exactly the lanes where the circular wrap differs from a true
                # halo read, so this is bit-identical to windowed loads.
                left = pltpu.roll(center, d, axis=1)
                right = pltpu.roll(center, L - d, axis=1)
            else:
                # TODO(synk): switch packed-dtype taps to pltpu.roll as well
                # once packed lane rotates are verified on the target Mosaic.
                left = load_tap(base - d)
                right = load_tap(base + d)
            left = jnp.where(m_lo, left, 0)         # kill row-wrapped columns
            right = jnp.where(m_hi, right, 0)
            p_kh = jnp.concatenate([left, center, right], axis=0)  # (3*c_rows, L)
            r = jnp.dot(w_ref[kh], p_kh, preferred_element_type=f32)
            acc = r if acc is None else acc + r     # init from kh=0 dot
        return jnp.maximum(acc + b_ref[...], 0.0)   # bias + ReLU in f32

    # --- Build the flat-padded input in VMEM (no padded HBM copy). ----------
    zx = jnp.zeros((cin, pad0), cdt)
    xpad_ref[:cin, :pad0] = zx                      # zero only halos ...
    xpad_ref[:cin, pad0 + L:] = zx
    if cin_p > cin:                                 # ... and the channel-pad rows
        xpad_ref[cin:, :] = jnp.zeros((cin_p - cin, Lx), cdt)
    xpad_ref[:cin, pl.ds(pad0, L)] = x_ref[0].astype(cdt)

    # --- conv (c_in -> 32, d=1) + ReLU ---------------------------------------
    o = conv3x3(lambda s: xpad_ref[:, pl.ds(s, L)], pad0, 1, cin_p,
                w0_ref, b0_ref)                     # (32, L) f32

    # --- stash o once; zero ONLY the halos (interior fully overwritten) ------
    zo = jnp.zeros((32, padf), cdt)
    opad_ref[:, :padf] = zo
    opad_ref[:, padf + L:] = zo
    opad_ref[:, pl.ds(padf, L)] = o.astype(cdt)

    # --- three dilated convs + running sum (reads only the VMEM scratch) -----
    load_o = lambda s: opad_ref[:, pl.ds(s, L)]
    total = o                                       # o + o1 + o2 + o3 in f32
    for w_r, b_r, d in ((w1_ref, b1_ref, dils[0]),
                        (w2_ref, b2_ref, dils[1]),
                        (w3_ref, b3_ref, dils[2])):
        total = total + conv3x3(load_o, padf, d, 32, w_r, b_r)

    # --- final 1x1 conv: (24, 32) @ (32, L) -> lane-dense unmasked store ------
    t = total.astype(cdt) if cdt != jnp.float32 else total
    out_ref[0] = (jnp.dot(wf_ref[...], t, preferred_element_type=f32)
                  + bf_ref[...]).astype(out_ref.dtype)


# ---------------------------------------------------------------------------
# Wrapper: weight re-layout / pre-cast done once in plain JAX (outside kernel).
# ---------------------------------------------------------------------------
def _prep_conv_weight(w_hwio, cin_pad, dtype):
    """(3,3,Cin,Cout) HWIO -> (3, Cout, 3*cin_pad); K ordered (kw, cin)."""
    kh, kw, cin, cout = w_hwio.shape
    w = jnp.pad(w_hwio, ((0, 0), (0, 0), (0, cin_pad - cin), (0, 0)))
    return jnp.transpose(w, (0, 3, 1, 2)).reshape(kh, cout, kw * cin_pad).astype(dtype)


def _vmem_limit_bytes(needed):
    """Clamp the request between a 32 MiB floor and ~75% of the chip's VMEM."""
    try:
        cap = int(pltpu.get_tpu_info().vmem_capacity_bytes)   # 64 MiB v7x, 128 MiB v5e/v6e
    except Exception:                                         # pragma: no cover
        cap = 64 * 1024 * 1024                                # conservative (v7x) fallback
    return int(min(max(needed, 32 * 1024 * 1024), cap - cap // 4))


def msblock_forward(params, x_nchw, *, compute_dtype=jnp.float32):
    rate = params["rate"]
    d1 = rate * 1 if rate >= 1 else 1
    d2 = rate * 2 if rate >= 1 else 1
    d3 = rate * 3 if rate >= 1 else 1
    dils = (d1, d2, d3)

    N, cin, H, W = x_nchw.shape
    L = H * W
    cin_p = _round_up(max(cin, 8), 8)              # sublane-aligned concat pieces
    pad0 = _round_up(1 * (W + 1), 128)             # flat halo for the d=1 conv
    padf = _round_up(max(dils) * (W + 1), 128)     # shared flat halo for d1/d2/d3
    Lx = L + 2 * pad0
    Lo = L + 2 * padf
    cb = jnp.dtype(compute_dtype).itemsize

    # Raw (N, cin, H*W) view of the input -- metadata-only reshape, no HBM copy;
    # the flat halo is built inside the kernel in a small VMEM scratch.
    xf = x_nchw.reshape(N, cin, L)

    # Weights reshaped + pre-cast once, outside the kernel.
    w0 = _prep_conv_weight(params["conv_w"], cin_p, compute_dtype)   # (3, 32, 3*cin_p)
    w1 = _prep_conv_weight(params["conv1_w"], 32, compute_dtype)     # (3, 32, 96)
    w2 = _prep_conv_weight(params["conv2_w"], 32, compute_dtype)
    w3 = _prep_conv_weight(params["conv3_w"], 32, compute_dtype)
    b0 = params["conv_b"].reshape(32, 1)
    b1 = params["conv1_b"].reshape(32, 1)
    b2 = params["conv2_b"].reshape(32, 1)
    b3 = params["conv3_b"].reshape(32, 1)
    cf = params["convf_w"].shape[1]                                  # 21
    cf_p = _round_up(cf, 8)                                          # 24 -> unmasked stores
    wf = jnp.pad(params["convf_w"].T, ((0, cf_p - cf), (0, 0))).astype(compute_dtype)
    bf = jnp.pad(params["convf_b"], (0, cf_p - cf)).reshape(cf_p, 1)  # f32

    kernel = functools.partial(
        _msblock_kernel, H=H, W=W, cin=cin, dils=dils, pad0=pad0, padf=padf,
        compute_dtype=compute_dtype)

    # Live-set estimate: double-buffered I/O blocks + scratches + the largest
    # matmul / elementwise temporaries, with ~1.5x slack.
    weight_bytes = sum(int(w.size) for w in (w0, w1, w2, w3, wf)) * cb
    need = (2 * cin * L * 4 + 2 * cf_p * L * 4          # in/out blocks (f32, 2x buffered)
            + cin_p * Lx * cb + 32 * Lo * cb            # xpad / opad scratch
            + 3 * 32 * L * cb + 8 * 32 * L * 4          # concat operand + f32 temporaries
            + 2 * weight_bytes)
    vmem_limit = _vmem_limit_bytes(need * 3 // 2)

    full2 = lambda n: (0, 0)
    full3 = lambda n: (0, 0, 0)
    out_flat = pl.pallas_call(
        kernel,
        out_shape=jax.ShapeDtypeStruct((N, cf_p, L), jnp.float32),
        grid=(N,),
        in_specs=[
            pl.BlockSpec((1, cin, L), lambda n: (n, 0, 0)),
            pl.BlockSpec(w0.shape, full3), pl.BlockSpec(b0.shape, full2),
            pl.BlockSpec(w1.shape, full3), pl.BlockSpec(b1.shape, full2),
            pl.BlockSpec(w2.shape, full3), pl.BlockSpec(b2.shape, full2),
            pl.BlockSpec(w3.shape, full3), pl.BlockSpec(b3.shape, full2),
            pl.BlockSpec(wf.shape, full2), pl.BlockSpec(bf.shape, full2),
        ],
        out_specs=pl.BlockSpec((1, cf_p, L), lambda n: (n, 0, 0)),
        scratch_shapes=[pltpu.VMEM((cin_p, Lx), compute_dtype),   # flat-padded x
                        pltpu.VMEM((32, Lo), compute_dtype)],     # flat-padded o
        compiler_params=pltpu.CompilerParams(
            dimension_semantics=("parallel",),      # batch across v7x's 2 TCs
            vmem_limit_bytes=vmem_limit),
    )(xf, w0, b0, w1, b1, w2, b2, w3, b3, wf, bf)

    # Drop the 3 zero-padded output channels; reshape back to NCHW for free.
    return out_flat[:, :cf, :].reshape(N, cf, H, W)


# ---------------------------------------------------------------------------
# Parameters initialized like the PyTorch module: weights ~ N(0, 0.01), bias 0.
# ---------------------------------------------------------------------------
def init_msblock_params(key, c_in, rate=4):
    ks = jax.random.split(key, 5)

    def w(k, kh, kw, ci, co):
        return 0.01 * jax.random.normal(k, (kh, kw, ci, co), jnp.float32)

    return {
        "conv_w": w(ks[0], 3, 3, c_in, 32), "conv_b": jnp.zeros((32,), jnp.float32),
        "conv1_w": w(ks[1], 3, 3, 32, 32),  "conv1_b": jnp.zeros((32,), jnp.float32),
        "conv2_w": w(ks[2], 3, 3, 32, 32),  "conv2_b": jnp.zeros((32,), jnp.float32),
        "conv3_w": w(ks[3], 3, 3, 32, 32),  "conv3_b": jnp.zeros((32,), jnp.float32),
        "convf_w": 0.01 * jax.random.normal(ks[4], (32, 21), jnp.float32),
        "convf_b": jnp.zeros((21,), jnp.float32),
        "rate": rate,
    }


# ---------------------------------------------------------------------------
# Pure-JAX reference (lax conv, NCHW) for verification.
# ---------------------------------------------------------------------------
def _ref_conv(x_nchw, w_hwio, b, dilation):
    y = jax.lax.conv_general_dilated(
        x_nchw, w_hwio, window_strides=(1, 1),
        padding=[(dilation, dilation), (dilation, dilation)],
        rhs_dilation=(dilation, dilation),
        dimension_numbers=("NCHW", "HWIO", "NCHW"))
    return y + b.reshape(1, -1, 1, 1)


def msblock_reference(params, x_nchw):
    rate = params["rate"]
    d1 = rate * 1 if rate >= 1 else 1
    d2 = rate * 2 if rate >= 1 else 1
    d3 = rate * 3 if rate >= 1 else 1
    o = jax.nn.relu(_ref_conv(x_nchw, params["conv_w"], params["conv_b"], 1))
    o1 = jax.nn.relu(_ref_conv(o, params["conv1_w"], params["conv1_b"], d1))
    o2 = jax.nn.relu(_ref_conv(o, params["conv2_w"], params["conv2_b"], d2))
    o3 = jax.nn.relu(_ref_conv(o, params["conv3_w"], params["conv3_b"], d3))
    s = o + o1 + o2 + o3
    out = jnp.einsum("nchw,co->nohw", s, params["convf_w"])
    return out + params["convf_b"].reshape(1, -1, 1, 1)


if __name__ == "__main__":
    key = jax.random.PRNGKey(0)
    k_params, k_x = jax.random.split(key)

    N, C_IN, H, W = 2, 4, 16, 16
    params = init_msblock_params(k_params, C_IN, rate=4)
    x = jax.random.normal(k_x, (N, C_IN, H, W), jnp.float32)          # NCHW

    # f32 path: must match the lax reference closely.
    out = jax.block_until_ready(msblock_forward(params, x))
    assert out.shape == (N, 21, H, W), out.shape
    ref = jax.block_until_ready(msblock_reference(params, x))
    np.testing.assert_allclose(np.asarray(out), np.asarray(ref),
                               rtol=1e-4, atol=1e-5)

    # bf16 MXU-operand / bf16-scratch path (v6e/v7x): f32 accumulation, loose
    # check.  Guarded so a Mosaic build without full packed-dtype support for
    # the unaligned window loads cannot fail the whole script.
    try:
        out_bf = jax.block_until_ready(
            msblock_forward(params, x, compute_dtype=jnp.bfloat16))
        assert out_bf.shape == (N, 21, H, W)
        np.testing.assert_allclose(np.asarray(out_bf), np.asarray(ref),
                                   rtol=1e-1, atol=2e-3)
    except Exception as e:                                # pragma: no cover
        print(f"bf16 path skipped: {type(e).__name__}")

    print("KERNEL_OK")
</pallas_src>

<mosaic_0001>
module attributes {stable_mosaic.version = 11 : i64} {
  func.func @_msblock_kernel(%arg0: i32, %arg1: memref<1x4x256xf32, #tpu.memory_space<vmem>>, %arg2: memref<3x32x24xf32, #tpu.memory_space<vmem>>, %arg3: memref<32x1xf32, #tpu.memory_space<vmem>>, %arg4: memref<3x32x96xf32, #tpu.memory_space<vmem>>, %arg5: memref<32x1xf32, #tpu.memory_space<vmem>>, %arg6: memref<3x32x96xf32, #tpu.memory_space<vmem>>, %arg7: memref<32x1xf32, #tpu.memory_space<vmem>>, %arg8: memref<3x32x96xf32, #tpu.memory_space<vmem>>, %arg9: memref<32x1xf32, #tpu.memory_space<vmem>>, %arg10: memref<24x32xf32, #tpu.memory_space<vmem>>, %arg11: memref<24x1xf32, #tpu.memory_space<vmem>>, %arg12: memref<1x24x256xf32, #tpu.memory_space<vmem>>, %arg13: memref<8x512xf32, #tpu.memory_space<vmem>>, %arg14: memref<32x768xf32, #tpu.memory_space<vmem>>) attributes {dimension_semantics = [#tpu.dimension_semantics<parallel>], iteration_bounds = array<i64: 2>, scalar_prefetch = 0 : i64, scratch_operands = 2 : i64, tpu.core_type = #tpu.core_type<tc>, window_params = [{transform_indices = @transform_0, window_bounds = array<i64: 1, 4, 256>}, {pipeline_mode = #tpu.pipeline_mode<synchronous>, transform_indices = @transform_1, window_bounds = array<i64: 3, 32, 24>}, {pipeline_mode = #tpu.pipeline_mode<synchronous>, transform_indices = @transform_2, window_bounds = array<i64: 32, 1>}, {pipeline_mode = #tpu.pipeline_mode<synchronous>, transform_indices = @transform_3, window_bounds = array<i64: 3, 32, 96>}, {pipeline_mode = #tpu.pipeline_mode<synchronous>, transform_indices = @transform_4, window_bounds = array<i64: 32, 1>}, {pipeline_mode = #tpu.pipeline_mode<synchronous>, transform_indices = @transform_5, window_bounds = array<i64: 3, 32, 96>}, {pipeline_mode = #tpu.pipeline_mode<synchronous>, transform_indices = @transform_6, window_bounds = array<i64: 32, 1>}, {pipeline_mode = #tpu.pipeline_mode<synchronous>, transform_indices = @transform_7, window_bounds = array<i64: 3, 32, 96>}, {pipeline_mode = #tpu.pipeline_mode<synchronous>, transform_indices = @transform_8, window_bounds = array<i64: 32, 1>}, {pipeline_mode = #tpu.pipeline_mode<synchronous>, transform_indices = @transform_9, window_bounds = array<i64: 24, 32>}, {pipeline_mode = #tpu.pipeline_mode<synchronous>, transform_indices = @transform_10, window_bounds = array<i64: 24, 1>}, {transform_indices = @transform_11, window_bounds = array<i64: 1, 24, 256>}]} {
    %0 = tpu.iota {dimensions = array<i32: 1>} : vector<1x256xi32>
    %c16_i32 = arith.constant 16 : i32
    %c0_i32 = arith.constant 0 : i32
    %1 = arith.cmpi eq, %c16_i32, %c0_i32 : i32
    %c1_i32 = arith.constant 1 : i32
    %2 = arith.select %1, %c1_i32, %c16_i32 : i32
    %3 = vector.broadcast %2 : i32 to vector<1x256xi32>
    %4 = arith.remsi %0, %3 : vector<1x256xi32>
    %c0_i32_0 = arith.constant 0 : i32
    %5 = vector.broadcast %c0_i32_0 : i32 to vector<1x256xi32>
    %6 = arith.cmpi ne, %4, %5 : vector<1x256xi32>
    %c0_i32_1 = arith.constant 0 : i32
    %7 = vector.broadcast %c0_i32_1 : i32 to vector<1x256xi32>
    %8 = arith.cmpi slt, %4, %7 : vector<1x256xi32>
    %c0_i32_2 = arith.constant 0 : i32
    %9 = arith.cmpi slt, %2, %c0_i32_2 : i32
    %10 = vector.broadcast %9 : i1 to vector<1x256xi1>
    %11 = vector.broadcast %10 : vector<1x256xi1> to vector<1x256xi1>
    %12 = arith.xori %8, %11 : vector<1x256xi1>
    %13 = arith.andi %12, %6 : vector<1x256xi1>
    %14 = vector.broadcast %2 : i32 to vector<1x256xi32>
    %15 = arith.addi %4, %14 : vector<1x256xi32>
    %16 = arith.select %13, %15, %4 : vector<1x256xi1>, vector<1x256xi32>
    %cst = arith.constant 0.000000e+00 : f32
    %17 = vector.broadcast %cst : f32 to vector<4x128xf32>
    %c0 = arith.constant 0 : index
    %c0_3 = arith.constant 0 : index
    %18 = vector.load %arg13[%c0, %c0_3] : memref<8x512xf32, #tpu.memory_space<vmem>>, vector<4x128xf32>
    tpu.vector_store %arg13[%c0, %c0_3], %17 {strides = array<i32>} : memref<8x512xf32, #tpu.memory_space<vmem>>, vector<4x128xf32>,
    %c0_4 = arith.constant 0 : index
    %c384 = arith.constant 384 : index
    %19 = vector.load %arg13[%c0_4, %c384] : memref<8x512xf32, #tpu.memory_space<vmem>>, vector<4x128xf32>
    tpu.vector_store %arg13[%c0_4, %c384], %17 {strides = array<i32>} : memref<8x512xf32, #tpu.memory_space<vmem>>, vector<4x128xf32>,
    %cst_5 = arith.constant 0.000000e+00 : f32
    %20 = vector.broadcast %cst_5 : f32 to vector<4x512xf32>
    %c4 = arith.constant 4 : index
    %c0_6 = arith.constant 0 : index
    %21 = vector.load %arg13[%c4, %c0_6] : memref<8x512xf32, #tpu.memory_space<vmem>>, vector<4x512xf32>
    tpu.vector_store %arg13[%c4, %c0_6], %20 {strides = array<i32>} : memref<8x512xf32, #tpu.memory_space<vmem>>, vector<4x512xf32>,
    %c0_7 = arith.constant 0 : index
    %c0_8 = arith.constant 0 : index
    %c0_9 = arith.constant 0 : index
    %22 = vector.load %arg1[%c0_7, %c0_8, %c0_9] : memref<1x4x256xf32, #tpu.memory_space<vmem>>, vector<1x4x256xf32>
    %23 = vector.shape_cast %22 : vector<1x4x256xf32> to vector<4x256xf32>
    %c0_10 = arith.constant 0 : index
    %c128 = arith.constant 128 : index
    %24 = vector.load %arg13[%c0_10, %c128] : memref<8x512xf32, #tpu.memory_space<vmem>>, vector<4x256xf32>
    tpu.vector_store %arg13[%c0_10, %c128], %23 {strides = array<i32>} : memref<8x512xf32, #tpu.memory_space<vmem>>, vector<4x256xf32>,
    %25 = vector.shape_cast %16 : vector<1x256xi32> to vector<1x256xi32>
    %26 = vector.broadcast %25 : vector<1x256xi32> to vector<8x256xi32>
    %c1_i32_11 = arith.constant 1 : i32
    %27 = vector.broadcast %c1_i32_11 : i32 to vector<8x256xi32>
    %28 = arith.cmpi sge, %26, %27 : vector<8x256xi32>
    %c15_i32 = arith.constant 15 : i32
    %29 = vector.broadcast %c15_i32 : i32 to vector<8x256xi32>
    %30 = arith.cmpi slt, %26, %29 : vector<8x256xi32>
    %c0_12 = arith.constant 0 : index
    %c112 = arith.constant 112 : index
    %31 = vector.load %arg13[%c0_12, %c112] : memref<8x512xf32, #tpu.memory_space<vmem>>, vector<8x256xf32>
    %c1_i32_13 = arith.constant 1 : i32
    %32 = tpu.dynamic_rotate %31 by %c1_i32_13 dim 1 : vector<8x256xf32>, i32 -> vector<8x256xf32>
    %c255_i32 = arith.constant 255 : i32
    %33 = tpu.dynamic_rotate %31 by %c255_i32 dim 1 : vector<8x256xf32>, i32 -> vector<8x256xf32>
    %c0_i32_14 = arith.constant 0 : i32
    %34 = arith.sitofp %c0_i32_14 : i32 to f32
    %35 = vector.broadcast %34 : f32 to vector<8x256xf32>
    %36 = arith.select %28, %32, %35 : vector<8x256xi1>, vector<8x256xf32>
    %c0_i32_15 = arith.constant 0 : i32
    %37 = arith.sitofp %c0_i32_15 : i32 to f32
    %38 = vector.broadcast %37 : f32 to vector<8x256xf32>
    %39 = arith.select %30, %33, %38 : vector<8x256xi1>, vector<8x256xf32>
    %40 = tpu.concatenate %36, %31, %39 in 0 : vector<8x256xf32>, vector<8x256xf32>, vector<8x256xf32> -> vector<24x256xf32>
    %c0_16 = arith.constant 0 : index
    %c0_17 = arith.constant 0 : index
    %c0_18 = arith.constant 0 : index
    %41 = vector.load %arg2[%c0_16, %c0_17, %c0_18] : memref<3x32x24xf32, #tpu.memory_space<vmem>>, vector<1x32x24xf32>
    %42 = vector.shape_cast %41 : vector<1x32x24xf32> to vector<32x24xf32>
    %cst_19 = arith.constant dense<0.000000e+00> : vector<32x256xf32>
    %43 = tpu.matmul %42, %40, %cst_19 {dimension_numbers = #tpu.dot_dimension_numbers<[1], [0], [0], [1], [0, 0, 1, 1], [], []>} : vector<32x24xf32>, vector<24x256xf32>, vector<32x256xf32> -> vector<32x256xf32>
    %c0_20 = arith.constant 0 : index
    %c128_21 = arith.constant 128 : index
    %44 = vector.load %arg13[%c0_20, %c128_21] : memref<8x512xf32, #tpu.memory_space<vmem>>, vector<8x256xf32>
    %c1_i32_22 = arith.constant 1 : i32
    %45 = tpu.dynamic_rotate %44 by %c1_i32_22 dim 1 : vector<8x256xf32>, i32 -> vector<8x256xf32>
    %c255_i32_23 = arith.constant 255 : i32
    %46 = tpu.dynamic_rotate %44 by %c255_i32_23 dim 1 : vector<8x256xf32>, i32 -> vector<8x256xf32>
    %c0_i32_24 = arith.constant 0 : i32
    %47 = arith.sitofp %c0_i32_24 : i32 to f32
    %48 = vector.broadcast %47 : f32 to vector<8x256xf32>
    %49 = arith.select %28, %45, %48 : vector<8x256xi1>, vector<8x256xf32>
    %c0_i32_25 = arith.constant 0 : i32
    %50 = arith.sitofp %c0_i32_25 : i32 to f32
    %51 = vector.broadcast %50 : f32 to vector<8x256xf32>
    %52 = arith.select %30, %46, %51 : vector<8x256xi1>, vector<8x256xf32>
    %53 = tpu.concatenate %49, %44, %52 in 0 : vector<8x256xf32>, vector<8x256xf32>, vector<8x256xf32> -> vector<24x256xf32>
    %c1 = arith.constant 1 : index
    %c0_26 = arith.constant 0 : index
    %c0_27 = arith.constant 0 : index
    %54 = vector.load %arg2[%c1, %c0_26, %c0_27] : memref<3x32x24xf32, #tpu.memory_space<vmem>>, vector<1x32x24xf32>
    %55 = vector.shape_cast %54 : vector<1x32x24xf32> to vector<32x24xf32>
    %cst_28 = arith.constant dense<0.000000e+00> : vector<32x256xf32>
    %56 = tpu.matmul %55, %53, %cst_28 {dimension_numbers = #tpu.dot_dimension_numbers<[1], [0], [0], [1], [0, 0, 1, 1], [], []>} : vector<32x24xf32>, vector<24x256xf32>, vector<32x256xf32> -> vector<32x256xf32>
    %57 = arith.addf %43, %56 : vector<32x256xf32>
    %c0_29 = arith.constant 0 : index
    %c144 = arith.constant 144 : index
    %58 = vector.load %arg13[%c0_29, %c144] : memref<8x512xf32, #tpu.memory_space<vmem>>, vector<8x256xf32>
    %c1_i32_30 = arith.constant 1 : i32
    %59 = tpu.dynamic_rotate %58 by %c1_i32_30 dim 1 : vector<8x256xf32>, i32 -> vector<8x256xf32>
    %c255_i32_31 = arith.constant 255 : i32
    %60 = tpu.dynamic_rotate %58 by %c255_i32_31 dim 1 : vector<8x256xf32>, i32 -> vector<8x256xf32>
    %c0_i32_32 = arith.constant 0 : i32
    %61 = arith.sitofp %c0_i32_32 : i32 to f32
    %62 = vector.broadcast %61 : f32 to vector<8x256xf32>
    %63 = arith.select %28, %59, %62 : vector<8x256xi1>, vector<8x256xf32>
    %c0_i32_33 = arith.constant 0 : i32
    %64 = arith.sitofp %c0_i32_33 : i32 to f32
    %65 = vector.broadcast %64 : f32 to vector<8x256xf32>
    %66 = arith.select %30, %60, %65 : vector<8x256xi1>, vector<8x256xf32>
    %67 = tpu.concatenate %63, %58, %66 in 0 : vector<8x256xf32>, vector<8x256xf32>, vector<8x256xf32> -> vector<24x256xf32>
    %c2 = arith.constant 2 : index
    %c0_34 = arith.constant 0 : index
    %c0_35 = arith.constant 0 : index
    %68 = vector.load %arg2[%c2, %c0_34, %c0_35] : memref<3x32x24xf32, #tpu.memory_space<vmem>>, vector<1x32x24xf32>
    %69 = vector.shape_cast %68 : vector<1x32x24xf32> to vector<32x24xf32>
    %cst_36 = arith.constant dense<0.000000e+00> : vector<32x256xf32>
    %70 = tpu.matmul %69, %67, %cst_36 {dimension_numbers = #tpu.dot_dimension_numbers<[1], [0], [0], [1], [0, 0, 1, 1], [], []>} : vector<32x24xf32>, vector<24x256xf32>, vector<32x256xf32> -> vector<32x256xf32>
    %71 = arith.addf %57, %70 : vector<32x256xf32>
    %c0_37 = arith.constant 0 : index
    %c0_38 = arith.constant 0 : index
    %72 = vector.load %arg3[%c0_37, %c0_38] : memref<32x1xf32, #tpu.memory_space<vmem>>, vector<32x1xf32>
    %73 = vector.broadcast %72 : vector<32x1xf32> to vector<32x256xf32>
    %74 = arith.addf %71, %73 : vector<32x256xf32>
    %cst_39 = arith.constant 0.000000e+00 : f32
    %75 = vector.broadcast %cst_39 : f32 to vector<32x256xf32>
    %76 = arith.maximumf %74, %75 : vector<32x256xf32>
    %cst_40 = arith.constant 0.000000e+00 : f32
    %77 = vector.broadcast %cst_40 : f32 to vector<32x256xf32>
    %c0_41 = arith.constant 0 : index
    %c0_42 = arith.constant 0 : index
    %78 = vector.load %arg14[%c0_41, %c0_42] : memref<32x768xf32, #tpu.memory_space<vmem>>, vector<32x256xf32>
    tpu.vector_store %arg14[%c0_41, %c0_42], %77 {strides = array<i32>} : memref<32x768xf32, #tpu.memory_space<vmem>>, vector<32x256xf32>,
    %c0_43 = arith.constant 0 : index
    %c512 = arith.constant 512 : index
    %79 = vector.load %arg14[%c0_43, %c512] : memref<32x768xf32, #tpu.memory_space<vmem>>, vector<32x256xf32>
    tpu.vector_store %arg14[%c0_43, %c512], %77 {strides = array<i32>} : memref<32x768xf32, #tpu.memory_space<vmem>>, vector<32x256xf32>,
    %c0_44 = arith.constant 0 : index
    %c256 = arith.constant 256 : index
    %80 = vector.load %arg14[%c0_44, %c256] : memref<32x768xf32, #tpu.memory_space<vmem>>, vector<32x256xf32>
    tpu.vector_store %arg14[%c0_44, %c256], %76 {strides = array<i32>} : memref<32x768xf32, #tpu.memory_space<vmem>>, vector<32x256xf32>,
    %81 = vector.shape_cast %16 : vector<1x256xi32> to vector<1x256xi32>
    %82 = vector.broadcast %81 : vector<1x256xi32> to vector<32x256xi32>
    %c4_i32 = arith.constant 4 : i32
    %83 = vector.broadcast %c4_i32 : i32 to vector<32x256xi32>
    %84 = arith.cmpi sge, %82, %83 : vector<32x256xi32>
    %c12_i32 = arith.constant 12 : i32
    %85 = vector.broadcast %c12_i32 : i32 to vector<32x256xi32>
    %86 = arith.cmpi slt, %82, %85 : vector<32x256xi32>
    %c0_45 = arith.constant 0 : index
    %c192 = arith.constant 192 : index
    %87 = vector.load %arg14[%c0_45, %c192] : memref<32x768xf32, #tpu.memory_space<vmem>>, vector<32x256xf32>
    %c4_i32_46 = arith.constant 4 : i32
    %88 = tpu.dynamic_rotate %87 by %c4_i32_46 dim 1 : vector<32x256xf32>, i32 -> vector<32x256xf32>
    %c252_i32 = arith.constant 252 : i32
    %89 = tpu.dynamic_rotate %87 by %c252_i32 dim 1 : vector<32x256xf32>, i32 -> vector<32x256xf32>
    %c0_i32_47 = arith.constant 0 : i32
    %90 = arith.sitofp %c0_i32_47 : i32 to f32
    %91 = vector.broadcast %90 : f32 to vector<32x256xf32>
    %92 = arith.select %84, %88, %91 : vector<32x256xi1>, vector<32x256xf32>
    %c0_i32_48 = arith.constant 0 : i32
    %93 = arith.sitofp %c0_i32_48 : i32 to f32
    %94 = vector.broadcast %93 : f32 to vector<32x256xf32>
    %95 = arith.select %86, %89, %94 : vector<32x256xi1>, vector<32x256xf32>
    %96 = tpu.concatenate %92, %87, %95 in 0 : vector<32x256xf32>, vector<32x256xf32>, vector<32x256xf32> -> vector<96x256xf32>
    %c0_49 = arith.constant 0 : index
    %c0_50 = arith.constant 0 : index
    %c0_51 = arith.constant 0 : index
    %97 = vector.load %arg4[%c0_49, %c0_50, %c0_51] : memref<3x32x96xf32, #tpu.memory_space<vmem>>, vector<1x32x96xf32>
    %98 = vector.shape_cast %97 : vector<1x32x96xf32> to vector<32x96xf32>
    %cst_52 = arith.constant dense<0.000000e+00> : vector<32x256xf32>
    %99 = tpu.matmul %98, %96, %cst_52 {dimension_numbers = #tpu.dot_dimension_numbers<[1], [0], [0], [1], [0, 0, 1, 1], [], []>} : vector<32x96xf32>, vector<96x256xf32>, vector<32x256xf32> -> vector<32x256xf32>
    %c0_53 = arith.constant 0 : index
    %c256_54 = arith.constant 256 : index
    %100 = vector.load %arg14[%c0_53, %c256_54] : memref<32x768xf32, #tpu.memory_space<vmem>>, vector<32x256xf32>
    %c4_i32_55 = arith.constant 4 : i32
    %101 = tpu.dynamic_rotate %100 by %c4_i32_55 dim 1 : vector<32x256xf32>, i32 -> vector<32x256xf32>
    %c252_i32_56 = arith.constant 252 : i32
    %102 = tpu.dynamic_rotate %100 by %c252_i32_56 dim 1 : vector<32x256xf32>, i32 -> vector<32x256xf32>
    %c0_i32_57 = arith.constant 0 : i32
    %103 = arith.sitofp %c0_i32_57 : i32 to f32
    %104 = vector.broadcast %103 : f32 to vector<32x256xf32>
    %105 = arith.select %84, %101, %104 : vector<32x256xi1>, vector<32x256xf32>
    %c0_i32_58 = arith.constant 0 : i32
    %106 = arith.sitofp %c0_i32_58 : i32 to f32
    %107 = vector.broadcast %106 : f32 to vector<32x256xf32>
    %108 = arith.select %86, %102, %107 : vector<32x256xi1>, vector<32x256xf32>
    %109 = tpu.concatenate %105, %100, %108 in 0 : vector<32x256xf32>, vector<32x256xf32>, vector<32x256xf32> -> vector<96x256xf32>
    %c1_59 = arith.constant 1 : index
    %c0_60 = arith.constant 0 : index
    %c0_61 = arith.constant 0 : index
    %110 = vector.load %arg4[%c1_59, %c0_60, %c0_61] : memref<3x32x96xf32, #tpu.memory_space<vmem>>, vector<1x32x96xf32>
    %111 = vector.shape_cast %110 : vector<1x32x96xf32> to vector<32x96xf32>
    %cst_62 = arith.constant dense<0.000000e+00> : vector<32x256xf32>
    %112 = tpu.matmul %111, %109, %cst_62 {dimension_numbers = #tpu.dot_dimension_numbers<[1], [0], [0], [1], [0, 0, 1, 1], [], []>} : vector<32x96xf32>, vector<96x256xf32>, vector<32x256xf32> -> vector<32x256xf32>
    %113 = arith.addf %99, %112 : vector<32x256xf32>
    %c0_63 = arith.constant 0 : index
    %c320 = arith.constant 320 : index
    %114 = vector.load %arg14[%c0_63, %c320] : memref<32x768xf32, #tpu.memory_space<vmem>>, vector<32x256xf32>
    %c4_i32_64 = arith.constant 4 : i32
    %115 = tpu.dynamic_rotate %114 by %c4_i32_64 dim 1 : vector<32x256xf32>, i32 -> vector<32x256xf32>
    %c252_i32_65 = arith.constant 252 : i32
    %116 = tpu.dynamic_rotate %114 by %c252_i32_65 dim 1 : vector<32x256xf32>, i32 -> vector<32x256xf32>
    %c0_i32_66 = arith.constant 0 : i32
    %117 = arith.sitofp %c0_i32_66 : i32 to f32
    %118 = vector.broadcast %117 : f32 to vector<32x256xf32>
    %119 = arith.select %84, %115, %118 : vector<32x256xi1>, vector<32x256xf32>
    %c0_i32_67 = arith.constant 0 : i32
    %120 = arith.sitofp %c0_i32_67 : i32 to f32
    %121 = vector.broadcast %120 : f32 to vector<32x256xf32>
    %122 = arith.select %86, %116, %121 : vector<32x256xi1>, vector<32x256xf32>
    %123 = tpu.concatenate %119, %114, %122 in 0 : vector<32x256xf32>, vector<32x256xf32>, vector<32x256xf32> -> vector<96x256xf32>
    %c2_68 = arith.constant 2 : index
    %c0_69 = arith.constant 0 : index
    %c0_70 = arith.constant 0 : index
    %124 = vector.load %arg4[%c2_68, %c0_69, %c0_70] : memref<3x32x96xf32, #tpu.memory_space<vmem>>, vector<1x32x96xf32>
    %125 = vector.shape_cast %124 : vector<1x32x96xf32> to vector<32x96xf32>
    %cst_71 = arith.constant dense<0.000000e+00> : vector<32x256xf32>
    %126 = tpu.matmul %125, %123, %cst_71 {dimension_numbers = #tpu.dot_dimension_numbers<[1], [0], [0], [1], [0, 0, 1, 1], [], []>} : vector<32x96xf32>, vector<96x256xf32>, vector<32x256xf32> -> vector<32x256xf32>
    %127 = arith.addf %113, %126 : vector<32x256xf32>
    %c0_72 = arith.constant 0 : index
    %c0_73 = arith.constant 0 : index
    %128 = vector.load %arg5[%c0_72, %c0_73] : memref<32x1xf32, #tpu.memory_space<vmem>>, vector<32x1xf32>
    %129 = vector.broadcast %128 : vector<32x1xf32> to vector<32x256xf32>
    %130 = arith.addf %127, %129 : vector<32x256xf32>
    %cst_74 = arith.constant 0.000000e+00 : f32
    %131 = vector.broadcast %cst_74 : f32 to vector<32x256xf32>
    %132 = arith.maximumf %130, %131 : vector<32x256xf32>
    %133 = arith.addf %76, %132 : vector<32x256xf32>
    %134 = vector.shape_cast %16 : vector<1x256xi32> to vector<1x256xi32>
    %135 = vector.broadcast %134 : vector<1x256xi32> to vector<32x256xi32>
    %c8_i32 = arith.constant 8 : i32
    %136 = vector.broadcast %c8_i32 : i32 to vector<32x256xi32>
    %137 = arith.cmpi sge, %135, %136 : vector<32x256xi32>
    %c8_i32_75 = arith.constant 8 : i32
    %138 = vector.broadcast %c8_i32_75 : i32 to vector<32x256xi32>
    %139 = arith.cmpi slt, %135, %138 : vector<32x256xi32>
    %c0_76 = arith.constant 0 : index
    %c128_77 = arith.constant 128 : index
    %140 = vector.load %arg14[%c0_76, %c128_77] : memref<32x768xf32, #tpu.memory_space<vmem>>, vector<32x256xf32>
    %c8_i32_78 = arith.constant 8 : i32
    %141 = tpu.dynamic_rotate %140 by %c8_i32_78 dim 1 : vector<32x256xf32>, i32 -> vector<32x256xf32>
    %c248_i32 = arith.constant 248 : i32
    %142 = tpu.dynamic_rotate %140 by %c248_i32 dim 1 : vector<32x256xf32>, i32 -> vector<32x256xf32>
    %c0_i32_79 = arith.constant 0 : i32
    %143 = arith.sitofp %c0_i32_79 : i32 to f32
    %144 = vector.broadcast %143 : f32 to vector<32x256xf32>
    %145 = arith.select %137, %141, %144 : vector<32x256xi1>, vector<32x256xf32>
    %c0_i32_80 = arith.constant 0 : i32
    %146 = arith.sitofp %c0_i32_80 : i32 to f32
    %147 = vector.broadcast %146 : f32 to vector<32x256xf32>
    %148 = arith.select %139, %142, %147 : vector<32x256xi1>, vector<32x256xf32>
    %149 = tpu.concatenate %145, %140, %148 in 0 : vector<32x256xf32>, vector<32x256xf32>, vector<32x256xf32> -> vector<96x256xf32>
    %c0_81 = arith.constant 0 : index
    %c0_82 = arith.constant 0 : index
    %c0_83 = arith.constant 0 : index
    %150 = vector.load %arg6[%c0_81, %c0_82, %c0_83] : memref<3x32x96xf32, #tpu.memory_space<vmem>>, vector<1x32x96xf32>
    %151 = vector.shape_cast %150 : vector<1x32x96xf32> to vector<32x96xf32>
    %cst_84 = arith.constant dense<0.000000e+00> : vector<32x256xf32>
    %152 = tpu.matmul %151, %149, %cst_84 {dimension_numbers = #tpu.dot_dimension_numbers<[1], [0], [0], [1], [0, 0, 1, 1], [], []>} : vector<32x96xf32>, vector<96x256xf32>, vector<32x256xf32> -> vector<32x256xf32>
    %c0_85 = arith.constant 0 : index
    %c256_86 = arith.constant 256 : index
    %153 = vector.load %arg14[%c0_85, %c256_86] : memref<32x768xf32, #tpu.memory_space<vmem>>, vector<32x256xf32>
    %c8_i32_87 = arith.constant 8 : i32
    %154 = tpu.dynamic_rotate %153 by %c8_i32_87 dim 1 : vector<32x256xf32>, i32 -> vector<32x256xf32>
    %c248_i32_88 = arith.constant 248 : i32
    %155 = tpu.dynamic_rotate %153 by %c248_i32_88 dim 1 : vector<32x256xf32>, i32 -> vector<32x256xf32>
    %c0_i32_89 = arith.constant 0 : i32
    %156 = arith.sitofp %c0_i32_89 : i32 to f32
    %157 = vector.broadcast %156 : f32 to vector<32x256xf32>
    %158 = arith.select %137, %154, %157 : vector<32x256xi1>, vector<32x256xf32>
    %c0_i32_90 = arith.constant 0 : i32
    %159 = arith.sitofp %c0_i32_90 : i32 to f32
    %160 = vector.broadcast %159 : f32 to vector<32x256xf32>
    %161 = arith.select %139, %155, %160 : vector<32x256xi1>, vector<32x256xf32>
    %162 = tpu.concatenate %158, %153, %161 in 0 : vector<32x256xf32>, vector<32x256xf32>, vector<32x256xf32> -> vector<96x256xf32>
    %c1_91 = arith.constant 1 : index
    %c0_92 = arith.constant 0 : index
    %c0_93 = arith.constant 0 : index
    %163 = vector.load %arg6[%c1_91, %c0_92, %c0_93] : memref<3x32x96xf32, #tpu.memory_space<vmem>>, vector<1x32x96xf32>
    %164 = vector.shape_cast %163 : vector<1x32x96xf32> to vector<32x96xf32>
    %cst_94 = arith.constant dense<0.000000e+00> : vector<32x256xf32>
    %165 = tpu.matmul %164, %162, %cst_94 {dimension_numbers = #tpu.dot_dimension_numbers<[1], [0], [0], [1], [0, 0, 1, 1], [], []>} : vector<32x96xf32>, vector<96x256xf32>, vector<32x256xf32> -> vector<32x256xf32>
    %166 = arith.addf %152, %165 : vector<32x256xf32>
    %c0_95 = arith.constant 0 : index
    %c384_96 = arith.constant 384 : index
    %167 = vector.load %arg14[%c0_95, %c384_96] : memref<32x768xf32, #tpu.memory_space<vmem>>, vector<32x256xf32>
    %c8_i32_97 = arith.constant 8 : i32
    %168 = tpu.dynamic_rotate %167 by %c8_i32_97 dim 1 : vector<32x256xf32>, i32 -> vector<32x256xf32>
    %c248_i32_98 = arith.constant 248 : i32
    %169 = tpu.dynamic_rotate %167 by %c248_i32_98 dim 1 : vector<32x256xf32>, i32 -> vector<32x256xf32>
    %c0_i32_99 = arith.constant 0 : i32
    %170 = arith.sitofp %c0_i32_99 : i32 to f32
    %171 = vector.broadcast %170 : f32 to vector<32x256xf32>
    %172 = arith.select %137, %168, %171 : vector<32x256xi1>, vector<32x256xf32>
    %c0_i32_100 = arith.constant 0 : i32
    %173 = arith.sitofp %c0_i32_100 : i32 to f32
    %174 = vector.broadcast %173 : f32 to vector<32x256xf32>
    %175 = arith.select %139, %169, %174 : vector<32x256xi1>, vector<32x256xf32>
    %176 = tpu.concatenate %172, %167, %175 in 0 : vector<32x256xf32>, vector<32x256xf32>, vector<32x256xf32> -> vector<96x256xf32>
    %c2_101 = arith.constant 2 : index
    %c0_102 = arith.constant 0 : index
    %c0_103 = arith.constant 0 : index
    %177 = vector.load %arg6[%c2_101, %c0_102, %c0_103] : memref<3x32x96xf32, #tpu.memory_space<vmem>>, vector<1x32x96xf32>
    %178 = vector.shape_cast %177 : vector<1x32x96xf32> to vector<32x96xf32>
    %cst_104 = arith.constant dense<0.000000e+00> : vector<32x256xf32>
    %179 = tpu.matmul %178, %176, %cst_104 {dimension_numbers = #tpu.dot_dimension_numbers<[1], [0], [0], [1], [0, 0, 1, 1], [], []>} : vector<32x96xf32>, vector<96x256xf32>, vector<32x256xf32> -> vector<32x256xf32>
    %180 = arith.addf %166, %179 : vector<32x256xf32>
    %c0_105 = arith.constant 0 : index
    %c0_106 = arith.constant 0 : index
    %181 = vector.load %arg7[%c0_105, %c0_106] : memref<32x1xf32, #tpu.memory_space<vmem>>, vector<32x1xf32>
    %182 = vector.broadcast %181 : vector<32x1xf32> to vector<32x256xf32>
    %183 = arith.addf %180, %182 : vector<32x256xf32>
    %cst_107 = arith.constant 0.000000e+00 : f32
    %184 = vector.broadcast %cst_107 : f32 to vector<32x256xf32>
    %185 = arith.maximumf %183, %184 : vector<32x256xf32>
    %186 = arith.addf %133, %185 : vector<32x256xf32>
    %187 = vector.shape_cast %16 : vector<1x256xi32> to vector<1x256xi32>
    %188 = vector.broadcast %187 : vector<1x256xi32> to vector<32x256xi32>
    %c12_i32_108 = arith.constant 12 : i32
    %189 = vector.broadcast %c12_i32_108 : i32 to vector<32x256xi32>
    %190 = arith.cmpi sge, %188, %189 : vector<32x256xi32>
    %c4_i32_109 = arith.constant 4 : i32
    %191 = vector.broadcast %c4_i32_109 : i32 to vector<32x256xi32>
    %192 = arith.cmpi slt, %188, %191 : vector<32x256xi32>
    %c0_110 = arith.constant 0 : index
    %c64 = arith.constant 64 : index
    %193 = vector.load %arg14[%c0_110, %c64] : memref<32x768xf32, #tpu.memory_space<vmem>>, vector<32x256xf32>
    %c12_i32_111 = arith.constant 12 : i32
    %194 = tpu.dynamic_rotate %193 by %c12_i32_111 dim 1 : vector<32x256xf32>, i32 -> vector<32x256xf32>
    %c244_i32 = arith.constant 244 : i32
    %195 = tpu.dynamic_rotate %193 by %c244_i32 dim 1 : vector<32x256xf32>, i32 -> vector<32x256xf32>
    %c0_i32_112 = arith.constant 0 : i32
    %196 = arith.sitofp %c0_i32_112 : i32 to f32
    %197 = vector.broadcast %196 : f32 to vector<32x256xf32>
    %198 = arith.select %190, %194, %197 : vector<32x256xi1>, vector<32x256xf32>
    %c0_i32_113 = arith.constant 0 : i32
    %199 = arith.sitofp %c0_i32_113 : i32 to f32
    %200 = vector.broadcast %199 : f32 to vector<32x256xf32>
    %201 = arith.select %192, %195, %200 : vector<32x256xi1>, vector<32x256xf32>
    %202 = tpu.concatenate %198, %193, %201 in 0 : vector<32x256xf32>, vector<32x256xf32>, vector<32x256xf32> -> vector<96x256xf32>
    %c0_114 = arith.constant 0 : index
    %c0_115 = arith.constant 0 : index
    %c0_116 = arith.constant 0 : index
    %203 = vector.load %arg8[%c0_114, %c0_115, %c0_116] : memref<3x32x96xf32, #tpu.memory_space<vmem>>, vector<1x32x96xf32>
    %204 = vector.shape_cast %203 : vector<1x32x96xf32> to vector<32x96xf32>
    %cst_117 = arith.constant dense<0.000000e+00> : vector<32x256xf32>
    %205 = tpu.matmul %204, %202, %cst_117 {dimension_numbers = #tpu.dot_dimension_numbers<[1], [0], [0], [1], [0, 0, 1, 1], [], []>} : vector<32x96xf32>, vector<96x256xf32>, vector<32x256xf32> -> vector<32x256xf32>
    %c0_118 = arith.constant 0 : index
    %c256_119 = arith.constant 256 : index
    %206 = vector.load %arg14[%c0_118, %c256_119] : memref<32x768xf32, #tpu.memory_space<vmem>>, vector<32x256xf32>
    %c12_i32_120 = arith.constant 12 : i32
    %207 = tpu.dynamic_rotate %206 by %c12_i32_120 dim 1 : vector<32x256xf32>, i32 -> vector<32x256xf32>
    %c244_i32_121 = arith.constant 244 : i32
    %208 = tpu.dynamic_rotate %206 by %c244_i32_121 dim 1 : vector<32x256xf32>, i32 -> vector<32x256xf32>
    %c0_i32_122 = arith.constant 0 : i32
    %209 = arith.sitofp %c0_i32_122 : i32 to f32
    %210 = vector.broadcast %209 : f32 to vector<32x256xf32>
    %211 = arith.select %190, %207, %210 : vector<32x256xi1>, vector<32x256xf32>
    %c0_i32_123 = arith.constant 0 : i32
    %212 = arith.sitofp %c0_i32_123 : i32 to f32
    %213 = vector.broadcast %212 : f32 to vector<32x256xf32>
    %214 = arith.select %192, %208, %213 : vector<32x256xi1>, vector<32x256xf32>
    %215 = tpu.concatenate %211, %206, %214 in 0 : vector<32x256xf32>, vector<32x256xf32>, vector<32x256xf32> -> vector<96x256xf32>
    %c1_124 = arith.constant 1 : index
    %c0_125 = arith.constant 0 : index
    %c0_126 = arith.constant 0 : index
    %216 = vector.load %arg8[%c1_124, %c0_125, %c0_126] : memref<3x32x96xf32, #tpu.memory_space<vmem>>, vector<1x32x96xf32>
    %217 = vector.shape_cast %216 : vector<1x32x96xf32> to vector<32x96xf32>
    %cst_127 = arith.constant dense<0.000000e+00> : vector<32x256xf32>
    %218 = tpu.matmul %217, %215, %cst_127 {dimension_numbers = #tpu.dot_dimension_numbers<[1], [0], [0], [1], [0, 0, 1, 1], [], []>} : vector<32x96xf32>, vector<96x256xf32>, vector<32x256xf32> -> vector<32x256xf32>
    %219 = arith.addf %205, %218 : vector<32x256xf32>
    %c0_128 = arith.constant 0 : index
    %c448 = arith.constant 448 : index
    %220 = vector.load %arg14[%c0_128, %c448] : memref<32x768xf32, #tpu.memory_space<vmem>>, vector<32x256xf32>
    %c12_i32_129 = arith.constant 12 : i32
    %221 = tpu.dynamic_rotate %220 by %c12_i32_129 dim 1 : vector<32x256xf32>, i32 -> vector<32x256xf32>
    %c244_i32_130 = arith.constant 244 : i32
    %222 = tpu.dynamic_rotate %220 by %c244_i32_130 dim 1 : vector<32x256xf32>, i32 -> vector<32x256xf32>
    %c0_i32_131 = arith.constant 0 : i32
    %223 = arith.sitofp %c0_i32_131 : i32 to f32
    %224 = vector.broadcast %223 : f32 to vector<32x256xf32>
    %225 = arith.select %190, %221, %224 : vector<32x256xi1>, vector<32x256xf32>
    %c0_i32_132 = arith.constant 0 : i32
    %226 = arith.sitofp %c0_i32_132 : i32 to f32
    %227 = vector.broadcast %226 : f32 to vector<32x256xf32>
    %228 = arith.select %192, %222, %227 : vector<32x256xi1>, vector<32x256xf32>
    %229 = tpu.concatenate %225, %220, %228 in 0 : vector<32x256xf32>, vector<32x256xf32>, vector<32x256xf32> -> vector<96x256xf32>
    %c2_133 = arith.constant 2 : index
    %c0_134 = arith.constant 0 : index
    %c0_135 = arith.constant 0 : index
    %230 = vector.load %arg8[%c2_133, %c0_134, %c0_135] : memref<3x32x96xf32, #tpu.memory_space<vmem>>, vector<1x32x96xf32>
    %231 = vector.shape_cast %230 : vector<1x32x96xf32> to vector<32x96xf32>
    %cst_136 = arith.constant dense<0.000000e+00> : vector<32x256xf32>
    %232 = tpu.matmul %231, %229, %cst_136 {dimension_numbers = #tpu.dot_dimension_numbers<[1], [0], [0], [1], [0, 0, 1, 1], [], []>} : vector<32x96xf32>, vector<96x256xf32>, vector<32x256xf32> -> vector<32x256xf32>
    %233 = arith.addf %219, %232 : vector<32x256xf32>
    %c0_137 = arith.constant 0 : index
    %c0_138 = arith.constant 0 : index
    %234 = vector.load %arg9[%c0_137, %c0_138] : memref<32x1xf32, #tpu.memory_space<vmem>>, vector<32x1xf32>
    %235 = vector.broadcast %234 : vector<32x1xf32> to vector<32x256xf32>
    %236 = arith.addf %233, %235 : vector<32x256xf32>
    %cst_139 = arith.constant 0.000000e+00 : f32
    %237 = vector.broadcast %cst_139 : f32 to vector<32x256xf32>
    %238 = arith.maximumf %236, %237 : vector<32x256xf32>
    %239 = arith.addf %186, %238 : vector<32x256xf32>
    %c0_140 = arith.constant 0 : index
    %c0_141 = arith.constant 0 : index
    %240 = vector.load %arg10[%c0_140, %c0_141] : memref<24x32xf32, #tpu.memory_space<vmem>>, vector<24x32xf32>
    %cst_142 = arith.constant dense<0.000000e+00> : vector<24x256xf32>
    %241 = tpu.matmul %240, %239, %cst_142 {dimension_numbers = #tpu.dot_dimension_numbers<[1], [0], [0], [1], [0, 0, 1, 1], [], []>} : vector<24x32xf32>, vector<32x256xf32>, vector<24x256xf32> -> vector<24x256xf32>
    %c0_143 = arith.constant 0 : index
    %c0_144 = arith.constant 0 : index
    %242 = vector.load %arg11[%c0_143, %c0_144] : memref<24x1xf32, #tpu.memory_space<vmem>>, vector<24x1xf32>
    %243 = vector.broadcast %242 : vector<24x1xf32> to vector<24x256xf32>
    %244 = arith.addf %241, %243 : vector<24x256xf32>
    %c0_145 = arith.constant 0 : index
    %c0_146 = arith.constant 0 : index
    %c0_147 = arith.constant 0 : index
    %245 = vector.load %arg12[%c0_145, %c0_146, %c0_147] : memref<1x24x256xf32, #tpu.memory_space<vmem>>, vector<1x24x256xf32>
    %246 = vector.shape_cast %245 : vector<1x24x256xf32> to vector<24x256xf32>
    %247 = vector.shape_cast %244 : vector<24x256xf32> to vector<1x24x256xf32>
    tpu.vector_store %arg12[%c0_145, %c0_146, %c0_147], %247 {strides = array<i32>} : memref<1x24x256xf32, #tpu.memory_space<vmem>>, vector<1x24x256xf32>,
    return
  }
  func.func @transform_0(%arg0: i32) -> (i32, i32, i32) {
    %c0_i32 = arith.constant 0 : i32
    %c0_i32_0 = arith.constant 0 : i32
    %c0_i32_1 = arith.constant 0 : i32
    return %arg0, %c0_i32, %c0_i32_0 : i32, i32, i32
  }
  func.func @transform_1(%arg0: i32) -> (i32, i32, i32) {
    %c0_i32 = arith.constant 0 : i32
    %c0_i32_0 = arith.constant 0 : i32
    %c0_i32_1 = arith.constant 0 : i32
    %c0_i32_2 = arith.constant 0 : i32
    return %c0_i32, %c0_i32_0, %c0_i32_1 : i32, i32, i32
  }
  func.func @transform_2(%arg0: i32) -> (i32, i32) {
    %c0_i32 = arith.constant 0 : i32
    %c0_i32_0 = arith.constant 0 : i32
    %c0_i32_1 = arith.constant 0 : i32
    return %c0_i32, %c0_i32_0 : i32, i32
  }
  func.func @transform_3(%arg0: i32) -> (i32, i32, i32) {
    %c0_i32 = arith.constant 0 : i32
    %c0_i32_0 = arith.constant 0 : i32
    %c0_i32_1 = arith.constant 0 : i32
    %c0_i32_2 = arith.constant 0 : i32
    return %c0_i32, %c0_i32_0, %c0_i32_1 : i32, i32, i32
  }
  func.func @transform_4(%arg0: i32) -> (i32, i32) {
    %c0_i32 = arith.constant 0 : i32
    %c0_i32_0 = arith.constant 0 : i32
    %c0_i32_1 = arith.constant 0 : i32
    return %c0_i32, %c0_i32_0 : i32, i32
  }
  func.func @transform_5(%arg0: i32) -> (i32, i32, i32) {
    %c0_i32 = arith.constant 0 : i32
    %c0_i32_0 = arith.constant 0 : i32
    %c0_i32_1 = arith.constant 0 : i32
    %c0_i32_2 = arith.constant 0 : i32
    return %c0_i32, %c0_i32_0, %c0_i32_1 : i32, i32, i32
  }
  func.func @transform_6(%arg0: i32) -> (i32, i32) {
    %c0_i32 = arith.constant 0 : i32
    %c0_i32_0 = arith.constant 0 : i32
    %c0_i32_1 = arith.constant 0 : i32
    return %c0_i32, %c0_i32_0 : i32, i32
  }
  func.func @transform_7(%arg0: i32) -> (i32, i32, i32) {
    %c0_i32 = arith.constant 0 : i32
    %c0_i32_0 = arith.constant 0 : i32
    %c0_i32_1 = arith.constant 0 : i32
    %c0_i32_2 = arith.constant 0 : i32
    return %c0_i32, %c0_i32_0, %c0_i32_1 : i32, i32, i32
  }
  func.func @transform_8(%arg0: i32) -> (i32, i32) {
    %c0_i32 = arith.constant 0 : i32
    %c0_i32_0 = arith.constant 0 : i32
    %c0_i32_1 = arith.constant 0 : i32
    return %c0_i32, %c0_i32_0 : i32, i32
  }
  func.func @transform_9(%arg0: i32) -> (i32, i32) {
    %c0_i32 = arith.constant 0 : i32
    %c0_i32_0 = arith.constant 0 : i32
    %c0_i32_1 = arith.constant 0 : i32
    return %c0_i32, %c0_i32_0 : i32, i32
  }
  func.func @transform_10(%arg0: i32) -> (i32, i32) {
    %c0_i32 = arith.constant 0 : i32
    %c0_i32_0 = arith.constant 0 : i32
    %c0_i32_1 = arith.constant 0 : i32
    return %c0_i32, %c0_i32_0 : i32, i32
  }
  func.func @transform_11(%arg0: i32) -> (i32, i32, i32) {
    %c0_i32 = arith.constant 0 : i32
    %c0_i32_0 = arith.constant 0 : i32
    %c0_i32_1 = arith.constant 0 : i32
    return %arg0, %c0_i32, %c0_i32_0 : i32, i32, i32
  }
}

</mosaic_0001>

<bundles_post_ra>
// kernel: tpu_custom_call.1
= control target key start
LH: loop header
LB: loop body
LE: loop exit
PB: predicated region body
PF: predicated region fallthrough
CT: control target
= control target key end

     0   :  { %16 = vsyncpa [#allocation5], 0  ;;  %s6050_s0 = inlined_call_operand.hbm [shape: f32[2,4,256], index: 0, kind: input, shape index: {}]   ;;  %s6051_s1 = inlined_call_operand.vmem [shape: f32[3,32,24], index: 1, kind: input, shape index: {}]   ;;  %s6052_s2 = inlined_call_operand.vmem [shape: f32[32,1], index: 2, kind: input, shape index: {}]   ;;  %s6053_s3 = inlined_call_operand.vmem [shape: f32[3,32,96], index: 3, kind: input, shape index: {}]   ;;  %s6054_s4 = inlined_call_operand.vmem [shape: f32[32,1], index: 4, kind: input, shape index: {}]   ;;  %s6055_s5 = inlined_call_operand.vmem [shape: f32[3,32,96], index: 5, kind: input, shape index: {}]   ;;  %s6056_s6 = inlined_call_operand.vmem [shape: f32[32,1], index: 6, kind: input, shape index: {}]   ;;  %s6057_s7 = inlined_call_operand.vmem [shape: f32[3,32,96], index: 7, kind: input, shape index: {}]   ;;  %s6058_s8 = inlined_call_operand.vmem [shape: f32[32,1], index: 8, kind: input, shape index: {}]   ;;  %s6059_s9 = inlined_call_operand.vmem [shape: f32[24,32], index: 9, kind: input, shape index: {}]   ;;  %s6060_s10 = inlined_call_operand.vmem [shape: f32[24,1], index: 10, kind: input, shape index: {}]   ;;  %s6061_s11 = inlined_call_operand.hbm [shape: f32[2,24,256], index: 11, kind: output, shape index: {}]  }
   0x1   :  { %18 = vsyncpa [#allocation5 + $0x1], 0 }
   0x2   :  { %19 = vsyncpa [#allocation6], 0 }
   0x3   :  { %21 = vsyncpa [#allocation6 + $0x1], 0  ;;  %s3719_s17 = smov 0   ;;  %s3721_s18 = smov 0  }
   0x4   :  { %s3723_s19 = smov 0   ;;  %s3725_s20 = smov 0  }
   0x5 LB: > { %6122 = sst [smem:[#allocation10_spill]] %s3637_s19  ;;  %s3740_s21 = sadd.s32 4294967295, %s3641_s20   ;;  %s3641_s20 = sphi %s3725_s20, %s6268_s20   ;;  %s3637_s19 = sphi %s3723_s19, %s6270_s19   ;;  %s3633_s18 = sphi %s3721_s18, %s6272_s18   ;;  %s3629_s17 = sphi %s3719_s17, %s6271_s17  }
   0x6   : > { %s3098_s22 = sadd.s32 4294967294, %s3641_s20   ;;  %s3744_s23 = sadd.s32 1, %s3641_s20  }
   0x7   : > { %6123 = sst [smem:[#allocation11_spill]] %s3744_s23  ;;  %s34_s24 = sadd.s32 1, %s3637_s19 }
   0x8   : > { %s31_s25 = ssub.s32 %s3641_s20, %s3744_s23  ;;  %p41_p0 = scmp.ne.s32.totalorder %s3637_s19, %s3633_s18 }
   0x9   : > { %p32_p1 = scmp.eq.s32.totalorder %s31_s25, 0  ;;  %p42_p2 = scmp.eq.s32.totalorder %s3641_s20, 0 }
   0xa   : > { %p47_p3 = scmp.ne.s32.totalorder %s3633_s18, %s3629_s17  ;;  %p48_p4 = scmp.eq.s32.totalorder %s3740_s21, 0 }
   0xb   : > { %s3756_s26 = scalar_select %p32_p1, %s3637_s19, %s34_s24  }
   0xc   : > { %p3758_p5 = por %p42_p2, %p41_p0  ;;  %p3762_p6 = por %p48_p4, %p47_p3 }
   0xd   : > { %6124 = sst [smem:[#allocation12_spill]] %s3756_s26  ;;  %p281_p7 = scmp.eq.s32.totalorder %s3740_s21, 1 }
   0xe   : > { %s6126_s28 = scalar_select %p3762_p6, 1, 0 }
   0xf   : > { %p287_p8 = scmp.eq.s32.totalorder %s3098_s22, 1  ;;  %p3363_p10 = scmp.lt.s32.totalorder %s3641_s20, 2 }
  0x10   : > { %p3769_p11 = por %p281_p7, %p41_p0  ;;  %s337_s12 = sand.u32 1, %s3637_s19  }
  0x11   : > { %p3773_p12 = por %p287_p8, %p47_p3  ;;  %s3348_s13 = sshll.u32 %s3641_s20, 7 }
  0x12   : > { %s6127_s29 = scalar_select %p3769_p11, 1, 0 }
  0x13   : > { %s6128_s30 = scalar_select %p3773_p12, 1, 0 }
  0x14   : > { %s3101_s14 = sshll.u32 %s337_s12, 3  ;;  %s3782_s24 = scalar_lea.hbm %s6050_s0, %s3348_s13 }
  0x15   : > { %6129 = sst [smem:[#allocation13_spill]] %s6128_s30  ;;  %s341_s22 = scalar_lea.vmem [#allocation4], %s3101_s14 }
  0x16   : > { %s349_s25 = sshll.u32 %s341_s22, 4  ;;  %p3786_p13 = pnand %p3363_p10, %p3758_p5  ;;  %s3790_s25 = int_to_ptr.vmem [resolvable:$true] %s349_s25 }
  0x17   : > { %s338_s19 = scalar_lea.sflag [#allocation5], %s337_s12  ;;  %s3549_s23 = scalar_lea.hbm %s3782_s24, 128 }
  0x18   : > { %p3550_p2 = scmp.ne.s32.totalorder %s3782_s24, %s3549_s23  ;;  %p3551_p3 = pneg %p3786_p13 }
  0x19   : > { %s3554_s27 = scalar_lea.hbm %s6050_s0, 256  ;;  %p3555_p5 = scmp.lt.s32.totalorder %s3782_s24, %s6050_s0 }
  0x1a   : > { %p3552_p4 = pnand %p3551_p3, %p3550_p2  ;;  %p3556_p8 = scmp.lt.s32.totalorder %s3554_s27, %s3549_s23 }
  0x1c   : > { %p3553_p7 = pneg %p3552_p4  ;;  %p3557_p10 = por %p3556_p8, %p3555_p5 }
  0x1e   : > { %p3558_p9 = pnand %p3557_p10, %p3553_p7 }
  0x20   : > { %3561 = shalt.err (!%p3558_p9)
}
  0x21   : > { %s3562_s12 = scalar_lea.vmem %s3790_s25, 128  ;;  %s3643_s22 = smov [#allocation4]  }
  0x22   : > { %p3563_p0 = scmp.ne.s32.totalorder %s3790_s25, %s3562_s12  ;;  %s3567_s30 = sshll.u32 %s3643_s22, 4  ;;  %s3568_s30 = int_to_ptr.vmem [resolvable:$false] %s3567_s30 }
  0x23   : > { %s3569_s13 = scalar_lea.vmem %s3568_s30, 256  ;;  %p3570_p4 = scmp.lt.s32.totalorder %s3790_s25, %s3568_s30 }
  0x24   : > { %p3565_p1 = pnand %p3563_p0, %p3551_p3  ;;  %p3571_p12 = scmp.lt.s32.totalorder %s3569_s13, %s3562_s12 }
  0x26   : > { %p3566_p2 = pneg %p3565_p1  ;;  %p3572_p11 = por %p3571_p12, %p3570_p4 }
  0x28   : > { %p3573_p6 = pnand %p3572_p11, %p3566_p2 }
  0x2a   : > { %3576 = shalt.err (!%p3573_p6)
}
  0x2b   : > { %3358 = dma.hbm_to_vmem [thread:$0]  (!%p3786_p13), %s3782_s24, 128, %s3790_s25, %s338_s19  }
  0x2c   : > { %p6131_p9 = scmp.lt.s32.totalorder %s3641_s20, 3  ;;  %p6132_p7 = scmp.ge.s32.totalorder %s3641_s20, 1 }
  0x2e   : > { %p355_p0 = pnand %p6132_p7, %p6131_p9 }
  0x30   : > { %358 = sbr.rel (%p355_p0) target bundleno = 1439 (0x59f), region = 64 }
  0x35   : > { %s3817_s23 = sand.u32 1, %s3633_s18   ;;  %p6133_p6 = scmp.ne.s32.totalorder %s6126_s28, 0 }
  0x36   : > { %s3105_s30 = sshll.u32 %s3817_s23, 3  ;;  %s361_s14 = scalar_lea.sflag [#allocation5], %s3817_s23 }
  0x37   : > { %s364_s27 = scalar_lea.vmem [#allocation4], %s3105_s30 }
  0x38   : > { %3620 = dma.done.wait (%p6133_p6), %s361_s14, 128  }
  0x39   : > { %3622 = vsyncadd (%p6133_p6), %s361_s14, 4294967168  ;;  %v6068_v0 = vmov 0.0   ;;  %v436_v1 = vld [vmem:[%s364_s27] sm:$0xff]  ;;  %s3645_s19 = smov 16   ;;  %s3646_s26 = smov 112   ;;  %v403_v8 = vlaneseq  ;;  %vm458_vm0 = vcmask 130048  }
  0x3a   : > { %430 = vst [vmem:[#allocation2 + $0x8] sm:$0xf] %v6068_v0  ;;  %432 = vst [vmem:[#allocation2 + $0x8] sm:$0xf0] %v6068_v0  ;;  %583 = vmatprep.mubr.f32.mxu0 %v6068_v0  ;;  %684 = vmatprep.mubr.f32.mxu1 %v6068_v0  ;;  %v438_v3 = vcombine.high %v436_v1, %v436_v1  ;;  %s3647_s28 = smov 127   ;;  %s3648_s24 = smov 1  }
  0x3b   : > { %431 = vst [vmem:[#allocation2] sm:$0xf] %v6068_v0  ;;  %433 = vst [vmem:[#allocation2 + $0x10] sm:$0xf0] %v6068_v0  ;;  %v3838_v11 = vand.u32 127, %v403_v8  ;;  %vm721_vm1 = vcmask 916480  }
  0x3c   : > { %434 = vst [vmem:[#allocation2 + $0x18] sm:$0xf0] %v6068_v0  ;;  %435 = vst [vmem:[#allocation2] sm:$0xf0] %v6068_v0  ;;  %v3106_v30 = vld [vmem:[%s6051_s1 + $0x20] sm:$0xff]  ;;  %vm506_vm8 = vcmask 195584  }
  0x3d   : > { %440 = vst [vmem:[#allocation2 + $0x10] sm:$0xf] %v436_v1  ;;  %441 = vst [vmem:[#allocation2 + $0x18] sm:$0xf] %v438_v3  ;;  %v405_v14 = vadd.s32 128, %v3838_v11  ;;  %v3856_v21 = vand.u32 15, %v3838_v11 }
  0x3e   : > { %vm474_vm2 = vcmp.lt.s32.totalorder %v3838_v11, 127  ;;  %vm467_vm5 = vcmp.lt.s32.totalorder %v3838_v11, 1  ;;  %v859_v31 = vld [vmem:[%s6052_s2 + $0x18] sm:$0xff]  ;;  %v3649_v32 = vmov 0   ;;  %v858_v33 = vld [vmem:[%s6052_s2 + $0x10] sm:$0xff]  ;;  %v3107_v34 = vld [vmem:[%s6051_s1 + $0x28] sm:$0xff] }
  0x3f   : > { %v3849_v18 = vand.u32 15, %v405_v14  ;;  %vm444_vm4 = vcmp.lt.s32.totalorder %v3856_v21, 15  ;;  %vm442_vm7 = vcmp.ge.s32.totalorder %v3856_v21, 1  ;;  %3411 = vset.pattern.permute.xlu0 %v3649_v32  ;;  %v856_v35 = vld [vmem:[%s6052_s2] sm:$0xff]  ;;  %3412 = vset.pattern.permute.xlu1 %v3649_v32  ;;  %v857_v36 = vld [vmem:[%s6052_s2 + $0x8] sm:$0xff]  ;;  %v3108_v37 = vld [vmem:[%s6051_s1 + $0x30] sm:$0xff] }
  0x40   : > { %v3109_v38 = vld [vmem:[%s6051_s1 + $0x38] sm:$0xff]  ;;  %s3650_s22 = smov 64   ;;  %s3651_s13 = smov 120   ;;  %v481_v51 = vld [vmem:[%s6051_s1] sm:$0xff]  ;;  %v482_v56 = vld [vmem:[%s6051_s1 + $0x8] sm:$0xff]  ;;  %vm972_vm9 = vcmask 523264  }
  0x41   : > { %v446_v2 = vld [vmem:[#allocation2 + $0x8] sm:$0xff]  ;;  %vm445_vm3 = vcmp.lt.s32.totalorder %v3849_v18, 15  ;;  %vm443_vm6 = vcmp.ge.s32.totalorder %v3849_v18, 1  ;;  %v3126_v57 = vld [vmem:[%s6051_s1 + $0x40] sm:$0xff]  ;;  %v483_v58 = vld [vmem:[%s6051_s1 + $0x10] sm:$0xff]  ;;  %s3652_s25 = smov 8  }
  0x42   : > { %452 = vrot.lane.b32.xlu0 %v446_v2, %s3645_s19  ;;  %v3127_v59 = vld [vmem:[%s6051_s1 + $0x48] sm:$0xff]  ;;  %v484_v60 = vld [vmem:[%s6051_s1 + $0x18] sm:$0xff]  ;;  %v3128_v61 = vld [vmem:[%s6051_s1 + $0x50] sm:$0xff]  ;;  %s3653_s15 = smov 124   ;;  %s3654_s16 = smov 4   ;;  %vm923_vm10 = vcmp.lt.s32.totalorder %v3849_v18, 12 }
  0x43   : > { %v711_v6 = vld [vmem:[#allocation2] sm:$0xff]  ;;  %v3129_v62 = vld [vmem:[%s6051_s1 + $0x58] sm:$0xff]  ;;  %s3655_s12 = smov 116   ;;  %vm1030_vm11 = vcmp.lt.s32.totalorder %v3838_v11, 124  ;;  %vm922_vm12 = vcmp.lt.s32.totalorder %v3856_v21, 12  ;;  %vm1674_vm13 = vcmp.lt.s32.totalorder %v3838_v11, 120 }
  0x44   : > { %v709_v4 = vld [vmem:[#allocation2 + $0x10] sm:$0xff]  ;;  %v448_v5 = vld [vmem:[#allocation2 + $0x18] sm:$0xff]  ;;  %vm2301_vm14 = vcmp.lt.s32.totalorder %v3838_v11, 116  ;;  %vm1649_vm15 = vcmp.lt.s32.totalorder %v3838_v11, 8  ;;  %s3656_s27 = smov 12   ;;  %p6264_p12 = scmp.ne.s32.totalorder %s6127_s29, 0 }
  0x45   : > { %715 = vrot.lane.b32.xlu1 %v709_v4, %s3646_s26 }
  0x46   : > { %454 = vrot.lane.b32.xlu0 %v709_v4, %s3645_s19 }
  0x49   : > { %456 = vrot.lane.b32.xlu1 %v448_v5, %s3645_s19 }
  0x4a   : > { %717 = vrot.lane.b32.xlu0 %v448_v5, %s3646_s26 }
  0x4d   : > { %719 = vrot.lane.b32.xlu1 %v711_v6, %s3646_s26 }
  0x4e   : > { %491 = vrot.lane.b32.xlu0 %v709_v4, %s3647_s28 }
  0x51   : > { %493 = vrot.lane.b32.xlu1 %v448_v5, %s3647_s28 }
  0x52   : > { %485 = vrot.lane.b32.xlu0 %v709_v4, %s3648_s24 }
  0x55   : > { %487 = vrot.lane.b32.xlu1 %v448_v5, %s3648_s24 }
  0xb4   : > { %v453_v7 = vpop.permute.xlu0 %452 }
  0xb7   : > { %v716_v9 = vpop.permute.xlu1 %715 }
  0xb8   : > { %v455_v10 = vpop.permute.xlu0 %454 }
  0xb9   : > { %v3840_v12 = vsel %vm458_vm0, %v453_v7, %v455_v10 }
  0xba   : > { %470 = vrot.lane.b32.xlu0 %v3840_v12, %s3647_s28 }
  0xbb   : > { %v457_v13 = vpop.permute.xlu1 %456 }
  0xbc   : > { %v3844_v15 = vsel %vm458_vm0, %v455_v10, %v457_v13  ;;  %v718_v16 = vpop.permute.xlu0 %717  ;;  %vm921_vm0 = vcmp.ge.s32.totalorder %v3849_v18, 4 }
  0xbd   : > { %472 = vrot.lane.b32.xlu1 %v3844_v15, %s3647_s28  ;;  %v3853_v20 = vsel %vm721_vm1, %v716_v9, %v718_v16 }
  0xbe   : > { %463 = vrot.lane.b32.xlu0 %v3840_v12, %s3648_s24 }
  0xbf   : > { %v720_v17 = vpop.permute.xlu1 %719 }
  0xc0   : > { %v3851_v19 = vsel %vm721_vm1, %v718_v16, %v720_v17  ;;  %v492_v22 = vpop.permute.xlu0 %491  ;;  %vm1005_vm1 = vcmp.lt.s32.totalorder %v3838_v11, 4 }
  0xc1   : > { %734 = vrot.lane.b32.xlu1 %v3851_v19, %s3647_s28 }
  0xc2   : > { %732 = vrot.lane.b32.xlu0 %v3853_v20, %s3647_s28 }
  0xc3   : > { %v494_v23 = vpop.permute.xlu1 %493 }
  0xc4   : > { %v496_v24 = vsel %vm474_vm2, %v494_v23, %v492_v22  ;;  %v495_v25 = vsel %vm474_vm2, %v492_v22, %v494_v23  ;;  %v486_v26 = vpop.permute.xlu0 %485 }
  0xc5   : > { %465 = vrot.lane.b32.xlu1 %v3844_v15, %s3648_s24  ;;  %3110 = vmatprep.subr.msk.mxu0 %vm445_vm3, %v496_v24 }
  0xc6   : > { %726 = vrot.lane.b32.xlu0 %v3853_v20, %s3648_s24  ;;  %3111 = vmatpush1.msk.msra.mxu0 %vm444_vm4, %v495_v25 }
  0xc7   : > { %v488_v27 = vpop.permute.xlu1 %487  ;;  %547 = vmatprep.subr.mxu0 %v448_v5 }
  0xc8   : > { %v489_v28 = vsel %vm467_vm5, %v486_v26, %v488_v27  ;;  %v490_v29 = vsel %vm467_vm5, %v488_v27, %v486_v26  ;;  %548 = vmatpush1.msra.mxu0 %v709_v4 }
  0xc9   : > { %728 = vrot.lane.b32.xlu1 %v3851_v19, %s3648_s24  ;;  %3112 = vmatprep.subr.msk.mxu0 %vm443_vm6, %v489_v28 }
  0xca   : > { %3113 = vmatpush1.msk.msra.mxu0 %vm442_vm7, %v490_v29  ;;  %877 = vperm.xlu0 %3411, %v859_v31  }
  0xcb   : > { %3114 = vmatmul.mubr.msk.f32.vlgmr.msra.gmra.mxu0 %vm506_vm8, %v3106_v30 }
  0xcc   : > { %589 = vmatprep.mubr.f32.mxu0 %v6068_v0 }
  0xcd   : > { %872 = vperm.xlu1 %3412, %v858_v33  }
  0xce   : > { %862 = vperm.xlu0 %3411, %v856_v35  }
  0xcf   : > { %3115 = vmatmul.mubr.msk.f32.gmra.mxu0 %vm506_vm8, %v3107_v34 }
  0xd0   : > { %595 = vmatprep.mubr.f32.mxu0 %v6068_v0 }
  0xd1   : > { %867 = vperm.xlu1 %3412, %v857_v36  }
  0xd2   : > { %3419 = vrot.lane.b32.xlu0 %v6068_v0, %s3650_s22 }
  0xd3   : > { %3116 = vmatmul.mubr.msk.f32.gmra.mxu0 %vm506_vm8, %v3108_v37 }
  0xd4   : > { %601 = vmatprep.mubr.f32.mxu0 %v6068_v0 }
  0xd5   : > { %3414 = vrot.lane.b32.xlu1 %v6068_v0, %s3650_s22 }
  0xd6   : > { %3429 = vrot.lane.b32.xlu0 %v6068_v0, %s3650_s22 }
  0xd7   : > { %3117 = vmatmul.mubr.msk.f32.gmra.mxu0 %vm506_vm8, %v3109_v38 }
  0xd8   : > { %823 = vmatprep.mubr.f32.mxu0 %v6068_v0 }
  0xd9   : > { %3424 = vrot.lane.b32.xlu1 %v6068_v0, %s3650_s22 }
  0xda   : > { %3444 = vrot.lane.b32.xlu0 %v6068_v0, %s3650_s22 }
  0xdd   : > { %3434 = vrot.lane.b32.xlu1 %v6068_v0, %s3650_s22 }
  0xde   : > { %3454 = vrot.lane.b32.xlu0 %v6068_v0, %s3650_s22 }
  0xe1   : > { %3439 = vrot.lane.b32.xlu1 %v6068_v0, %s3650_s22 }
  0xe2   : > { %3464 = vrot.lane.b32.xlu0 %v6068_v0, %s3650_s22 }
  0xe5   : > { %3449 = vrot.lane.b32.xlu1 %v6068_v0, %s3650_s22 }
  0xe6   : > { %3469 = vrot.lane.b32.xlu0 %v6068_v0, %s3650_s22 }
  0xe9   : > { %3459 = vrot.lane.b32.xlu1 %v6068_v0, %s3650_s22 }
  0xea   : > { %3479 = vrot.lane.b32.xlu0 %v6068_v0, %s3651_s13 }
  0xed   : > { %3474 = vrot.lane.b32.xlu1 %v6068_v0, %s3651_s13 }
  0xee   : > { %3489 = vrot.lane.b32.xlu0 %v6068_v0, %s3652_s25 }
  0xf1   : > { %3484 = vrot.lane.b32.xlu1 %v6068_v0, %s3652_s25 }
  0xf2   : > { %3494 = vrot.lane.b32.xlu0 %v6068_v0, %s3651_s13 }
  0xf5   : > { %3499 = vrot.lane.b32.xlu1 %v6068_v0, %s3651_s13 }
 0x12c   : > { %v471_v39 = vpop.permute.xlu0 %470 }
 0x12f   : > { %v473_v40 = vpop.permute.xlu1 %472 }
 0x130   : > { %v464_v41 = vpop.permute.xlu0 %463  ;;  %v476_v42 = vsel %vm474_vm2, %v473_v40, %v471_v39  ;;  %v475_v43 = vsel %vm474_vm2, %v471_v39, %v473_v40 }
 0x131   : > { %3118 = vmatprep.subr.msk.mxu1 %vm445_vm3, %v476_v42 }
 0x132   : > { %3119 = vmatpush1.msk.msra.mxu1 %vm444_vm4, %v475_v43 }
 0x133   : > { %v735_v44 = vpop.permute.xlu1 %734  ;;  %648 = vmatprep.subr.mxu1 %v3844_v15 }
 0x134   : > { %v733_v45 = vpop.permute.xlu0 %732  ;;  %649 = vmatpush1.msra.mxu1 %v3840_v12 }
 0x135   : > { %v736_v46 = vsel %vm474_vm2, %v733_v45, %v735_v44  ;;  %v737_v47 = vsel %vm474_vm2, %v735_v44, %v733_v45  ;;  %vm920_vm2 = vcmp.ge.s32.totalorder %v3856_v21, 4 }
 0x136   : > { %3130 = vmatprep.subr.msk.mxu0 %vm445_vm3, %v737_v47  ;;  %vm1128_vm3 = vcmask 785408  }
 0x137   : > { %3131 = vmatpush1.msk.msra.mxu0 %vm444_vm4, %v736_v46  ;;  %v466_v48 = vpop.permute.xlu1 %465  ;;  %vm1624_vm4 = vcmp.lt.s32.totalorder %v3849_v18, 8 }
 0x138   : > { %787 = vmatprep.subr.mxu0 %v3851_v19  ;;  %v468_v49 = vsel %vm467_vm5, %v464_v41, %v466_v48  ;;  %v469_v50 = vsel %vm467_vm5, %v466_v48, %v464_v41  ;;  %v727_v52 = vpop.permute.xlu0 %726 }
 0x139   : > { %788 = vmatpush1.msra.mxu0 %v3853_v20  ;;  %3120 = vmatprep.subr.msk.mxu1 %vm443_vm6, %v468_v49 }
 0x13a   : > { %3121 = vmatpush1.msk.msra.mxu1 %vm442_vm7, %v469_v50 }
 0x13b   : > { %v729_v53 = vpop.permute.xlu1 %728  ;;  %3122 = vmatmul.mubr.msk.f32.vlgmr.msra.gmra.mxu1 %vm506_vm8, %v481_v51 }
 0x13c   : > { %v731_v54 = vsel %vm467_vm5, %v729_v53, %v727_v52  ;;  %v730_v55 = vsel %vm467_vm5, %v727_v52, %v729_v53  ;;  %690 = vmatprep.mubr.f32.mxu1 %v6068_v0  ;;  %vm1623_vm5 = vcmp.lt.s32.totalorder %v3856_v21, 8 }
 0x13d   : > { %3132 = vmatprep.subr.msk.mxu0 %vm443_vm6, %v730_v55  ;;  %vm1622_vm6 = vcmp.ge.s32.totalorder %v3849_v18, 8 }
 0x13e   : > { %3133 = vmatpush1.msk.msra.mxu0 %vm442_vm7, %v731_v54  ;;  %vm1621_vm7 = vcmp.ge.s32.totalorder %v3856_v21, 8 }
 0x13f   : > { %3123 = vmatmul.mubr.msk.f32.gmra.mxu1 %vm506_vm8, %v482_v56  ;;  %3134 = vmatmul.mubr.msk.f32.vlgmr.msra.gmra.mxu0 %vm506_vm8, %v3126_v57 }
 0x140   : > { %696 = vmatprep.mubr.f32.mxu1 %v6068_v0  ;;  %829 = vmatprep.mubr.f32.mxu0 %v6068_v0 }
 0x143   : > { %3124 = vmatmul.mubr.msk.f32.gmra.mxu1 %vm506_vm8, %v483_v58  ;;  %3135 = vmatmul.mubr.msk.f32.gmra.mxu0 %vm506_vm8, %v3127_v59 }
 0x144   : > { %702 = vmatprep.mubr.f32.mxu1 %v6068_v0  ;;  %835 = vmatprep.mubr.f32.mxu0 %v6068_v0 }
 0x145   : > { %v4036_v7 = vpop.permute.xlu0 %877 }
 0x147   : > { %3125 = vmatmul.mubr.msk.f32.gmra.mxu1 %vm506_vm8, %v484_v60  ;;  %3136 = vmatmul.mubr.msk.f32.gmra.mxu0 %vm506_vm8, %v3128_v61 }
 0x148   : > { %841 = vmatprep.mubr.f32.mxu0 %v6068_v0  ;;  %1205 = vmatprep.mubr.f32.mxu1 %v6068_v0  ;;  %v873_v26 = vpop.permute.xlu1 %872 }
 0x149   : > { %v863_v14 = vpop.permute.xlu0 %862 }
 0x14b   : > { %3137 = vmatmul.mubr.msk.f32.gmra.mxu0 %vm506_vm8, %v3129_v62  ;;  %vm2203_vm8 = vcmp.lt.s32.totalorder %v3849_v18, 4 }
 0x14c   : > { %1306 = vmatprep.mubr.f32.mxu0 %v6068_v0  ;;  %v868_v30 = vpop.permute.xlu1 %867 }
 0x14d   : > { %v4112_v44 = vpop.permute.xlu0 %3419 }
 0x150   : > { %v4116_v46 = vpop.permute.xlu1 %3414 }
 0x151   : > { %v4122_v48 = vpop.permute.xlu0 %3429 }
 0x154   : > { %v4129_v51 = vpop.permute.xlu1 %3424 }
 0x155   : > { %v4135_v53 = vpop.permute.xlu0 %3444 }
 0x158   : > { %v4137_v55 = vpop.permute.xlu1 %3434 }
 0x159   : > { %v4145_v57 = vpop.permute.xlu0 %3454 }
 0x15c   : > { %v4151_v58 = vpop.permute.xlu1 %3439 }
 0x15d   : > { %v4159_v60 = vpop.permute.xlu0 %3464 }
 0x160   : > { %v4157_v59 = vpop.permute.xlu1 %3449 }
 0x18b   : > { %v585_v63 = vpop.f32.mrf.mxu0 }
 0x18d   : > { %v587_v1 = vpop.f32.mrf.mxu0 }
 0x18f   : > { %v591_v2 = vpop.f32.mrf.mxu0 }
 0x191   : > { %v593_v3 = vpop.f32.mrf.mxu0 }
 0x193   : > { %v597_v4 = vpop.f32.mrf.mxu0 }
 0x195   : > { %v4032_v5 = vpop.f32.mrf.mxu0 }
 0x197   : > { %v4034_v6 = vpop.f32.mrf.mxu0 }
 0x199   : > { %v4038_v9 = vpop.f32.mrf.mxu0 }
 0x1fb   : > { %v686_v8 = vpop.f32.mrf.mxu1 }
 0x1fc   : > { %v687_v10 = vadd.f32 %v686_v8, %v585_v63 }
 0x1fd   : > { %v688_v16 = vpop.f32.mrf.mxu1 }
 0x1fe   : > { %v689_v20 = vadd.f32 %v688_v16, %v587_v1 }
 0x1ff   : > { %v825_v12 = vpop.f32.mrf.mxu0  ;;  %v692_v25 = vpop.f32.mrf.mxu1 }
 0x200   : > { %v848_v13 = vadd.f32 %v825_v12, %v687_v10  ;;  %v693_v28 = vadd.f32 %v692_v25, %v591_v2  ;;  %v4166_v2 = vpop.permute.xlu1 %3459 }
 0x201   : > { %v827_v19 = vpop.f32.mrf.mxu0  ;;  %v694_v33 = vpop.f32.mrf.mxu1 }
 0x202   : > { %v880_v15 = vadd.f32 %v863_v14, %v848_v13  ;;  %v849_v22 = vadd.f32 %v827_v19, %v689_v20  ;;  %v695_v35 = vadd.f32 %v694_v33, %v593_v3  ;;  %v4168_v3 = vpop.permute.xlu0 %3469 }
 0x203   : > { %v831_v27 = vpop.f32.mrf.mxu0  ;;  %v698_v39 = vpop.f32.mrf.mxu1 }
 0x204   : > { %v4040_v17 = vmax.f32 %v880_v15, 0.0  ;;  %v881_v23 = vadd.f32 %v863_v14, %v849_v22  ;;  %v850_v29 = vadd.f32 %v831_v27, %v693_v28  ;;  %v699_v41 = vadd.f32 %v698_v39, %v597_v4 }
 0x205   : > { %v833_v34 = vpop.f32.mrf.mxu0  ;;  %v700_v47 = vpop.f32.mrf.mxu1 }
 0x206   : > { %6134 = vst [vmem:[#allocation14_spill] sm:$0xff] %v4040_v17  ;;  %1355 = vrot.lane.b32.xlu1 %v4040_v17, %s3650_s22  ;;  %950 = vrot.lane.b32.xlu0 %v4040_v17, %s3650_s22  ;;  %v4054_v24 = vmax.f32 %v881_v23, 0.0  ;;  %v882_v31 = vadd.f32 %v868_v30, %v850_v29  ;;  %v851_v36 = vadd.f32 %v833_v34, %v695_v35 }
 0x207   : > { %v837_v40 = vpop.f32.mrf.mxu0  ;;  %v701_v50 = vadd.f32 %v700_v47, %v4032_v5  ;;  %v704_v61 = vpop.f32.mrf.mxu1 }
 0x208   : > { %6135 = vst [vmem:[#allocation15_spill] sm:$0xff] %v4054_v24  ;;  %v4072_v32 = vmax.f32 %v882_v31, 0.0  ;;  %v883_v37 = vadd.f32 %v868_v30, %v851_v36  ;;  %v852_v42 = vadd.f32 %v837_v40, %v699_v41  ;;  %v705_v63 = vadd.f32 %v704_v61, %v4034_v6  ;;  %v4179_v5 = vpop.permute.xlu1 %3474  ;;  %v4181_v6 = vpop.permute.xlu0 %3479 }
 0x209   : > { %v839_v49 = vpop.f32.mrf.mxu0  ;;  %6136 = vst [vmem:[#allocation16_spill] sm:$0xff] %v4179_v5  ;;  %6137 = vst [vmem:[#allocation17_spill] sm:$0xff] %v4181_v6  ;;  %v706_v13 = vpop.f32.mrf.mxu1  ;;  %v3427_v36 = vunpack.i.h.bf16 %v4129_v51 }
 0x20a   : > { %1083 = vrot.lane.b32.xlu1 %v4040_v17, %s3653_s15  ;;  %2224 = vrot.lane.b32.xlu0 %v4040_v17, %s3650_s22  ;;  %v4094_v38 = vmax.f32 %v883_v37, 0.0  ;;  %v884_v43 = vadd.f32 %v873_v26, %v852_v42  ;;  %v853_v52 = vadd.f32 %v839_v49, %v701_v50  ;;  %v707_v15 = vadd.f32 %v706_v13, %v4038_v9 }
 0x20b   : > { %v843_v62 = vpop.f32.mrf.mxu0  ;;  %v3432_v42 = vunpack.i.h.bf16 %v4122_v48 }
 0x20c   : > { %v4114_v45 = vmax.f32 %v884_v43, 0.0  ;;  %v885_v54 = vadd.f32 %v873_v26, %v853_v52  ;;  %v854_v1 = vadd.f32 %v843_v62, %v705_v63  ;;  %v4189_v10 = vpop.permute.xlu1 %3484  ;;  %v4191_v12 = vpop.permute.xlu0 %3489  ;;  %v3422_v63 = vunpack.i.h.bf16 %v4112_v44 }
 0x20d   : > { %6138 = vst [vmem:[#allocation18_spill] sm:$0xff] %v4189_v10  ;;  %6139 = vst [vmem:[#allocation19_spill] sm:$0xff] %v4191_v12  ;;  %v845_v14 = vpop.f32.mrf.mxu0 }
 0x20e   : > { %1059 = vrot.lane.b32.xlu1 %v4040_v17, %s3654_s16  ;;  %1727 = vrot.lane.b32.xlu0 %v4040_v17, %s3651_s13  ;;  %v4143_v56 = vmax.f32 %v885_v54, 0.0  ;;  %v886_v4 = vadd.f32 %v4036_v7, %v854_v1  ;;  %v855_v20 = vadd.f32 %v845_v14, %v707_v15 }
 0x210   : > { %v4183_v8 = vmax.f32 %v886_v4, 0.0  ;;  %v4202_v16 = vpop.permute.xlu1 %3499  ;;  %v4204_v19 = vpop.permute.xlu0 %3494  ;;  %v887_v22 = vadd.f32 %v4036_v7, %v855_v20 }
 0x211   : > { %6140 = vst [vmem:[#allocation20_spill] sm:$0xff] %v4202_v16 }
 0x212   : > { %952 = vrot.lane.b32.xlu1 %v4054_v24, %s3650_s22  ;;  %1666 = vrot.lane.b32.xlu0 %v4040_v17, %s3651_s13  ;;  %v4215_v25 = vmax.f32 %v887_v22, 0.0 }
 0x214   : > { %6141 = vst [vmem:[#allocation21_spill] sm:$0xff] %v4215_v25 }
 0x216   : > { %2625 = vrot.lane.b32.xlu1 %v4054_v24, %s3650_s22  ;;  %1703 = vrot.lane.b32.xlu0 %v4040_v17, %s3652_s25 }
 0x21a   : > { %1735 = vrot.lane.b32.xlu1 %v4054_v24, %s3651_s13  ;;  %1641 = vrot.lane.b32.xlu0 %v4040_v17, %s3652_s25 }
 0x21e   : > { %1711 = vrot.lane.b32.xlu1 %v4054_v24, %s3652_s25  ;;  %1357 = vrot.lane.b32.xlu0 %v4054_v24, %s3650_s22 }
 0x222   : > { %956 = vrot.lane.b32.xlu1 %v4072_v32, %s3650_s22  ;;  %1091 = vrot.lane.b32.xlu0 %v4054_v24, %s3653_s15 }
 0x226   : > { %1085 = vrot.lane.b32.xlu1 %v4072_v32, %s3653_s15  ;;  %1067 = vrot.lane.b32.xlu0 %v4054_v24, %s3654_s16 }
 0x22a   : > { %1061 = vrot.lane.b32.xlu1 %v4072_v32, %s3654_s16  ;;  %1361 = vrot.lane.b32.xlu0 %v4072_v32, %s3650_s22 }
 0x22e   : > { %1668 = vrot.lane.b32.xlu1 %v4072_v32, %s3651_s13  ;;  %2230 = vrot.lane.b32.xlu0 %v4072_v32, %s3650_s22 }
 0x232   : > { %1643 = vrot.lane.b32.xlu1 %v4072_v32, %s3652_s25  ;;  %1729 = vrot.lane.b32.xlu0 %v4072_v32, %s3651_s13 }
 0x236   : > { %1363 = vrot.lane.b32.xlu1 %v4094_v38, %s3650_s22  ;;  %1705 = vrot.lane.b32.xlu0 %v4072_v32, %s3652_s25 }
 0x23a   : > { %2631 = vrot.lane.b32.xlu1 %v4094_v38, %s3650_s22  ;;  %958 = vrot.lane.b32.xlu0 %v4094_v38, %s3650_s22 }
 0x23e   : > { %1737 = vrot.lane.b32.xlu1 %v4094_v38, %s3651_s13  ;;  %1093 = vrot.lane.b32.xlu0 %v4094_v38, %s3653_s15 }
 0x242   : > { %1713 = vrot.lane.b32.xlu1 %v4094_v38, %s3652_s25  ;;  %1069 = vrot.lane.b32.xlu0 %v4094_v38, %s3654_s16 }
 0x246   : > { %1367 = vrot.lane.b32.xlu1 %v4114_v45, %s3650_s22  ;;  %2000 = vrot.lane.b32.xlu0 %v4094_v38, %s3651_s13 }
 0x24a   : > { %1087 = vrot.lane.b32.xlu1 %v4114_v45, %s3653_s15  ;;  %962 = vrot.lane.b32.xlu0 %v4114_v45, %s3650_s22 }
 0x24e   : > { %1063 = vrot.lane.b32.xlu1 %v4114_v45, %s3654_s16  ;;  %2236 = vrot.lane.b32.xlu0 %v4114_v45, %s3650_s22 }
 0x252   : > { %1731 = vrot.lane.b32.xlu1 %v4114_v45, %s3651_s13  ;;  %2358 = vrot.lane.b32.xlu0 %v4114_v45, %s3655_s12 }
 0x256   : > { %1670 = vrot.lane.b32.xlu1 %v4114_v45, %s3651_s13  ;;  %1369 = vrot.lane.b32.xlu0 %v4143_v56, %s3650_s22 }
 0x25a   : > { %1707 = vrot.lane.b32.xlu1 %v4114_v45, %s3652_s25  ;;  %1095 = vrot.lane.b32.xlu0 %v4143_v56, %s3653_s15 }
 0x25e   : > { %1645 = vrot.lane.b32.xlu1 %v4114_v45, %s3652_s25  ;;  %1071 = vrot.lane.b32.xlu0 %v4143_v56, %s3654_s16 }
 0x262   : > { %964 = vrot.lane.b32.xlu1 %v4143_v56, %s3650_s22  ;;  %1739 = vrot.lane.b32.xlu0 %v4143_v56, %s3651_s13 }
 0x266   : > { %2637 = vrot.lane.b32.xlu1 %v4143_v56, %s3650_s22  ;;  %1715 = vrot.lane.b32.xlu0 %v4143_v56, %s3652_s25 }
 0x26a   : > { %2002 = vrot.lane.b32.xlu1 %v4143_v56, %s3651_s13  ;;  %968 = vrot.lane.b32.xlu0 %v4183_v8, %s3650_s22 }
 0x26e   : > { %1089 = vrot.lane.b32.xlu1 %v4183_v8, %s3653_s15  ;;  %1373 = vrot.lane.b32.xlu0 %v4183_v8, %s3650_s22 }
 0x272   : > { %1065 = vrot.lane.b32.xlu1 %v4183_v8, %s3654_s16  ;;  %2242 = vrot.lane.b32.xlu0 %v4183_v8, %s3650_s22 }
 0x276   : > { %1733 = vrot.lane.b32.xlu1 %v4183_v8, %s3651_s13  ;;  %1672 = vrot.lane.b32.xlu0 %v4183_v8, %s3651_s13 }
 0x278   : > { %v1356_v9 = vpop.permute.xlu1 %1355  ;;  %v951_v23 = vpop.permute.xlu0 %950 }
 0x279   : > { %v4262_v41 = vsel %vm972_vm9, %v3427_v36, %v951_v23 }
 0x27a   : > { %1709 = vrot.lane.b32.xlu1 %v4183_v8, %s3652_s25  ;;  %1647 = vrot.lane.b32.xlu0 %v4183_v8, %s3652_s25 }
 0x27c   : > { %v4217_v26 = vpop.permute.xlu1 %1083  ;;  %v4219_v27 = vpop.permute.xlu0 %2224 }
 0x27e   : > { %970 = vrot.lane.b32.xlu1 %v4215_v25, %s3650_s22  ;;  %2360 = vrot.lane.b32.xlu0 %v4183_v8, %s3655_s12 }
 0x280   : > { %v4225_v7 = vpop.permute.xlu1 %1059  ;;  %v4227_v28 = vpop.permute.xlu0 %1727 }
 0x281   : > { %6142 = vst [vmem:[#allocation22_spill] sm:$0xff] %v4227_v28 }
 0x282   : > { %1375 = vrot.lane.b32.xlu1 %v4215_v25, %s3650_s22  ;;  %1097 = vrot.lane.b32.xlu0 %v4215_v25, %s3653_s15 }
 0x284   : > { %v953_v29 = vpop.permute.xlu1 %952  ;;  %v4233_v30 = vpop.permute.xlu0 %1666 }
 0x285   : > { %6143 = vst [vmem:[#allocation23_spill] sm:$0xff] %v4233_v30  ;;  %v4259_v40 = vsel %vm972_vm9, %v951_v23, %v953_v29 }
 0x286   : > { %2643 = vrot.lane.b32.xlu1 %v4215_v25, %s3650_s22  ;;  %1073 = vrot.lane.b32.xlu0 %v4215_v25, %s3654_s16 }
 0x288   : > { %v4239_v31 = vpop.permute.xlu1 %2625  ;;  %v4241_v33 = vpop.permute.xlu0 %1703 }
 0x289   : > { %6144 = vst [vmem:[#allocation24_spill] sm:$0xff] %v4241_v33 }
 0x28a   : > { %2004 = vrot.lane.b32.xlu1 %v4215_v25, %s3651_s13  ;;  %1741 = vrot.lane.b32.xlu0 %v4215_v25, %s3651_s13 }
 0x28c   : > { %v4247_v34 = vpop.permute.xlu1 %1735  ;;  %v4249_v35 = vpop.permute.xlu0 %1641 }
 0x28d   : > { %6145 = vst [vmem:[#allocation25_spill] sm:$0xff] %v4247_v34  ;;  %6146 = vst [vmem:[#allocation26_spill] sm:$0xff] %v4249_v35 }
 0x28e   : > { %2368 = vrot.lane.b32.xlu1 %v4215_v25, %s3655_s12  ;;  %1717 = vrot.lane.b32.xlu0 %v4215_v25, %s3652_s25 }
 0x290   : > { %v4256_v37 = vpop.permute.xlu1 %1711  ;;  %v1358_v39 = vpop.permute.xlu0 %1357 }
 0x291   : > { %6147 = vst [vmem:[#allocation27_spill] sm:$0xff] %v4256_v37  ;;  %v4272_v49 = vsel %vm972_vm9, %v1358_v39, %v3432_v42  ;;  %v4283_v54 = vsel %vm972_vm9, %v1356_v9, %v1358_v39  ;;  %v3431_v39 = vunpack.i.l.bf16 %v4122_v48  ;;  %v3417_v48 = vunpack.i.h.bf16 %v4116_v46 }
 0x292   : > { %1022 = vrot.lane.b32.xlu0 %v4259_v40, %s3653_s15  ;;  %1014 = vrot.lane.b32.xlu1 %v4262_v41, %s3653_s15  ;;  %6148 = vst [vmem:[#allocation28_spill] sm:$0xff] %v4272_v49  ;;  %6149 = vst [vmem:[#allocation29_spill] sm:$0xff] %v4283_v54 }
 0x294   : > { %v957_v43 = vpop.permute.xlu1 %956  ;;  %v4269_v47 = vpop.permute.xlu0 %1091 }
 0x295   : > { %v4301_v13 = vsel %vm972_vm9, %v3422_v63, %v957_v43 }
 0x296   : > { %989 = vrot.lane.b32.xlu1 %v4262_v41, %s3654_s16  ;;  %1427 = vrot.lane.b32.xlu0 %v4272_v49, %s3653_s15 }
 0x298   : > { %v4278_v50 = vpop.permute.xlu1 %1085  ;;  %v4280_v52 = vpop.permute.xlu0 %1067 }
 0x29a   : > { %1419 = vrot.lane.b32.xlu1 %v4283_v54, %s3653_s15  ;;  %997 = vrot.lane.b32.xlu0 %v4259_v40, %s3654_s16 }
 0x29c   : > { %v4289_v61 = vpop.permute.xlu1 %1061  ;;  %v1362_v62 = vpop.permute.xlu0 %1361 }
 0x29e   : > { %1395 = vrot.lane.b32.xlu1 %v4283_v54, %s3654_s16  ;;  %1403 = vrot.lane.b32.xlu0 %v4272_v49, %s3654_s16  ;;  %v3421_v54 = vunpack.i.l.bf16 %v4112_v44 }
 0x2a0   : > { %v4296_v1 = vpop.permute.xlu1 %1668  ;;  %v4298_v4 = vpop.permute.xlu0 %2230 }
 0x2a1   : > { %6150 = vst [vmem:[#allocation30_spill] sm:$0xff] %v4296_v1 }
 0x2a2   : > { %1016 = vrot.lane.b32.xlu1 %v4301_v13, %s3653_s15 }
 0x2a4   : > { %v4305_v14 = vpop.permute.xlu1 %1643  ;;  %v4307_v15 = vpop.permute.xlu0 %1729 }
 0x2a5   : > { %6151 = vst [vmem:[#allocation31_spill] sm:$0xff] %v4305_v14  ;;  %6152 = vst [vmem:[#allocation32_spill] sm:$0xff] %v4307_v15 }
 0x2a6   : > { %991 = vrot.lane.b32.xlu1 %v4301_v13, %s3654_s16 }
 0x2a8   : > { %v1364_v20 = vpop.permute.xlu1 %1363  ;;  %v4311_v22 = vpop.permute.xlu0 %1705 }
 0x2a9   : > { %6153 = vst [vmem:[#allocation33_spill] sm:$0xff] %v4311_v22  ;;  %v4314_v9 = vsel %vm972_vm9, %v1362_v62, %v1364_v20  ;;  %v4333_v63 = vsel %vm972_vm9, %v1364_v20, %v3431_v39 }
 0x2aa   : > { %6154 = vst [vmem:[#allocation34_spill] sm:$0xff] %v4314_v9  ;;  %1421 = vrot.lane.b32.xlu1 %v4314_v9, %s3653_s15 }
 0x2ac   : > { %v4318_v23 = vpop.permute.xlu1 %2631  ;;  %v959_v29 = vpop.permute.xlu0 %958 }
 0x2ad   : > { %v4321_v36 = vsel %vm972_vm9, %v957_v43, %v959_v29 }
 0x2ae   : > { %1024 = vrot.lane.b32.xlu0 %v4321_v36, %s3653_s15  ;;  %1397 = vrot.lane.b32.xlu1 %v4314_v9, %s3654_s16 }
 0x2b0   : > { %v4328_v42 = vpop.permute.xlu1 %1737  ;;  %v4330_v62 = vpop.permute.xlu0 %1093 }
 0x2b1   : > { %6155 = vst [vmem:[#allocation35_spill] sm:$0xff] %v4328_v42 }
 0x2b2   : > { %1429 = vrot.lane.b32.xlu0 %v4333_v63, %s3653_s15 }
 0x2b4   : > { %v4337_v43 = vpop.permute.xlu1 %1713  ;;  %v4339_v29 = vpop.permute.xlu0 %1069 }
 0x2b5   : > { %6156 = vst [vmem:[#allocation36_spill] sm:$0xff] %v4337_v43 }
 0x2b6   : > { %999 = vrot.lane.b32.xlu0 %v4321_v36, %s3654_s16 }
 0x2b8   : > { %v1368_v0 = vpop.permute.xlu1 %1367  ;;  %v4343_v16 = vpop.permute.xlu0 %2000 }
 0x2b9   : > { %6157 = vst [vmem:[#allocation37_spill] sm:$0xff] %v4343_v16 }
 0x2ba   : > { %1405 = vrot.lane.b32.xlu0 %v4333_v63, %s3654_s16 }
 0x2bc   : > { %v4348_v20 = vpop.permute.xlu1 %1087  ;;  %v963_v39 = vpop.permute.xlu0 %962 }
 0x2bd   : > { %v4351_v35 = vsel %vm972_vm9, %v3417_v48, %v963_v39 }
 0x2be   : > { %1018 = vrot.lane.b32.xlu1 %v4351_v35, %s3653_s15 }
 0x2c0   : > { %v4355_v14 = vpop.permute.xlu1 %1063  ;;  %v4357_v12 = vpop.permute.xlu0 %2236 }
 0x2c2   : > { %993 = vrot.lane.b32.xlu1 %v4351_v35, %s3654_s16 }
 0x2c4   : > { %v4361_v16 = vpop.permute.xlu1 %1731  ;;  %v4363_v33 = vpop.permute.xlu0 %2358 }
 0x2c5   : > { %6158 = vst [vmem:[#allocation38_spill] sm:$0xff] %v4361_v16  ;;  %6159 = vst [vmem:[#allocation39_spill] sm:$0xff] %v4363_v33 }
 0x2c8   : > { %v4365_v37 = vpop.permute.xlu1 %1670  ;;  %v1370_v22 = vpop.permute.xlu0 %1369 }
 0x2c9   : > { %6160 = vst [vmem:[#allocation40_spill] sm:$0xff] %v4365_v37  ;;  %v4368_v48 = vsel %vm972_vm9, %v1368_v0, %v1370_v22  ;;  %v3426_v0 = vunpack.i.l.bf16 %v4129_v51 }
 0x2ca   : > { %1423 = vrot.lane.b32.xlu1 %v4368_v48, %s3653_s15 }
 0x2cb   : > { %v4393_v28 = vsel %vm972_vm9, %v1370_v22, %v3426_v0 }
 0x2cc   : > { %v4372_v43 = vpop.permute.xlu1 %1707  ;;  %v1096_v10 = vpop.permute.xlu0 %1095 }
 0x2cd   : > { %6161 = vst [vmem:[#allocation41_spill] sm:$0xff] %v4372_v43  ;;  %v1105_v44 = vsel %vm1030_vm11, %v1096_v10, %v4348_v20 }
 0x2ce   : > { %1399 = vrot.lane.b32.xlu1 %v4368_v48, %s3654_s16 }
 0x2d0   : > { %v4376_v30 = vpop.permute.xlu1 %1645  ;;  %v4378_v1 = vpop.permute.xlu0 %1071 }
 0x2d1   : > { %6162 = vst [vmem:[#allocation42_spill] sm:$0xff] %v4376_v30  ;;  %v3416_v30 = vunpack.i.l.bf16 %v4116_v46 }
 0x2d4   : > { %v965_v33 = vpop.permute.xlu1 %964  ;;  %v4380_v6 = vpop.permute.xlu0 %1739 }
 0x2d5   : > { %6163 = vst [vmem:[#allocation43_spill] sm:$0xff] %v4380_v6  ;;  %v4383_v37 = vsel %vm972_vm9, %v963_v39, %v965_v33 }
 0x2d6   : > { %1026 = vrot.lane.b32.xlu0 %v4383_v37, %s3653_s15 }
 0x2d8   : > { %v4388_v43 = vpop.permute.xlu1 %2637  ;;  %v4390_v34 = vpop.permute.xlu0 %1715 }
 0x2d9   : > { %6164 = vst [vmem:[#allocation44_spill] sm:$0xff] %v4390_v34 }
 0x2da   : > { %1431 = vrot.lane.b32.xlu0 %v4393_v28, %s3653_s15 }
 0x2dc   : > { %v4398_v42 = vpop.permute.xlu1 %2002  ;;  %v969_v33 = vpop.permute.xlu0 %968 }
 0x2dd   : > { %6165 = vst [vmem:[#allocation45_spill] sm:$0xff] %v4398_v42  ;;  %v4401_v39 = vsel %vm972_vm9, %v3416_v30, %v969_v33 }
 0x2de   : > { %1001 = vrot.lane.b32.xlu0 %v4383_v37, %s3654_s16  ;;  %1020 = vrot.lane.b32.xlu1 %v4401_v39, %s3653_s15 }
 0x2e0   : > { %v1090_v51 = vpop.permute.xlu1 %1089  ;;  %v1374_v22 = vpop.permute.xlu0 %1373 }
 0x2e2   : > { %1407 = vrot.lane.b32.xlu0 %v4393_v28, %s3654_s16  ;;  %995 = vrot.lane.b32.xlu1 %v4401_v39, %s3654_s16 }
 0x2e4   : > { %v4411_v46 = vpop.permute.xlu1 %1065  ;;  %v4413_v0 = vpop.permute.xlu0 %2242 }
 0x2e8   : > { %v1734_v30 = vpop.permute.xlu1 %1733  ;;  %v4415_v42 = vpop.permute.xlu0 %1672 }
 0x2e9   : > { %6166 = vst [vmem:[#allocation46_spill] sm:$0xff] %v4415_v42 }
 0x2ec   : > { %v1710_v34 = vpop.permute.xlu1 %1709  ;;  %v4417_v15 = vpop.permute.xlu0 %1647 }
 0x2ed   : > { %6167 = vst [vmem:[#allocation47_spill] sm:$0xff] %v4417_v15 }
 0x2f0   : > { %v971_v5 = vpop.permute.xlu1 %970  ;;  %v2361_v6 = vpop.permute.xlu0 %2360 }
 0x2f1   : > { %v4420_v16 = vsel %vm972_vm9, %v969_v33, %v971_v5 }
 0x2f2   : > { %1028 = vrot.lane.b32.xlu0 %v4420_v16, %s3653_s15 }
 0x2f4   : > { %v1376_v49 = vpop.permute.xlu1 %1375  ;;  %v1098_v9 = vpop.permute.xlu0 %1097 }
 0x2f5   : > { %v1102_v15 = vsel %vm1030_vm11, %v1090_v51, %v1098_v9  ;;  %v1106_v5 = vsel %vm1030_vm11, %v1098_v9, %v1090_v51  ;;  %v4433_v33 = vsel %vm972_vm9, %v1374_v22, %v1376_v49  ;;  %v4436_v42 = vsel %vm972_vm9, %v1376_v49, %v3421_v54 }
 0x2f6   : > { %3142 = vmatprep.subr.msk.mxu1 %vm923_vm10, %v1106_v5  ;;  %1425 = vrot.lane.b32.xlu1 %v4433_v33, %s3653_s15  ;;  %v1101_v49 = vsel %vm1030_vm11, %v4348_v20, %v1096_v10  ;;  %v1100_v51 = vsel %vm1030_vm11, %v4278_v50, %v4330_v62  ;;  %v3496_v10 = vunpack.i.l.bf16 %v4204_v19  ;;  %v1103_v20 = vsel %vm1030_vm11, %v4269_v47, %v4217_v26 }
 0x2f7   : > { %1433 = vrot.lane.b32.xlu0 %v4436_v42, %s3653_s15  ;;  %3143 = vmatpush1.msk.msra.mxu1 %vm922_vm12, %v1102_v15  ;;  %v1104_v15 = vsel %vm1030_vm11, %v4330_v62, %v4278_v50  ;;  %v1099_v50 = vsel %vm1030_vm11, %v4217_v26, %v4269_v47  ;;  %s3012_s15 = scalar_lea.sflag [#allocation6], %s3817_s23 }
 0x2f8   : > { %v4452_v54 = vpop.permute.xlu1 %2643  ;;  %3144 = vmatprep.subr.msk.mxu1 %vm923_vm10, %v1105_v44  ;;  %v1074_v9 = vpop.permute.xlu0 %1073 }
 0x2f9   : > { %3145 = vmatpush1.msk.msra.mxu1 %vm922_vm12, %v1101_v49 }
 0x2fa   : > { %3146 = vmatprep.subr.msk.mxu1 %vm923_vm10, %v1104_v15  ;;  %2366 = vrot.lane.b32.xlu1 %v4143_v56, %s3655_s12 }
 0x2fb   : > { %1998 = vrot.lane.b32.xlu0 %v4054_v24, %s3651_s13  ;;  %3147 = vmatpush1.msk.msra.mxu1 %vm922_vm12, %v1100_v51  ;;  %s3349_s13 = smul.u32 48, %s3817_s23 }
 0x2fc   : > { %v2005_v62 = vpop.permute.xlu1 %2004  ;;  %3148 = vmatprep.subr.msk.mxu1 %vm923_vm10, %v1103_v20  ;;  %v1742_v22 = vpop.permute.xlu0 %1741 }
 0x2fd   : > { %v4488_v5 = vsel %vm1674_vm13, %v2005_v62, %v3496_v10  ;;  %v4492_v44 = vsel %vm1674_vm13, %v3496_v10, %v2005_v62  ;;  %v4496_v49 = vsel %vm1674_vm13, %v1734_v30, %v1742_v22  ;;  %v4500_v26 = vsel %vm1674_vm13, %v1742_v22, %v1734_v30  ;;  %3149 = vmatpush1.msk.msra.mxu1 %vm922_vm12, %v1099_v50  ;;  %s402_s30 = scalar_lea.vmem [#allocation7], %s3349_s13 }
 0x2fe   : > { %6168 = vst [vmem:[#allocation48_spill] sm:$0xff] %v4488_v5  ;;  %6169 = vst [vmem:[#allocation49_spill] sm:$0xff] %v4492_v44  ;;  %1157 = vmatprep.subr.mxu1 %v4215_v25  ;;  %2356 = vrot.lane.b32.xlu1 %v4072_v32, %s3655_s12  ;;  %v1078_v50 = vsel %vm1005_vm1, %v4411_v46, %v1074_v9  ;;  %v1082_v62 = vsel %vm1005_vm1, %v1074_v9, %v4411_v46  ;;  %v3461_v5 = vunpack.i.l.bf16 %v4166_v2  ;;  %s3025_s14 = sshll.u32 %s402_s30, 4  ;;  %s6001_s14 = int_to_ptr.vmem [resolvable:$true] %s3025_s14 }
 0x2ff   : > { %2364 = vrot.lane.b32.xlu0 %v4094_v38, %s3655_s12  ;;  %1158 = vmatpush1.msra.mxu1 %v4183_v8  ;;  %v1077_v22 = vsel %vm1005_vm1, %v4355_v14, %v4378_v1  ;;  %v1081_v46 = vsel %vm1005_vm1, %v4378_v1, %v4355_v14  ;;  %v1075_v1 = vsel %vm1005_vm1, %v4225_v7, %v4280_v52 }
 0x300   : > { %v2369_v47 = vpop.permute.xlu1 %2368  ;;  %1159 = vmatprep.subr.mxu1 %v4143_v56  ;;  %v1718_v30 = vpop.permute.xlu0 %1717  ;;  %v1079_v14 = vsel %vm1005_vm1, %v4280_v52, %v4225_v7  ;;  %v6172_v7 = vmov 0.0   ;;  %v3139_v52 = vld [vmem:[%s6053_s3 + $0x28] sm:$0xff] }
 0x301   : > { %v4515_v15 = vsel %vm2301_vm14, %v2361_v6, %v2369_v47  ;;  %v4519_v51 = vsel %vm2301_vm14, %v2369_v47, %v2361_v6  ;;  %v4523_v10 = vsel %vm1649_vm15, %v1710_v34, %v1718_v30  ;;  %v4527_v20 = vsel %vm1649_vm15, %v1718_v30, %v1710_v34  ;;  %1160 = vmatpush1.msra.mxu1 %v4114_v45 }
 0x302   : > { %6170 = vst [vmem:[#allocation50_spill] sm:$0xff] %v4515_v15  ;;  %6171 = vst [vmem:[#allocation51_spill] sm:$0xff] %v4519_v51  ;;  %1161 = vmatprep.subr.mxu1 %v4094_v38  ;;  %2354 = vrot.lane.b32.xlu1 %v4040_v17, %s3655_s12  ;;  %v1076_v30 = vsel %vm1005_vm1, %v4289_v61, %v4339_v29 }
 0x303   : > { %1003 = vrot.lane.b32.xlu0 %v4420_v16, %s3654_s16  ;;  %1162 = vmatpush1.msra.mxu1 %v4072_v32 }
 0x304   : > { %v4538_v6 = vpop.permute.xlu1 %1014  ;;  %1163 = vmatprep.subr.mxu1 %v4054_v24  ;;  %v4541_v34 = vpop.permute.xlu0 %1022 }
 0x305   : > { %1164 = vmatpush1.msra.mxu1 %v4040_v17 }
 0x306   : > { %3150 = vmatprep.subr.msk.mxu1 %vm921_vm0, %v1078_v50  ;;  %1401 = vrot.lane.b32.xlu1 %v4433_v33, %s3654_s16  ;;  %v1080_v50 = vsel %vm1005_vm1, %v4339_v29, %v4289_v61  ;;  %v3138_v61 = vld [vmem:[%s6053_s3 + $0x20] sm:$0xff] }
 0x307   : > { %1409 = vrot.lane.b32.xlu0 %v4436_v42, %s3654_s16  ;;  %3151 = vmatpush1.msk.msra.mxu1 %vm920_vm2, %v1082_v62 }
 0x308   : > { %v990_v9 = vpop.permute.xlu1 %989  ;;  %3152 = vmatprep.subr.msk.mxu1 %vm921_vm0, %v1077_v22  ;;  %v4569_v47 = vpop.permute.xlu0 %1427 }
 0x309   : > { %3153 = vmatpush1.msk.msra.mxu1 %vm920_vm2, %v1081_v46 }
 0x30a   : > { %3154 = vmatprep.subr.msk.mxu1 %vm921_vm0, %v1076_v30  ;;  %1980 = vrot.lane.b32.xlu1 %v4215_v25, %s3652_s25 }
 0x30b   : > { %2362 = vrot.lane.b32.xlu0 %v4054_v24, %s3655_s12  ;;  %3155 = vmatpush1.msk.msra.mxu1 %vm920_vm2, %v1080_v50 }
 0x30c   : > { %v4600_v29 = vpop.permute.xlu1 %1419  ;;  %3156 = vmatprep.subr.msk.mxu1 %vm921_vm0, %v1075_v1  ;;  %v998_v62 = vpop.permute.xlu0 %997 }
 0x30d   : > { %v4606_v22 = vsel %vm1005_vm1, %v990_v9, %v998_v62  ;;  %v4610_v46 = vsel %vm1005_vm1, %v998_v62, %v990_v9  ;;  %3157 = vmatpush1.msk.msra.mxu1 %vm920_vm2, %v1079_v14  ;;  %v3141_v14 = vld [vmem:[%s6053_s3 + $0x38] sm:$0xff]  ;;  %v3437_v62 = vunpack.i.h.bf16 %v4137_v55 }
 0x30e   : > { %1978 = vrot.lane.b32.xlu1 %v4143_v56, %s3652_s25  ;;  %3158 = vmatmul.mubr.msk.f32.vlgmr.msra.gmra.mxu1 %vm1128_vm3, %v3138_v61  ;;  %v3140_v61 = vld [vmem:[%s6053_s3 + $0x30] sm:$0xff] }
 0x30f   : > { %3504 = vrot.lane.b32.xlu0 %v6172_v7, %s3652_s25  ;;  %1211 = vmatprep.mubr.f32.mxu1 %v6172_v7  ;;  %v4680_v51 = vsel %vm972_vm9, %v3437_v62, %v4413_v0  ;;  %v3456_v0 = vunpack.i.l.bf16 %v4145_v57 }
 0x310   : > { %v1396_v30 = vpop.permute.xlu1 %1395  ;;  %v1404_v9 = vpop.permute.xlu0 %1403  ;;  %6175 = vst [vmem:[#allocation54_spill] sm:$0xff] %v4680_v51 }
 0x311   : > { %v4625_v50 = vsel %vm1005_vm1, %v1396_v30, %v1404_v9  ;;  %v4629_v1 = vsel %vm1005_vm1, %v1404_v9, %v1396_v30  ;;  %v3442_v30 = vunpack.i.h.bf16 %v4151_v58  ;;  %v3441_v9 = vunpack.i.l.bf16 %v4151_v58 }
 0x312   : > { %2344 = vrot.lane.b32.xlu1 %v4215_v25, %s3656_s27  ;;  %3159 = vmatmul.mubr.msk.f32.gmra.mxu1 %vm1128_vm3, %v3139_v52  ;;  %v3436_v52 = vunpack.i.l.bf16 %v4137_v55  ;;  %v3447_v58 = vunpack.i.h.bf16 %v4135_v53 }
 0x313   : > { %2336 = vrot.lane.b32.xlu0 %v4183_v8, %s3656_s27  ;;  %1217 = vmatprep.mubr.f32.mxu1 %v6172_v7  ;;  %v4663_v15 = vsel %vm972_vm9, %v3441_v9, %v3442_v30  ;;  %v3451_v9 = vunpack.i.l.bf16 %v4157_v59 }
 0x314   : > { %6174 = vst [vmem:[#allocation53_spill] sm:$0xff] %v4663_v15 }
 0x316   : > { %3509 = vrot.lane.b32.xlu1 %v6172_v7, %s3652_s25  ;;  %3160 = vmatmul.mubr.msk.f32.gmra.mxu1 %vm1128_vm3, %v3140_v61  ;;  %v4660_v61 = vsel %vm972_vm9, %v3436_v52, %v3437_v62  ;;  %v3452_v52 = vunpack.i.h.bf16 %v4157_v59  ;;  %v3457_v59 = vunpack.i.h.bf16 %v4145_v57  ;;  %v3462_v62 = vunpack.i.h.bf16 %v4166_v2 }
 0x317   : > { %1976 = vrot.lane.b32.xlu0 %v4094_v38, %s3652_s25  ;;  %1223 = vmatprep.mubr.f32.mxu1 %v6172_v7  ;;  %6173 = vst [vmem:[#allocation52_spill] sm:$0xff] %v4660_v61  ;;  %v3513_v55 = vpack.i.bf16 %v4663_v15, %v4660_v61  ;;  %v3467_v2 = vunpack.i.h.bf16 %v4159_v60 }
 0x318   : > { %v4690_v61 = vsel %vm972_vm9, %v3451_v9, %v3452_v52  ;;  %v4714_v57 = vsel %vm972_vm9, %v3452_v52, %v4298_v4  ;;  %v3466_v9 = vunpack.i.l.bf16 %v4159_v60  ;;  %v4732_v52 = vpop.permute.xlu1 %1016 }
 0x319   : > { %6177 = vst [vmem:[#allocation56_spill] sm:$0xff] %v4690_v61  ;;  %6181 = vst [vmem:[#allocation60_spill] sm:$0xff] %v4714_v57 }
 0x31a   : > { %2342 = vrot.lane.b32.xlu1 %v4143_v56, %s3656_s27  ;;  %3161 = vmatmul.mubr.msk.f32.gmra.mxu1 %vm1128_vm3, %v3141_v14  ;;  %v3446_v14 = vunpack.i.l.bf16 %v4135_v53  ;;  %v4694_v53 = vsel %vm972_vm9, %v3442_v30, %v4357_v12  ;;  %v4707_v12 = vsel %vm972_vm9, %v3456_v0, %v3457_v59  ;;  %v4710_v30 = vsel %vm972_vm9, %v3461_v5, %v3462_v62 }
 0x31b   : > { %2334 = vrot.lane.b32.xlu0 %v4114_v45, %s3656_s27  ;;  %1540 = vmatprep.mubr.f32.mxu1 %v6172_v7  ;;  %6178 = vst [vmem:[#allocation57_spill] sm:$0xff] %v4694_v53  ;;  %6179 = vst [vmem:[#allocation58_spill] sm:$0xff] %v4707_v12  ;;  %v3471_v59 = vunpack.i.l.bf16 %v4168_v3  ;;  %v4725_v5 = vsel %vm972_vm9, %v4388_v43, %v3456_v0  ;;  %v3523_v4 = vpack.i.bf16 %v4710_v30, %v4707_v12 }
 0x31c   : > { %v4687_v15 = vsel %vm972_vm9, %v3446_v14, %v3447_v58  ;;  %6180 = vst [vmem:[#allocation59_spill] sm:$0xff] %v4710_v30  ;;  %6182 = vst [vmem:[#allocation61_spill] sm:$0xff] %v4725_v5  ;;  %v4735_v60 = vsel %vm972_vm9, %v3466_v9, %v3467_v2  ;;  %v4746_v43 = vsel %vm972_vm9, %v4318_v23, %v3466_v9 }
 0x31d   : > { %6176 = vst [vmem:[#allocation55_spill] sm:$0xff] %v4687_v15  ;;  %v3518_v58 = vpack.i.bf16 %v4690_v61, %v4687_v15  ;;  %v3472_v61 = vunpack.i.h.bf16 %v4168_v3  ;;  %6183 = vst [vmem:[#allocation62_spill] sm:$0xff] %v4735_v60  ;;  %v4742_v3 = vsel %vm972_vm9, %v3462_v62, %v4219_v27  ;;  %v4758_v2 = vsel %vm972_vm9, %v4239_v31, %v3471_v59  ;;  %v4760_v27 = vpop.permute.xlu1 %991 }
 0x31e   : > { %2332 = vrot.lane.b32.xlu1 %v4072_v32, %s3656_s27  ;;  %6185 = vst [vmem:[#allocation64_spill] sm:$0xff] %v4742_v3  ;;  %6186 = vst [vmem:[#allocation65_spill] sm:$0xff] %v4746_v43  ;;  %v4767_v23 = vsel %vm972_vm9, %v4452_v54, %v3446_v14 }
 0x31f   : > { %1974 = vrot.lane.b32.xlu0 %v4054_v24, %s3652_s25  ;;  %v4738_v15 = vsel %vm972_vm9, %v3471_v59, %v3472_v61  ;;  %6187 = vst [vmem:[#allocation66_spill] sm:$0xff] %v4758_v2  ;;  %6188 = vst [vmem:[#allocation67_spill] sm:$0xff] %v4767_v23  ;;  %vm2202_vm9 = vcmp.lt.s32.totalorder %v3856_v21, 4  ;;  %s3657_s25 = smov [#allocation7]  }
 0x320   : > { %6184 = vst [vmem:[#allocation63_spill] sm:$0xff] %v4738_v15  ;;  %v4752_v0 = vpop.permute.xlu0 %1024  ;;  %v3528_v61 = vpack.i.bf16 %v4738_v15, %v4735_v60  ;;  %s3581_s16 = sshll.u32 %s3657_s25, 4  ;;  %s3582_s16 = int_to_ptr.vmem [resolvable:$false] %s3581_s16 }
 0x321   : > { %v4774_v31 = vpop.permute.xlu1 %1421  ;;  %p3584_p3 = scmp.lt.s32.totalorder %s6001_s14, %s3582_s16 }
 0x322   : > { %3514 = vrot.lane.b32.xlu1 %v3513_v55, %s3655_s12 }
 0x323   : > { %2340 = vrot.lane.b32.xlu0 %v4094_v38, %s3656_s27 }
 0x324   : > { %v4769_v62 = vpop.permute.xlu0 %1429 }
 0x325   : > { %v4782_v59 = vpop.permute.xlu1 %1397 }
 0x326   : > { %2330 = vrot.lane.b32.xlu1 %v4040_v17, %s3656_s27 }
 0x327   : > { %2299 = vrot.lane.b32.xlu0 %v4680_v51, %s3655_s12 }
 0x328   : > { %v4780_v9 = vpop.permute.xlu0 %999 }
 0x32a   : > { %2297 = vrot.lane.b32.xlu1 %v4694_v53, %s3655_s12 }
 0x32b   : > { %2338 = vrot.lane.b32.xlu0 %v4054_v24, %s3656_s27 }
 0x32c   : > { %v4787_v54 = vpop.permute.xlu0 %1405 }
 0x32e   : > { %3519 = vrot.lane.b32.xlu1 %v3518_v58, %s3655_s12 }
 0x32f   : > { %2295 = vrot.lane.b32.xlu0 %v4714_v57, %s3655_s12 }
 0x332   : > { %2693 = vrot.lane.b32.xlu1 %v4725_v5, %s3655_s12 }
 0x333   : > { %3524 = vrot.lane.b32.xlu0 %v3523_v4, %s3655_s12 }
 0x336   : > { %2293 = vrot.lane.b32.xlu1 %v4742_v3, %s3655_s12 }
 0x337   : > { %2691 = vrot.lane.b32.xlu0 %v4746_v43, %s3655_s12 }
 0x33a   : > { %3529 = vrot.lane.b32.xlu1 %v3528_v61, %s3655_s12 }
 0x33b   : > { %2689 = vrot.lane.b32.xlu0 %v4758_v2, %s3655_s12 }
 0x33e   : > { %3534 = vrot.lane.b32.xlu1 %v3513_v55, %s3656_s27  ;;  %v1019_v55 = vpop.permute.xlu1 %1018 }
 0x33f   : > { %2695 = vrot.lane.b32.xlu0 %v4767_v23, %s3655_s12  ;;  %s3583_s12 = scalar_lea.vmem %s3582_s16, 1536 }
 0x342   : > { %2272 = vrot.lane.b32.xlu1 %v4694_v53, %s3656_s27  ;;  %v4796_v61 = vpop.permute.xlu1 %993 }
 0x343   : > { %2274 = vrot.lane.b32.xlu0 %v4680_v51, %s3656_s27 }
 0x346   : > { %3539 = vrot.lane.b32.xlu1 %v3518_v58, %s3656_s27  ;;  %v1424_v58 = vpop.permute.xlu1 %1423 }
 0x347   : > { %2270 = vrot.lane.b32.xlu0 %v4714_v57, %s3656_s27 }
 0x348   : > { %v1027_v14 = vpop.permute.xlu0 %1026 }
 0x349   : > { %v1033_v44 = vsel %vm1030_vm11, %v1019_v55, %v1027_v14 }
 0x34a   : > { %2669 = vrot.lane.b32.xlu1 %v4725_v5, %s3656_s27  ;;  %v1576_v5 = vld [vmem:[%s6054_s4 + $0x18] sm:$0xff] }
 0x34b   : > { %3544 = vrot.lane.b32.xlu0 %v3523_v4, %s3656_s27  ;;  %v1575_v4 = vld [vmem:[%s6054_s4 + $0x10] sm:$0xff] }
 0x34c   : > { %v1432_v30 = vpop.permute.xlu0 %1431 }
 0x34e   : > { %2268 = vrot.lane.b32.xlu1 %v4742_v3, %s3656_s27  ;;  %v2846_v3 = vld [vmem:[%s6058_s8 + $0x18] sm:$0xff] }
 0x34f   : > { %2671 = vrot.lane.b32.xlu0 %v4767_v23, %s3656_s27 }
 0x350   : > { %v4814_v12 = vpop.permute.xlu0 %1001 }
 0x352   : > { %2675 = vrot.lane.b32.xlu1 %v4735_v60, %s3656_s27  ;;  %v4812_v60 = vpop.permute.xlu1 %1399 }
 0x353   : > { %2667 = vrot.lane.b32.xlu0 %v4746_v43, %s3656_s27 }
 0x354   : > { %v4825_v23 = vpop.permute.xlu0 %1407 }
 0x356   : > { %2673 = vrot.lane.b32.xlu1 %v4738_v15, %s3656_s27  ;;  %v1574_v15 = vld [vmem:[%s6054_s4 + $0x8] sm:$0xff]  ;;  %v1021_v43 = vpop.permute.xlu1 %1020 }
 0x357   : > { %2665 = vrot.lane.b32.xlu0 %v4758_v2, %s3656_s27  ;;  %v2155_v2 = vld [vmem:[%s6056_s6 + $0x18] sm:$0xff]  ;;  %s3350_s27 = smul.u32 768, %s3740_s21  ;;  %s3577_s21 = scalar_lea.vmem %s6001_s14, 768 }
 0x358   : > { %p3578_p11 = scmp.ne.s32.totalorder %s6001_s14, %s3577_s21  ;;  %p3585_p5 = scmp.lt.s32.totalorder %s3583_s12, %s3577_s21 }
 0x359   : > { %s6006_s24 = scalar_lea.hbm %s6061_s11, %s3350_s27 }
 0x35a   : > { %1589 = vperm.xlu1 %3412, %v1575_v4   ;;  %v2153_v4 = vld [vmem:[%s6056_s6 + $0x8] sm:$0xff]  ;;  %v4833_v57 = vpop.permute.xlu1 %995  ;;  %p3579_p13 = pnand %p3578_p11, %p6264_p12  ;;  %p3586_p8 = por %p3585_p5, %p3584_p3 }
 0x35b   : > { %1594 = vperm.xlu0 %3411, %v1576_v5   ;;  %v2154_v5 = vld [vmem:[%s6056_s6 + $0x10] sm:$0xff] }
 0x35c   : > { %p3580_p1 = pneg %p3579_p13 }
 0x35e   : > { %1584 = vperm.xlu1 %3412, %v1574_v15   ;;  %p3587_p10 = pnand %p3586_p8, %p3580_p1 }
 0x35f   : > { %2173 = vperm.xlu0 %3411, %v2155_v2   ;;  %v1573_v2 = vld [vmem:[%s6054_s4] sm:$0xff] }
 0x362   : > { %2864 = vperm.xlu1 %3412, %v2846_v3   ;;  %v1037_v3 = vsel %vm1030_vm11, %v1027_v14, %v1019_v55 }
 0x363   : > { %2168 = vperm.xlu0 %3411, %v2154_v5   ;;  %v2152_v5 = vld [vmem:[%s6056_s6] sm:$0xff] }
 0x364   : > { %v1029_v15 = vpop.permute.xlu0 %1028 }
 0x365   : > { %v1034_v53 = vsel %vm1030_vm11, %v1021_v43, %v1029_v15  ;;  %v1038_v51 = vsel %vm1030_vm11, %v1029_v15, %v1021_v43  ;;  %v1032_v15 = vsel %vm1030_vm11, %v4732_v52, %v4752_v0 }
 0x366   : > { %2163 = vperm.xlu1 %3412, %v2153_v4   ;;  %3162 = vmatprep.subr.msk.mxu0 %vm923_vm10, %v1038_v51  ;;  %v2845_v51 = vld [vmem:[%s6058_s8 + $0x10] sm:$0xff] }
 0x367   : > { %1579 = vperm.xlu0 %3411, %v1573_v2   ;;  %3163 = vmatpush1.msk.msra.mxu0 %vm922_vm12, %v1034_v53  ;;  %v1036_v53 = vsel %vm1030_vm11, %v4752_v0, %v4732_v52  ;;  %v1441_v2 = vsel %vm1030_vm11, %v1432_v30, %v1424_v58  ;;  %v2843_v52 = vld [vmem:[%s6058_s8] sm:$0xff]  ;;  %v1031_v0 = vsel %vm1030_vm11, %v4538_v6, %v4541_v34 }
 0x368   : > { %3164 = vmatprep.subr.msk.mxu0 %vm923_vm10, %v1037_v3  ;;  %v1426_v43 = vpop.permute.xlu1 %1425 }
 0x369   : > { %v1434_v4 = vpop.permute.xlu0 %1433  ;;  %3165 = vmatpush1.msk.msra.mxu0 %vm922_vm12, %v1033_v44  ;;  %v1035_v44 = vsel %vm1030_vm11, %v4541_v34, %v4538_v6  ;;  %v1440_v6 = vsel %vm1030_vm11, %v4769_v62, %v4774_v31  ;;  %v1436_v34 = vsel %vm1030_vm11, %v4774_v31, %v4769_v62  ;;  %v2895_v62 = vld [vmem:[%s6060_s10 + $0x8] sm:$0xff]  ;;  %v1435_v31 = vsel %vm1030_vm11, %v4600_v29, %v4569_v47 }
 0x36a   : > { %v1438_v55 = vsel %vm1030_vm11, %v1426_v43, %v1434_v4  ;;  %v1442_v14 = vsel %vm1030_vm11, %v1434_v4, %v1426_v43  ;;  %2158 = vperm.xlu1 %3412, %v2152_v5   ;;  %3166 = vmatprep.subr.msk.mxu0 %vm923_vm10, %v1036_v53  ;;  %v1437_v5 = vsel %vm1030_vm11, %v1424_v58, %v1432_v30 }
 0x36b   : > { %2859 = vperm.xlu0 %3411, %v2845_v51   ;;  %3186 = vmatprep.subr.msk.mxu1 %vm923_vm10, %v1442_v14  ;;  %v2844_v51 = vld [vmem:[%s6058_s8 + $0x8] sm:$0xff]  ;;  %v1439_v58 = vsel %vm1030_vm11, %v4569_v47, %v4600_v29  ;;  %v2896_v47 = vld [vmem:[%s6060_s10 + $0x10] sm:$0xff]  ;;  %vm2201_vm11 = vcmp.ge.s32.totalorder %v3849_v18, 12 }
 0x36c   : > { %3167 = vmatpush1.msk.msra.mxu0 %vm922_vm12, %v1032_v15  ;;  %3187 = vmatpush1.msk.msra.mxu1 %vm922_vm12, %v1438_v55  ;;  %v4886_v3 = vpop.permute.xlu1 %2366  ;;  %v1055_v55 = vld [vmem:[%s6053_s3] sm:$0xff]  ;;  %v6193_v15 = vld [vmem:[#allocation43_spill] sm:$0xff]  ;;  %v3319_v18 = vld [vmem:[%s6057_s7 + $0x48] sm:$0xff] }
 0x36d   : > { %3168 = vmatprep.subr.msk.mxu0 %vm923_vm10, %v1035_v44  ;;  %3188 = vmatprep.subr.msk.mxu1 %vm923_vm10, %v1441_v2  ;;  %v4901_v43 = vpop.permute.xlu0 %1998 }
 0x36e   : > { %3169 = vmatpush1.msk.msra.mxu0 %vm922_vm12, %v1031_v0  ;;  %3189 = vmatpush1.msk.msra.mxu1 %vm922_vm12, %v1437_v5  ;;  %v6195_v0 = vld [vmem:[#allocation32_spill] sm:$0xff]  ;;  %v6196_v5 = vld [vmem:[#allocation35_spill] sm:$0xff] }
 0x36f   : > { %2849 = vperm.xlu1 %3412, %v2843_v52   ;;  %1258 = vmatprep.subr.mxu0 %v4420_v16 }
 0x370   : > { %2854 = vperm.xlu0 %3411, %v2844_v51   ;;  %3190 = vmatprep.subr.msk.mxu1 %vm923_vm10, %v1440_v6  ;;  %v4921_v30 = vpop.permute.xlu1 %2356  ;;  %v1748_v51 = vsel %vm1674_vm13, %v6196_v5, %v6195_v0 }
 0x371   : > { %1259 = vmatpush1.msra.mxu0 %v4401_v39  ;;  %3191 = vmatpush1.msk.msra.mxu1 %vm922_vm12, %v1436_v34  ;;  %v4930_v16 = vpop.permute.xlu0 %2364  ;;  %v2894_v39 = vld [vmem:[%s6060_s10] sm:$0xff]  ;;  %v1744_v34 = vsel %vm1674_vm13, %v6195_v0, %v6196_v5  ;;  %v6205_v5 = vld [vmem:[#allocation41_spill] sm:$0xff] }
 0x372   : > { %1260 = vmatprep.subr.mxu0 %v4383_v37  ;;  %3192 = vmatprep.subr.msk.mxu1 %vm923_vm10, %v1439_v58  ;;  %v6204_v0 = vld [vmem:[#allocation44_spill] sm:$0xff]  ;;  %vm2276_vm10 = vcmp.lt.s32.totalorder %v3838_v11, 12  ;;  %v2328_v11 = vld [vmem:[%s6057_s7 + $0x10] sm:$0xff] }
 0x373   : > { %1261 = vmatpush1.msra.mxu0 %v4351_v35  ;;  %3193 = vmatpush1.msk.msra.mxu1 %vm922_vm12, %v1435_v31  ;;  %v6198_v31 = vld [vmem:[#allocation22_spill] sm:$0xff]  ;;  %vm2200_vm12 = vcmp.ge.s32.totalorder %v3856_v21, 12  ;;  %v2329_v21 = vld [vmem:[%s6057_s7 + $0x18] sm:$0xff] }
 0x374   : > { %2904 = vperm.xlu1 %3412, %v2895_v62   ;;  %1262 = vmatprep.subr.mxu0 %v4321_v36  ;;  %v4949_v53 = vpop.permute.xlu1 %2354 }
 0x375   : > { %2899 = vperm.xlu0 %3411, %v2894_v39   ;;  %1492 = vmatprep.subr.mxu1 %v4436_v42  ;;  %v1004_v37 = vpop.permute.xlu0 %1003  ;;  %v6199_v39 = vld [vmem:[#allocation25_spill] sm:$0xff] }
 0x376   : > { %1263 = vmatpush1.msra.mxu0 %v4301_v13  ;;  %1493 = vmatpush1.msra.mxu1 %v4433_v33  ;;  %v1009_v35 = vsel %vm1005_vm1, %v4833_v57, %v1004_v37  ;;  %v1013_v36 = vsel %vm1005_vm1, %v1004_v37, %v4833_v57  ;;  %v6190_v33 = vld [vmem:[#allocation28_spill] sm:$0xff]  ;;  %v1011_v57 = vsel %vm1005_vm1, %v4780_v9, %v4760_v27 }
 0x377   : > { %1264 = vmatprep.subr.mxu0 %v4259_v40  ;;  %1494 = vmatprep.subr.mxu1 %v4393_v28  ;;  %v1008_v40 = vsel %vm1005_vm1, %v4796_v61, %v4814_v12  ;;  %v1012_v28 = vsel %vm1005_vm1, %v4814_v12, %v4796_v61  ;;  %v6191_v61 = vld [vmem:[#allocation29_spill] sm:$0xff]  ;;  %v1747_v37 = vsel %vm1674_vm13, %v6199_v39, %v6198_v31 }
 0x378   : > { %1265 = vmatpush1.msra.mxu0 %v4262_v41  ;;  %1495 = vmatpush1.msra.mxu1 %v4368_v48  ;;  %v1402_v13 = vpop.permute.xlu1 %1401  ;;  %v6189_v41 = vld [vmem:[#allocation34_spill] sm:$0xff] }
 0x379   : > { %2909 = vperm.xlu0 %3411, %v2896_v47   ;;  %3170 = vmatprep.subr.msk.mxu0 %vm921_vm0, %v1009_v35  ;;  %v1410_v42 = vpop.permute.xlu0 %1409  ;;  %v6200_v47 = vld [vmem:[#allocation40_spill] sm:$0xff] }
 0x37a   : > { %1496 = vmatprep.subr.mxu1 %v4333_v63  ;;  %3171 = vmatpush1.msk.msra.mxu0 %vm920_vm2, %v1013_v36  ;;  %v1414_v48 = vsel %vm1005_vm1, %v1402_v13, %v1410_v42  ;;  %v1007_v63 = vsel %vm1005_vm1, %v4760_v27, %v4780_v9  ;;  %v1418_v29 = vsel %vm1005_vm1, %v1410_v42, %v1402_v13  ;;  %v1057_v13 = vld [vmem:[%s6053_s3 + $0x10] sm:$0xff] }
 0x37b   : > { %1497 = vmatpush1.msra.mxu1 %v6189_v41  ;;  %3172 = vmatprep.subr.msk.mxu0 %vm921_vm0, %v1008_v40  ;;  %v1413_v27 = vsel %vm1005_vm1, %v4812_v60, %v4825_v23  ;;  %v1417_v9 = vsel %vm1005_vm1, %v4825_v23, %v4812_v60  ;;  %v6192_v23 = vld [vmem:[#allocation38_spill] sm:$0xff]  ;;  %v1743_v40 = vsel %vm1674_vm13, %v6198_v31, %v6199_v39  ;;  %v6201_v41 = vld [vmem:[#allocation17_spill] sm:$0xff] }
 0x37c   : > { %1498 = vmatprep.subr.mxu1 %v6190_v33  ;;  %3173 = vmatpush1.msk.msra.mxu0 %vm920_vm2, %v1012_v28  ;;  %v4994_v12 = vpop.permute.xlu1 %1980  ;;  %v1749_v44 = vsel %vm1674_vm13, %v6193_v15, %v6192_v23  ;;  %v1745_v52 = vsel %vm1674_vm13, %v6192_v23, %v6193_v15  ;;  %v3183_v28 = vld [vmem:[%s6053_s3 + $0x48] sm:$0xff]  ;;  %v3184_v23 = vld [vmem:[%s6053_s3 + $0x50] sm:$0xff] }
 0x37d   : > { %1499 = vmatpush1.msra.mxu1 %v6191_v61  ;;  %3174 = vmatprep.subr.msk.mxu0 %vm921_vm0, %v1007_v63  ;;  %v5003_v4 = vpop.permute.xlu0 %2362 }
 0x37e   : > { %3194 = vmatprep.subr.msk.mxu1 %vm921_vm0, %v1414_v48  ;;  %3175 = vmatpush1.msk.msra.mxu0 %vm920_vm2, %v1011_v57  ;;  %v3481_v48 = vunpack.i.l.bf16 %v6201_v41  ;;  %v6202_v57 = vld [vmem:[#allocation30_spill] sm:$0xff] }
 0x37f   : > { %3195 = vmatpush1.msk.msra.mxu1 %vm920_vm2, %v1418_v29  ;;  %3176 = vmatprep.subr.msk.mxu0 %vm921_vm0, %v4606_v22  ;;  %v1412_v22 = vsel %vm1005_vm1, %v4782_v59, %v4787_v54  ;;  %v3482_v29 = vunpack.i.h.bf16 %v6201_v41 }
 0x380   : > { %3196 = vmatprep.subr.msk.mxu1 %vm921_vm0, %v1413_v27  ;;  %3177 = vmatpush1.msk.msra.mxu0 %vm920_vm2, %v4610_v46  ;;  %v5032_v14 = vpop.permute.xlu1 %1978  ;;  %v1416_v46 = vsel %vm1005_vm1, %v4787_v54, %v4782_v59  ;;  %v3182_v59 = vld [vmem:[%s6053_s3 + $0x40] sm:$0xff]  ;;  %v1680_v61 = vsel %vm1674_vm13, %v6202_v57, %v3481_v48  ;;  %v1676_v27 = vsel %vm1674_vm13, %v3481_v48, %v6202_v57 }
 0x381   : > { %3197 = vmatpush1.msk.msra.mxu1 %vm920_vm2, %v1417_v9  ;;  %3178 = vmatmul.mubr.msk.f32.vlgmr.msra.gmra.mxu0 %vm1128_vm3, %v1055_v55  ;;  %v5041_v60 = vpop.permute.xlu0 %3504  ;;  %v6194_v54 = vld [vmem:[#allocation16_spill] sm:$0xff]  ;;  %v6203_v9 = vld [vmem:[#allocation23_spill] sm:$0xff] }
 0x382   : > { %3198 = vmatprep.subr.msk.mxu1 %vm921_vm0, %v1412_v22  ;;  %3210 = vmatprep.subr.msk.mxu0 %vm1624_vm4, %v4500_v26  ;;  %v3476_v2 = vunpack.i.l.bf16 %v6194_v54  ;;  %v3477_v6 = vunpack.i.h.bf16 %v6194_v54  ;;  %v1679_v22 = vsel %vm1674_vm13, %v6203_v9, %v3482_v29  ;;  %v3185_v54 = vld [vmem:[%s6053_s3 + $0x58] sm:$0xff] }
 0x383   : > { %3199 = vmatpush1.msk.msra.mxu1 %vm920_vm2, %v1416_v46  ;;  %3211 = vmatpush1.msk.msra.mxu0 %vm1623_vm5, %v4496_v49  ;;  %v1056_v49 = vld [vmem:[%s6053_s3 + $0x8] sm:$0xff]  ;;  %v1058_v46 = vld [vmem:[%s6053_s3 + $0x18] sm:$0xff] }
 0x384   : > { %3200 = vmatprep.subr.msk.mxu1 %vm921_vm0, %v4625_v50  ;;  %3212 = vmatprep.subr.msk.mxu0 %vm1624_vm4, %v1749_v44  ;;  %v5072_v26 = vpop.permute.xlu1 %2344  ;;  %v1681_v36 = vsel %vm1674_vm13, %v6200_v47, %v3477_v6  ;;  %v1677_v63 = vsel %vm1674_vm13, %v3477_v6, %v6200_v47  ;;  %v1675_v44 = vsel %vm1674_vm13, %v3482_v29, %v6203_v9 }
 0x385   : > { %1312 = vmatprep.mubr.f32.mxu0 %v6172_v7  ;;  %3201 = vmatpush1.msk.msra.mxu1 %vm920_vm2, %v4629_v1  ;;  %v5083_v50 = vpop.permute.xlu0 %2336  ;;  %v6197_v1 = vld [vmem:[#allocation46_spill] sm:$0xff] }
 0x386   : > { %3213 = vmatpush1.msk.msra.mxu0 %vm1623_vm5, %v1745_v52  ;;  %3202 = vmatmul.mubr.msk.f32.vlgmr.msra.gmra.mxu1 %vm1128_vm3, %v3182_v59  ;;  %v1682_v58 = vsel %vm1674_vm13, %v6197_v1, %v3476_v2  ;;  %v1678_v62 = vsel %vm1674_vm13, %v3476_v2, %v6197_v1 }
 0x387   : > { %3179 = vmatmul.mubr.msk.f32.gmra.mxu0 %vm1128_vm3, %v1056_v49  ;;  %3214 = vmatprep.subr.msk.mxu0 %vm1624_vm4, %v1748_v51  ;;  %v1721_v51 = vsel %vm1649_vm15, %v6205_v5, %v6204_v0 }
 0x388   : > { %3230 = vmatprep.subr.msk.mxu1 %vm1624_vm4, %v1682_v58  ;;  %3215 = vmatpush1.msk.msra.mxu0 %vm1623_vm5, %v1744_v34  ;;  %v5114_v35 = vpop.permute.xlu1 %3509  ;;  %v6206_v34 = vld [vmem:[#allocation18_spill] sm:$0xff]  ;;  %v6208_v58 = vld [vmem:[#allocation33_spill] sm:$0xff] }
 0x389   : > { %3231 = vmatpush1.msk.msra.mxu1 %vm1623_vm5, %v1678_v62  ;;  %3216 = vmatprep.subr.msk.mxu0 %vm1624_vm4, %v1747_v37  ;;  %v5126_v42 = vpop.permute.xlu0 %1976  ;;  %v3486_v1 = vunpack.i.l.bf16 %v6206_v34  ;;  %v3487_v31 = vunpack.i.h.bf16 %v6206_v34  ;;  %v6209_v37 = vld [vmem:[#allocation47_spill] sm:$0xff] }
 0x38a   : > { %3232 = vmatprep.subr.msk.mxu1 %vm1624_vm4, %v1681_v36  ;;  %1318 = vmatprep.mubr.f32.mxu0 %v6172_v7 }
 0x38b   : > { %1546 = vmatprep.mubr.f32.mxu1 %v6172_v7  ;;  %3217 = vmatpush1.msk.msra.mxu0 %vm1623_vm5, %v1743_v40  ;;  %v1653_v47 = vsel %vm1649_vm15, %v3486_v1, %v6209_v37  ;;  %v6210_v40 = vld [vmem:[#allocation27_spill] sm:$0xff] }
 0x38c   : > { %3233 = vmatpush1.msk.msra.mxu1 %vm1623_vm5, %v1677_v63  ;;  %3180 = vmatmul.mubr.msk.f32.gmra.mxu0 %vm1128_vm3, %v1057_v13  ;;  %v5148_v33 = vpop.permute.xlu1 %2342  ;;  %v1657_v13 = vsel %vm1649_vm15, %v6209_v37, %v3486_v1  ;;  %v6212_v63 = vld [vmem:[#allocation19_spill] sm:$0xff]  ;;  %v1699_v37 = vld [vmem:[%s6055_s5] sm:$0xff] }
 0x38d   : > { %3203 = vmatmul.mubr.msk.f32.gmra.mxu1 %vm1128_vm3, %v3183_v28  ;;  %1800 = vmatprep.subr.mxu0 %v4215_v25  ;;  %v5156_v55 = vpop.permute.xlu0 %2334  ;;  %v6211_v28 = vld [vmem:[#allocation24_spill] sm:$0xff]  ;;  %v3491_v29 = vunpack.i.l.bf16 %v6212_v63 }
 0x38e   : > { %3234 = vmatprep.subr.msk.mxu1 %vm1624_vm4, %v1680_v61  ;;  %1801 = vmatpush1.msra.mxu0 %v4183_v8  ;;  %v1719_v41 = vsel %vm1649_vm15, %v6211_v28, %v6210_v40  ;;  %v1723_v57 = vsel %vm1649_vm15, %v6210_v40, %v6211_v28  ;;  %v6213_v61 = vld [vmem:[#allocation42_spill] sm:$0xff]  ;;  %v6220_v40 = vld [vmem:[#allocation37_spill] sm:$0xff] }
 0x38f   : > { %3235 = vmatpush1.msk.msra.mxu1 %vm1623_vm5, %v1676_v27  ;;  %1802 = vmatprep.subr.mxu0 %v4143_v56  ;;  %v1652_v27 = vsel %vm1649_vm15, %v3487_v31, %v6213_v61  ;;  %v1656_v9 = vsel %vm1649_vm15, %v6213_v61, %v3487_v31  ;;  %v6219_v31 = vld [vmem:[#allocation45_spill] sm:$0xff] }
 0x390   : > { %3236 = vmatprep.subr.msk.mxu1 %vm1624_vm4, %v1679_v22  ;;  %1324 = vmatprep.mubr.f32.mxu0 %v6172_v7  ;;  %v5179_v15 = vpop.permute.xlu1 %2332  ;;  %v3206_v22 = vld [vmem:[%s6055_s5 + $0x20] sm:$0xff] }
 0x391   : > { %1552 = vmatprep.mubr.f32.mxu1 %v6172_v7  ;;  %1803 = vmatpush1.msra.mxu0 %v4114_v45  ;;  %v5186_v59 = vpop.permute.xlu0 %1974 }
 0x392   : > { %3237 = vmatpush1.msk.msra.mxu1 %vm1623_vm5, %v1675_v44  ;;  %3181 = vmatmul.mubr.msk.f32.gmra.mxu0 %vm1128_vm3, %v1058_v46  ;;  %v3492_v46 = vunpack.i.h.bf16 %v6212_v63 }
 0x393   : > { %3204 = vmatmul.mubr.msk.f32.gmra.mxu1 %vm1128_vm3, %v3184_v23  ;;  %1804 = vmatprep.subr.mxu0 %v4094_v38  ;;  %v6214_v23 = vld [vmem:[#allocation31_spill] sm:$0xff] }
 0x394   : > { %1901 = vmatprep.subr.mxu1 %v4183_v8  ;;  %1805 = vmatpush1.msra.mxu0 %v4072_v32  ;;  %v5195_v49 = vpop.permute.xlu1 %3514  ;;  %v1651_v44 = vsel %vm1649_vm15, %v3491_v29, %v6214_v23 }
 0x395   : > { %1902 = vmatpush1.msra.mxu1 %v6172_v7  ;;  %1806 = vmatprep.subr.mxu0 %v4054_v24  ;;  %v5203_v2 = vpop.permute.xlu0 %2340 }
 0x396   : > { %1903 = vmatprep.subr.mxu1 %v4114_v45  ;;  %1558 = vmatprep.mubr.f32.mxu1 %v6172_v7 }
 0x397   : > { %1807 = vmatpush1.msra.mxu0 %v4040_v17  ;;  %1904 = vmatpush1.msra.mxu1 %v6172_v7 }
 0x398   : > { %3205 = vmatmul.mubr.msk.f32.gmra.mxu1 %vm1128_vm3, %v3185_v54  ;;  %3218 = vmatprep.subr.msk.mxu0 %vm1622_vm6, %v4523_v10  ;;  %v5214_v52 = vpop.permute.xlu1 %2330  ;;  %v1725_v10 = vsel %vm1649_vm15, %v6204_v0, %v6205_v5  ;;  %v3497_v54 = vunpack.i.h.bf16 %v4204_v19  ;;  %v1655_v0 = vsel %vm1649_vm15, %v6214_v23, %v3491_v29  ;;  %v6215_v5 = vld [vmem:[#allocation49_spill] sm:$0xff]  ;;  %v6216_v19 = vld [vmem:[#allocation26_spill] sm:$0xff]  ;;  %v6221_v29 = vld [vmem:[#allocation51_spill] sm:$0xff] }
 0x399   : > { %1905 = vmatprep.subr.mxu1 %v4072_v32  ;;  %3219 = vmatpush1.msk.msra.mxu0 %vm1621_vm7, %v4527_v20  ;;  %v5224_v6 = vpop.permute.xlu0 %2299  ;;  %v6207_v20 = vld [vmem:[#allocation36_spill] sm:$0xff]  ;;  %v1650_v1 = vsel %vm1649_vm15, %v3492_v46, %v6216_v19 }
 0x39a   : > { %1906 = vmatpush1.msra.mxu1 %v6172_v7  ;;  %3220 = vmatprep.subr.msk.mxu0 %vm1622_vm6, %v1721_v51  ;;  %v1720_v62 = vsel %vm1649_vm15, %v6208_v58, %v6207_v20  ;;  %v1724_v39 = vsel %vm1649_vm15, %v6207_v20, %v6208_v58  ;;  %v1654_v58 = vsel %vm1649_vm15, %v6216_v19, %v3492_v46  ;;  %v6223_v46 = vld [vmem:[#allocation50_spill] sm:$0xff]  ;;  %v3507_v19 = vunpack.i.h.bf16 %v5041_v60 }
 0x39b   : > { %1907 = vmatprep.subr.mxu1 %v4040_v17  ;;  %3221 = vmatpush1.msk.msra.mxu0 %vm1621_vm7, %v1725_v10  ;;  %v6217_v10 = vld [vmem:[#allocation20_spill] sm:$0xff] }
 0x39c   : > { %1908 = vmatpush1.msra.mxu1 %v6172_v7  ;;  %3222 = vmatprep.subr.msk.mxu0 %vm1622_vm6, %v1720_v62  ;;  %v5252_v36 = vpop.permute.xlu1 %2297  ;;  %v3501_v20 = vunpack.i.l.bf16 %v6217_v10  ;;  %v6218_v62 = vld [vmem:[#allocation48_spill] sm:$0xff] }
 0x39d   : > { %3238 = vmatprep.subr.msk.mxu1 %vm1622_vm6, %v1653_v47  ;;  %3223 = vmatpush1.msk.msra.mxu0 %vm1621_vm7, %v1724_v39  ;;  %v5265_v48 = vpop.permute.xlu0 %2338  ;;  %v2020_v39 = vsel %vm1674_vm13, %v3497_v54, %v6219_v31  ;;  %v2016_v47 = vsel %vm1674_vm13, %v6219_v31, %v3497_v54  ;;  %v3207_v54 = vld [vmem:[%s6055_s5 + $0x28] sm:$0xff]  ;;  %v1992_v31 = vsel %vm1649_vm15, %v5032_v14, %v3507_v19 }
 0x39e   : > { %3239 = vmatpush1.msk.msra.mxu1 %vm1621_vm7, %v1657_v13  ;;  %3224 = vmatprep.subr.msk.mxu0 %vm1622_vm6, %v1719_v41  ;;  %v3502_v13 = vunpack.i.h.bf16 %v6217_v10  ;;  %v2019_v28 = vsel %vm1674_vm13, %v3501_v20, %v6220_v40  ;;  %v2015_v41 = vsel %vm1674_vm13, %v6220_v40, %v3501_v20  ;;  %v3512_v40 = vunpack.i.h.bf16 %v5114_v35 }
 0x39f   : > { %3240 = vmatprep.subr.msk.mxu1 %vm1622_vm6, %v1652_v27  ;;  %3225 = vmatpush1.msk.msra.mxu0 %vm1621_vm7, %v1723_v57  ;;  %v6222_v27 = vld [vmem:[#allocation39_spill] sm:$0xff] }
 0x3a0   : > { %3241 = vmatpush1.msk.msra.mxu1 %vm1621_vm7, %v1656_v9  ;;  %1848 = vmatprep.mubr.f32.mxu0 %v6172_v7  ;;  %v5305_v51 = vpop.permute.xlu1 %3519  ;;  %v2018_v63 = vsel %vm1674_vm13, %v3502_v13, %v4901_v43  ;;  %v2376_v9 = vsel %vm2301_vm14, %v4886_v3, %v6222_v27  ;;  %v2372_v23 = vsel %vm2301_vm14, %v6222_v27, %v4886_v3  ;;  %v3516_v27 = vunpack.i.l.bf16 %v5195_v49 }
 0x3a1   : > { %3242 = vmatprep.subr.msk.mxu1 %vm1622_vm6, %v1651_v44  ;;  %3254 = vmatprep.subr.msk.mxu0 %vm1624_vm4, %v6215_v5  ;;  %v5307_v34 = vpop.permute.xlu0 %2295  ;;  %v2371_v3 = vsel %vm2301_vm14, %v4921_v30, %v4930_v16  ;;  %v2374_v44 = vsel %vm2301_vm14, %v5003_v4, %v4949_v53  ;;  %v3208_v5 = vld [vmem:[%s6055_s5 + $0x30] sm:$0xff] }
 0x3a2   : > { %3226 = vmatmul.mubr.msk.f32.vlgmr.msra.gmra.mxu0 %vm1128_vm3, %v3206_v22  ;;  %3243 = vmatpush1.msk.msra.mxu1 %vm1621_vm7, %v1655_v0  ;;  %v2014_v22 = vsel %vm1674_vm13, %v4901_v43, %v3502_v13  ;;  %v2375_v43 = vsel %vm2301_vm14, %v4930_v16, %v4921_v30  ;;  %v2370_v30 = vsel %vm2301_vm14, %v4949_v53, %v5003_v4  ;;  %v3506_v53 = vunpack.i.l.bf16 %v5041_v60  ;;  %v1700_v4 = vld [vmem:[%s6055_s5 + $0x8] sm:$0xff] }
 0x3a3   : > { %3255 = vmatpush1.msk.msra.mxu0 %vm1623_vm5, %v6218_v62  ;;  %3244 = vmatprep.subr.msk.mxu1 %vm1622_vm6, %v1650_v1  ;;  %v1701_v62 = vld [vmem:[%s6055_s5 + $0x10] sm:$0xff]  ;;  %vm2912_vm13 = vcmask 261120  }
 0x3a4   : > { %3256 = vmatprep.subr.msk.mxu0 %vm1624_vm4, %v2020_v39  ;;  %3245 = vmatpush1.msk.msra.mxu1 %vm1621_vm7, %v1654_v58  ;;  %v5360_v57 = vpop.permute.xlu1 %2693  ;;  %v1993_v20 = vsel %vm1649_vm15, %v4994_v12, %v3506_v53  ;;  %v1997_v60 = vsel %vm1649_vm15, %v3506_v53, %v4994_v12  ;;  %v3511_v58 = vunpack.i.l.bf16 %v5114_v35  ;;  %v3209_v12 = vld [vmem:[%s6055_s5 + $0x38] sm:$0xff]  ;;  %v1996_v39 = vsel %vm1649_vm15, %v3507_v19, %v5032_v14 }
 0x3a5   : > { %1949 = vmatprep.mubr.f32.mxu1 %v6172_v7  ;;  %3257 = vmatpush1.msk.msra.mxu0 %vm1623_vm5, %v2016_v47  ;;  %v5362_v61 = vpop.permute.xlu0 %3524  ;;  %v2349_v14 = vsel %vm2276_vm10, %v5083_v50, %v5072_v26  ;;  %v1702_v35 = vld [vmem:[%s6055_s5 + $0x18] sm:$0xff] }
 0x3a6   : > { %3246 = vmatmul.mubr.msk.f32.vlgmr.msra.gmra.mxu1 %vm1128_vm3, %v1699_v37  ;;  %3258 = vmatprep.subr.msk.mxu0 %vm1624_vm4, %v2019_v28  ;;  %v1991_v13 = vsel %vm1649_vm15, %v5126_v42, %v3511_v58  ;;  %v1995_v28 = vsel %vm1649_vm15, %v3511_v58, %v5126_v42  ;;  %v2348_v42 = vsel %vm2276_vm10, %v5156_v55, %v5148_v33  ;;  %v3527_v53 = vunpack.i.h.bf16 %v5362_v61 }
 0x3a7   : > { %3278 = vmatprep.subr.msk.mxu1 %vm2203_vm8, %v6221_v29  ;;  %3259 = vmatpush1.msk.msra.mxu0 %vm1623_vm5, %v2015_v41  ;;  %v2353_v41 = vsel %vm2276_vm10, %v5072_v26, %v5083_v50  ;;  %v1994_v26 = vsel %vm1649_vm15, %v3512_v40, %v5186_v59  ;;  %v3250_v50 = vld [vmem:[%s6055_s5 + $0x40] sm:$0xff]  ;;  %v2352_v29 = vsel %vm2276_vm10, %v5148_v33, %v5156_v55  ;;  %v3517_v33 = vunpack.i.h.bf16 %v5195_v49 }
 0x3a8   : > { %3279 = vmatpush1.msk.msra.mxu1 %vm2202_vm9, %v6223_v46  ;;  %3260 = vmatprep.subr.msk.mxu0 %vm1624_vm4, %v2018_v63  ;;  %v5415_v16 = vpop.permute.xlu1 %2293  ;;  %v1990_v63 = vsel %vm1649_vm15, %v5186_v59, %v3512_v40  ;;  %v2351_v55 = vsel %vm2276_vm10, %v5203_v2, %v5179_v15  ;;  %v2309_v46 = vsel %vm2301_vm14, %v5224_v6, %v3516_v27 }
 0x3a9   : > { %3280 = vmatprep.subr.msk.mxu1 %vm2203_vm8, %v2376_v9  ;;  %3261 = vmatpush1.msk.msra.mxu0 %vm1623_vm5, %v2014_v22  ;;  %v5417_v0 = vpop.permute.xlu0 %2691  ;;  %v2347_v22 = vsel %vm2276_vm10, %v5179_v15, %v5203_v2  ;;  %v2346_v49 = vsel %vm2276_vm10, %v5214_v52, %v5265_v48  ;;  %v3522_v15 = vunpack.i.h.bf16 %v5305_v51  ;;  %v3521_v2 = vunpack.i.l.bf16 %v5305_v51 }
 0x3aa   : > { %3281 = vmatpush1.msk.msra.mxu1 %vm2202_vm9, %v2372_v23  ;;  %2071 = vmatprep.subr.mxu0 %v6172_v7  ;;  %v2305_v23 = vsel %vm2301_vm14, %v3516_v27, %v5224_v6  ;;  %v3251_v6 = vld [vmem:[%s6055_s5 + $0x48] sm:$0xff]  ;;  %v2304_v51 = vsel %vm2301_vm14, %v3517_v33, %v5252_v36  ;;  %v6233_v27 = vld [vmem:[#allocation58_spill] sm:$0xff] }
 0x3ab   : > { %3282 = vmatprep.subr.msk.mxu1 %vm2203_vm8, %v2375_v43  ;;  %2072 = vmatpush1.msra.mxu0 %v4215_v25  ;;  %v2308_v43 = vsel %vm2301_vm14, %v5252_v36, %v3517_v33 }
 0x3ac   : > { %3283 = vmatpush1.msk.msra.mxu1 %vm2202_vm9, %v2371_v3  ;;  %2073 = vmatprep.subr.mxu0 %v6172_v7  ;;  %v5440_v1 = vpop.permute.xlu1 %3529  ;;  %v2350_v3 = vsel %vm2276_vm10, %v5265_v48, %v5214_v52  ;;  %v3274_v52 = vld [vmem:[%s6057_s7 + $0x20] sm:$0xff] }
 0x3ad   : > { %3284 = vmatprep.subr.msk.mxu1 %vm2203_vm8, %v2374_v44  ;;  %1854 = vmatprep.mubr.f32.mxu0 %v6172_v7  ;;  %v5442_v10 = vpop.permute.xlu0 %2689  ;;  %v3531_v19 = vunpack.i.l.bf16 %v5440_v1  ;;  %v3532_v58 = vunpack.i.h.bf16 %v5440_v1  ;;  %v6224_v1 = vld [vmem:[#allocation54_spill] sm:$0xff] }
 0x3ae   : > { %2074 = vmatpush1.msra.mxu0 %v4143_v56  ;;  %3285 = vmatpush1.msk.msra.mxu1 %vm2202_vm9, %v2370_v30  ;;  %v2307_v30 = vsel %vm2301_vm14, %v5307_v34, %v3522_v15 }
 0x3af   : > { %3227 = vmatmul.mubr.msk.f32.gmra.mxu0 %vm1128_vm3, %v3207_v54  ;;  %2075 = vmatprep.subr.mxu0 %v6172_v7  ;;  %v3526_v54 = vunpack.i.l.bf16 %v5362_v61  ;;  %v2306_v61 = vsel %vm2301_vm14, %v5415_v16, %v3527_v53  ;;  %v2705_v40 = vsel %vm2301_vm14, %v5442_v10, %v3532_v58 }
 0x3b0   : > { %2427 = vmatprep.subr.mxu1 %v4215_v25  ;;  %2076 = vmatpush1.msra.mxu0 %v4094_v38  ;;  %v5480_v37 = vpop.permute.xlu1 %3534 }
 0x3b1   : > { %2428 = vmatpush1.msra.mxu1 %v4183_v8  ;;  %1955 = vmatprep.mubr.f32.mxu1 %v6172_v7  ;;  %v2696_v47 = vpop.permute.xlu0 %2695 }
 0x3b2   : > { %2077 = vmatprep.subr.mxu0 %v6172_v7  ;;  %2429 = vmatprep.subr.mxu1 %v4143_v56  ;;  %v2712_v44 = vsel %vm2301_vm14, %v3521_v2, %v2696_v47 }
 0x3b3   : > { %1860 = vmatprep.mubr.f32.mxu0 %v6172_v7  ;;  %3247 = vmatmul.mubr.msk.f32.gmra.mxu1 %vm1128_vm3, %v1700_v4  ;;  %v2708_v4 = vsel %vm2301_vm14, %v2696_v47, %v3521_v2  ;;  %v2709_v47 = vsel %vm2301_vm14, %v3532_v58, %v5442_v10  ;;  %v3536_v10 = vunpack.i.l.bf16 %v5480_v37  ;;  %v6236_v2 = vld [vmem:[#allocation62_spill] sm:$0xff]  ;;  %v3277_v58 = vld [vmem:[%s6057_s7 + $0x38] sm:$0xff] }
 0x3b4   : > { %2078 = vmatpush1.msra.mxu0 %v4054_v24  ;;  %2430 = vmatpush1.msra.mxu1 %v4114_v45  ;;  %v5539_v59 = vpop.permute.xlu1 %2272 }
 0x3b5   : > { %3228 = vmatmul.mubr.msk.f32.gmra.mxu0 %vm1128_vm3, %v3208_v5  ;;  %3262 = vmatprep.subr.msk.mxu0 %vm1622_vm6, %v1993_v20  ;;  %v5541_v9 = vpop.permute.xlu0 %2274  ;;  %v2303_v5 = vsel %vm2301_vm14, %v3522_v15, %v5307_v34  ;;  %v2711_v34 = vsel %vm2301_vm14, %v3526_v54, %v5360_v57  ;;  %v3252_v20 = vld [vmem:[%s6055_s5 + $0x50] sm:$0xff] }
 0x3b6   : > { %2431 = vmatprep.subr.mxu1 %v4094_v38  ;;  %3263 = vmatpush1.msk.msra.mxu0 %vm1621_vm7, %v1997_v60  ;;  %v2302_v60 = vsel %vm2301_vm14, %v3527_v53, %v5415_v16  ;;  %v2280_v33 = vsel %vm2276_vm10, %v3536_v10, %v5541_v9 }
 0x3b7   : > { %2432 = vmatpush1.msra.mxu1 %v4072_v32  ;;  %1961 = vmatprep.mubr.f32.mxu1 %v6172_v7 }
 0x3b8   : > { %2433 = vmatprep.subr.mxu1 %v4054_v24  ;;  %3264 = vmatprep.subr.msk.mxu0 %vm1622_vm6, %v1992_v31  ;;  %v5604_v36 = vpop.permute.xlu1 %3539 }
 0x3b9   : > { %1866 = vmatprep.mubr.f32.mxu0 %v6172_v7  ;;  %3248 = vmatmul.mubr.msk.f32.gmra.mxu1 %vm1128_vm3, %v1701_v62  ;;  %v5606_v48 = vpop.permute.xlu0 %2270  ;;  %v2707_v62 = vsel %vm2301_vm14, %v5360_v57, %v3526_v54  ;;  %v6225_v57 = vld [vmem:[#allocation52_spill] sm:$0xff]  ;;  %v3541_v15 = vunpack.i.l.bf16 %v5604_v36 }
 0x3ba   : > { %3265 = vmatpush1.msk.msra.mxu0 %vm1621_vm7, %v1996_v39  ;;  %2434 = vmatpush1.msra.mxu1 %v4040_v17  ;;  %v2706_v39 = vsel %vm2301_vm14, %v5417_v0, %v3531_v19 }
 0x3bb   : > { %3229 = vmatmul.mubr.msk.f32.gmra.mxu0 %vm1128_vm3, %v3209_v12  ;;  %3266 = vmatprep.subr.msk.mxu0 %vm1622_vm6, %v1991_v13  ;;  %v2710_v12 = vsel %vm2301_vm14, %v3531_v19, %v5417_v0  ;;  %v6226_v13 = vld [vmem:[#allocation57_spill] sm:$0xff] }
 0x3bc   : > { %3286 = vmatprep.subr.msk.mxu1 %vm2201_vm11, %v2349_v14  ;;  %3267 = vmatpush1.msk.msra.mxu0 %vm1621_vm7, %v1995_v28  ;;  %v5654_v31 = vpop.permute.xlu1 %2669  ;;  %v3253_v14 = vld [vmem:[%s6055_s5 + $0x58] sm:$0xff]  ;;  %v6227_v0 = vld [vmem:[#allocation53_spill] sm:$0xff]  ;;  %v6228_v28 = vld [vmem:[#allocation60_spill] sm:$0xff] }
 0x3bd   : > { %3287 = vmatpush1.msk.msra.mxu1 %vm2200_vm12, %v2353_v41  ;;  %1967 = vmatprep.mubr.f32.mxu1 %v6172_v7  ;;  %v5656_v16 = vpop.permute.xlu0 %3544 }
 0x3be   : > { %3288 = vmatprep.subr.msk.mxu1 %vm2201_vm11, %v2348_v42  ;;  %3268 = vmatprep.subr.msk.mxu0 %vm1622_vm6, %v1990_v63  ;;  %v6229_v42 = vld [vmem:[#allocation55_spill] sm:$0xff]  ;;  %v6230_v63 = vld [vmem:[#allocation56_spill] sm:$0xff] }
 0x3bf   : > { %3249 = vmatmul.mubr.msk.f32.gmra.mxu1 %vm1128_vm3, %v1702_v35  ;;  %3269 = vmatpush1.msk.msra.mxu0 %vm1621_vm7, %v1994_v26  ;;  %v6231_v26 = vld [vmem:[#allocation67_spill] sm:$0xff] }
 0x3c0   : > { %2119 = vmatprep.mubr.f32.mxu0 %v6172_v7  ;;  %3289 = vmatpush1.msk.msra.mxu1 %vm2200_vm12, %v2352_v29  ;;  %v2269_v41 = vpop.permute.xlu1 %2268  ;;  %v3275_v29 = vld [vmem:[%s6057_s7 + $0x28] sm:$0xff] }
 0x3c1   : > { %3270 = vmatmul.mubr.msk.f32.vlgmr.msra.gmra.mxu0 %vm1128_vm3, %v3250_v50  ;;  %3290 = vmatprep.subr.msk.mxu1 %vm2201_vm11, %v2347_v22  ;;  %v2672_v35 = vpop.permute.xlu0 %2671  ;;  %v6232_v50 = vld [vmem:[#allocation64_spill] sm:$0xff]  ;;  %v3537_v22 = vunpack.i.h.bf16 %v5480_v37 }
 0x3c2   : > { %3298 = vmatprep.subr.msk.mxu0 %vm2203_vm8, %v2309_v46  ;;  %3291 = vmatpush1.msk.msra.mxu1 %vm2200_vm12, %v2351_v55  ;;  %v6234_v55 = vld [vmem:[#allocation59_spill] sm:$0xff]  ;;  %v6235_v46 = vld [vmem:[#allocation61_spill] sm:$0xff]  ;;  %v2684_v54 = vsel %vm2276_vm10, %v2672_v35, %v3541_v15  ;;  %v2688_v53 = vsel %vm2276_vm10, %v3541_v15, %v2672_v35 }
 0x3c3   : > { %3299 = vmatpush1.msk.msra.mxu0 %vm2202_vm9, %v2305_v23  ;;  %3292 = vmatprep.subr.msk.mxu1 %vm2201_vm11, %v2346_v49  ;;  %v2284_v23 = vsel %vm2276_vm10, %v5541_v9, %v3536_v10  ;;  %v3542_v49 = vunpack.i.h.bf16 %v5604_v36  ;;  %v2279_v37 = vsel %vm2276_vm10, %v3537_v22, %v5539_v59 }
 0x3c4   : > { %3300 = vmatprep.subr.msk.mxu0 %vm2203_vm8, %v2308_v43  ;;  %2125 = vmatprep.mubr.f32.mxu0 %v6172_v7  ;;  %v2676_v43 = vpop.permute.xlu1 %2675 }
 0x3c5   : > { %3293 = vmatpush1.msk.msra.mxu1 %vm2200_vm12, %v2350_v3  ;;  %3301 = vmatpush1.msk.msra.mxu0 %vm2202_vm9, %v2304_v51  ;;  %v2668_v9 = vpop.permute.xlu0 %2667  ;;  %v3276_v51 = vld [vmem:[%s6057_s7 + $0x30] sm:$0xff]  ;;  %v2283_v3 = vsel %vm2276_vm10, %v5539_v59, %v3537_v22  ;;  %v2278_v36 = vsel %vm2276_vm10, %v3542_v49, %v5606_v48 }
 0x3c6   : > { %3271 = vmatmul.mubr.msk.f32.gmra.mxu0 %vm1128_vm3, %v3251_v6  ;;  %2475 = vmatprep.mubr.f32.mxu1 %v6172_v7  ;;  %v6237_v6 = vld [vmem:[#allocation65_spill] sm:$0xff]  ;;  %v6239_v59 = vld [vmem:[#allocation66_spill] sm:$0xff] }
 0x3c7   : > { %3302 = vmatprep.subr.msk.mxu0 %vm2203_vm8, %v2307_v30  ;;  %3322 = vmatprep.subr.msk.mxu1 %vm2203_vm8, %v2712_v44  ;;  %v3546_v44 = vunpack.i.l.bf16 %v5656_v16  ;;  %v3547_v30 = vunpack.i.h.bf16 %v5656_v16 }
 0x3c8   : > { %3294 = vmatmul.mubr.msk.f32.vlgmr.msra.gmra.mxu1 %vm1128_vm3, %v3274_v52  ;;  %3303 = vmatpush1.msk.msra.mxu0 %vm2202_vm9, %v2303_v5  ;;  %v6238_v52 = vld [vmem:[#allocation63_spill] sm:$0xff]  ;;  %v2674_v19 = vpop.permute.xlu1 %2673 }
 0x3c9   : > { %3323 = vmatpush1.msk.msra.mxu1 %vm2202_vm9, %v2708_v4  ;;  %3304 = vmatprep.subr.msk.mxu0 %vm2203_vm8, %v2306_v61  ;;  %v2282_v4 = vsel %vm2276_vm10, %v5606_v48, %v3542_v49  ;;  %v2277_v5 = vsel %vm2276_vm10, %v3547_v30, %v2269_v41  ;;  %v2683_v48 = vsel %vm2276_vm10, %v5654_v31, %v3546_v44  ;;  %v2326_v61 = vld [vmem:[%s6057_s7] sm:$0xff] }
 0x3ca   : > { %3324 = vmatprep.subr.msk.mxu1 %vm2203_vm8, %v2711_v34  ;;  %2131 = vmatprep.mubr.f32.mxu0 %v6172_v7  ;;  %v2666_v34 = vpop.permute.xlu0 %2665  ;;  %v2687_v16 = vsel %vm2276_vm10, %v3546_v44, %v5654_v31  ;;  %v2327_v31 = vld [vmem:[%s6057_s7 + $0x8] sm:$0xff] }
 0x3cb   : > { %3305 = vmatpush1.msk.msra.mxu0 %vm2202_vm9, %v2302_v60  ;;  %3325 = vmatpush1.msk.msra.mxu1 %vm2202_vm9, %v2707_v62  ;;  %v2682_v60 = vsel %vm2276_vm10, %v2668_v9, %v2676_v43  ;;  %v2686_v62 = vsel %vm2276_vm10, %v2676_v43, %v2668_v9 }
 0x3cc   : > { %3272 = vmatmul.mubr.msk.f32.gmra.mxu0 %vm1128_vm3, %v3252_v20  ;;  %2528 = vmatprep.subr.mxu0 %v6224_v1  ;;  %v2281_v20 = vsel %vm2276_vm10, %v2269_v41, %v3547_v30  ;;  %v2681_v1 = vsel %vm2276_vm10, %v2666_v34, %v2674_v19 }
 0x3cd   : > { %3326 = vmatprep.subr.msk.mxu1 %vm2203_vm8, %v2710_v12  ;;  %2529 = vmatpush1.msra.mxu0 %v6225_v57  ;;  %v2685_v12 = vsel %vm2276_vm10, %v2674_v19, %v2666_v34  ;;  %v3318_v57 = vld [vmem:[%s6057_s7 + $0x40] sm:$0xff] }
 0x3ce   : > { %3327 = vmatpush1.msk.msra.mxu1 %vm2202_vm9, %v2706_v39  ;;  %2530 = vmatprep.subr.mxu0 %v6226_v13  ;;  %v3320_v39 = vld [vmem:[%s6057_s7 + $0x50] sm:$0xff]  ;;  %v1207_v13 = vpop.f32.mrf.mxu1 }
 0x3cf   : > { %3328 = vmatprep.subr.msk.mxu1 %vm2203_vm8, %v2709_v47  ;;  %2137 = vmatprep.mubr.f32.mxu0 %v6172_v7  ;;  %v3321_v47 = vld [vmem:[%s6057_s7 + $0x58] sm:$0xff] }
 0x3d0   : > { %2531 = vmatpush1.msra.mxu0 %v6227_v0  ;;  %3329 = vmatpush1.msk.msra.mxu1 %vm2202_vm9, %v2705_v40 }
 0x3d1   : > { %3273 = vmatmul.mubr.msk.f32.gmra.mxu0 %vm1128_vm3, %v3253_v14  ;;  %2532 = vmatprep.subr.mxu0 %v6228_v28  ;;  %v5834_v14 = vpop.f32.mrf.mxu1 }
 0x3d2   : > { %2762 = vmatprep.subr.mxu1 %v6229_v42  ;;  %2533 = vmatpush1.msra.mxu0 %v6230_v63 }
 0x3d3   : > { %2763 = vmatpush1.msra.mxu1 %v6231_v26  ;;  %2534 = vmatprep.subr.mxu0 %v6232_v50  ;;  %v1213_v40 = vpop.f32.mrf.mxu1 }
 0x3d4   : > { %2764 = vmatprep.subr.mxu1 %v6233_v27  ;;  %2481 = vmatprep.mubr.f32.mxu1 %v6172_v7 }
 0x3d5   : > { %2535 = vmatpush1.msra.mxu0 %v6234_v55  ;;  %2765 = vmatpush1.msra.mxu1 %v6235_v46  ;;  %v1215_v0 = vpop.f32.mrf.mxu1 }
 0x3d6   : > { %3295 = vmatmul.mubr.msk.f32.gmra.mxu1 %vm1128_vm3, %v3275_v29  ;;  %3306 = vmatprep.subr.msk.mxu0 %vm2201_vm11, %v2280_v33 }
 0x3d7   : > { %2766 = vmatprep.subr.mxu1 %v6236_v2  ;;  %3307 = vmatpush1.msk.msra.mxu0 %vm2200_vm12, %v2284_v23  ;;  %v1219_v28 = vpop.f32.mrf.mxu1 }
 0x3d8   : > { %2767 = vmatpush1.msra.mxu1 %v6237_v6  ;;  %3308 = vmatprep.subr.msk.mxu0 %vm2201_vm11, %v2279_v37 }
 0x3d9   : > { %2768 = vmatprep.subr.mxu1 %v6238_v52  ;;  %2487 = vmatprep.mubr.f32.mxu1 %v6172_v7  ;;  %v1221_v41 = vpop.f32.mrf.mxu1 }
 0x3da   : > { %3309 = vmatpush1.msk.msra.mxu0 %vm2200_vm12, %v2283_v3  ;;  %2769 = vmatpush1.msra.mxu1 %v6239_v59 }
 0x3db   : > { %3296 = vmatmul.mubr.msk.f32.gmra.mxu1 %vm1128_vm3, %v3276_v51  ;;  %3310 = vmatprep.subr.msk.mxu0 %vm2201_vm11, %v2278_v36  ;;  %v1225_v35 = vpop.f32.mrf.mxu1 }
 0x3dc   : > { %3330 = vmatprep.subr.msk.mxu1 %vm2201_vm11, %v2684_v54  ;;  %3311 = vmatpush1.msk.msra.mxu0 %vm2200_vm12, %v2282_v4 }
 0x3dd   : > { %3331 = vmatpush1.msk.msra.mxu1 %vm2200_vm12, %v2688_v53  ;;  %3312 = vmatprep.subr.msk.mxu0 %vm2201_vm11, %v2277_v5  ;;  %v1227_v63 = vpop.f32.mrf.mxu1 }
 0x3de   : > { %3332 = vmatprep.subr.msk.mxu1 %vm2201_vm11, %v2683_v48  ;;  %2493 = vmatprep.mubr.f32.mxu1 %v6172_v7 }
 0x3df   : > { %3313 = vmatpush1.msk.msra.mxu0 %vm2200_vm12, %v2281_v20  ;;  %2576 = vmatprep.mubr.f32.mxu0 %v6172_v7 }
 0x3e0   : > { %3333 = vmatpush1.msk.msra.mxu1 %vm2200_vm12, %v2687_v16  ;;  %3314 = vmatmul.mubr.msk.f32.vlgmr.msra.gmra.mxu0 %vm1128_vm3, %v2326_v61 }
 0x3e1   : > { %3297 = vmatmul.mubr.msk.f32.gmra.mxu1 %vm1128_vm3, %v3277_v58  ;;  %3334 = vmatprep.subr.msk.mxu1 %vm2201_vm11, %v2682_v60 }
 0x3e2   : > { %3335 = vmatpush1.msk.msra.mxu1 %vm2200_vm12, %v2686_v62  ;;  %2582 = vmatprep.mubr.f32.mxu0 %v6172_v7 }
 0x3e3   : > { %3336 = vmatprep.subr.msk.mxu1 %vm2201_vm11, %v2681_v1  ;;  %2810 = vmatprep.mubr.f32.mxu1 %v6172_v7 }
 0x3e4   : > { %3315 = vmatmul.mubr.msk.f32.gmra.mxu0 %vm1128_vm3, %v2327_v31  ;;  %3337 = vmatpush1.msk.msra.mxu1 %vm2200_vm12, %v2685_v12  ;;  %v1595_v12 = vpop.permute.xlu0 %1594 }
 0x3e5   : > { %3338 = vmatmul.mubr.msk.f32.vlgmr.msra.gmra.mxu1 %vm1128_vm3, %v3318_v57  ;;  %2588 = vmatprep.mubr.f32.mxu0 %v6172_v7 }
 0x3e6   : > { %2816 = vmatprep.mubr.f32.mxu1 %v6172_v7 }
 0x3e8   : > { %3316 = vmatmul.mubr.msk.f32.gmra.mxu0 %vm1128_vm3, %v2328_v11  ;;  %v1590_v11 = vpop.permute.xlu1 %1589 }
 0x3e9   : > { %3339 = vmatmul.mubr.msk.f32.gmra.mxu1 %vm1128_vm3, %v3319_v18  ;;  %2594 = vmatprep.mubr.f32.mxu0 %v6172_v7 }
 0x3ea   : > { %2822 = vmatprep.mubr.f32.mxu1 %v6172_v7 }
 0x3ec   : > { %3317 = vmatmul.mubr.msk.f32.gmra.mxu0 %vm1128_vm3, %v2329_v21 }
 0x3ed   : > { %3340 = vmatmul.mubr.msk.f32.gmra.mxu1 %vm1128_vm3, %v3320_v39  ;;  %2986 = vmatprep.mubr.f32.mxu0 %v6172_v7  ;;  %v5886_v39 = vpop.permute.xlu0 %2173 }
 0x3ee   : > { %2828 = vmatprep.mubr.f32.mxu1 %v6172_v7  ;;  %6247 = vst [vmem:[#allocation35_spill] sm:$0xff] %v5886_v39 }
 0x3f1   : > { %3341 = vmatmul.mubr.msk.f32.gmra.mxu1 %vm1128_vm3, %v3321_v47 }
 0x441   : > { %v1308_v42 = vpop.f32.mrf.mxu0 }
 0x442   : > { %v1309_v10 = vadd.f32 %v1308_v42, %v1207_v13  ;;  %v1585_v42 = vpop.permute.xlu1 %1584 }
 0x443   : > { %v1310_v29 = vpop.f32.mrf.mxu0 }
 0x444   : > { %v1311_v39 = vadd.f32 %v1310_v29, %v5834_v14 }
 0x446   : > { %v1542_v26 = vpop.f32.mrf.mxu1 }
 0x447   : > { %v5836_v50 = vadd.f32 %v1542_v26, %v1309_v10  ;;  %v1314_v27 = vpop.f32.mrf.mxu0 }
 0x448   : > { %v1544_v33 = vpop.f32.mrf.mxu1  ;;  %v1315_v10 = vadd.f32 %v1314_v27, %v1213_v40  ;;  %v5901_v27 = vpop.permute.xlu1 %2864 }
 0x449   : > { %v1316_v22 = vpop.f32.mrf.mxu0 }
 0x44a   : > { %v1317_v7 = vadd.f32 %v1316_v22, %v1215_v0  ;;  %v1566_v0 = vadd.f32 %v1544_v33, %v1311_v39 }
 0x44c   : > { %v1320_v55 = vpop.f32.mrf.mxu0 }
 0x44d   : > { %v1548_v46 = vpop.f32.mrf.mxu1  ;;  %v1321_v17 = vadd.f32 %v1320_v55, %v1219_v28 }
 0x44e   : > { %v1322_v23 = vpop.f32.mrf.mxu0  ;;  %v1567_v24 = vadd.f32 %v1548_v46, %v1315_v10 }
 0x44f   : > { %v1550_v49 = vpop.f32.mrf.mxu1 }
 0x450   : > { %v1599_v28 = vadd.f32 %v1585_v42, %v1567_v24 }
 0x452   : > { %v1326_v37 = vpop.f32.mrf.mxu0  ;;  %v1607_v33 = vmax.f32 %v1599_v28, 0.0 }
 0x453   : > { %v1554_v15 = vpop.f32.mrf.mxu1 }
 0x454   : > { %v1328_v2 = vpop.f32.mrf.mxu0 }
 0x455   : > { %v1556_v9 = vpop.f32.mrf.mxu1  ;;  %v1329_v25 = vadd.f32 %v1328_v2, %v1227_v63  ;;  %v5916_v2 = vpop.permute.xlu1 %2163 }
 0x458   : > { %v1560_v51 = vpop.f32.mrf.mxu1 }
 0x45a   : > { %v1562_v54 = vpop.f32.mrf.mxu1 }
 0x45b   : > { %v1572_v46 = vadd.f32 %v1562_v54, %v1329_v25 }
 0x462   : > { %v5838_v43 = vpop.f32.mrf.mxu0 }
 0x464   : > { %v5840_v6 = vpop.f32.mrf.mxu0 }
 0x466   : > { %v5846_v52 = vpop.f32.mrf.mxu1 }
 0x468   : > { %v5852_v53 = vpop.f32.mrf.mxu1 }
 0x46f   : > { %v5842_v3 = vpop.f32.mrf.mxu0 }
 0x471   : > { %v5844_v44 = vpop.f32.mrf.mxu0 }
 0x473   : > { %v5854_v59 = vpop.f32.mrf.mxu1 }
 0x475   : > { %v5848_v36 = vpop.f32.mrf.mxu0  ;;  %v5858_v5 = vpop.f32.mrf.mxu1 }
 0x477   : > { %v5850_v30 = vpop.f32.mrf.mxu0 }
 0x479   : > { %v5862_v61 = vpop.f32.mrf.mxu1 }
 0x47b   : > { %v5856_v4 = vpop.f32.mrf.mxu0  ;;  %v5866_v34 = vpop.f32.mrf.mxu1 }
 0x47d   : > { %v5860_v48 = vpop.f32.mrf.mxu0 }
 0x47f   : > { %v5870_v60 = vpop.f32.mrf.mxu1 }
 0x481   : > { %v5864_v19 = vpop.f32.mrf.mxu0  ;;  %v1971_v62 = vpop.f32.mrf.mxu1 }
 0x483   : > { %v5868_v20 = vpop.f32.mrf.mxu0 }
 0x484   : > { %6240 = vst [vmem:[#allocation34_spill] sm:$0xff] %v5868_v20 }
 0x486   : > { %v5872_v58 = vpop.f32.mrf.mxu0 }
 0x487   : > { %6241 = vst [vmem:[#allocation28_spill] sm:$0xff] %v5872_v58  ;;  %v1568_v58 = vadd.f32 %v1550_v49, %v1317_v7 }
 0x488   : > { %v5874_v16 = vpop.f32.mrf.mxu0  ;;  %v5876_v1 = vpop.f32.mrf.mxu1 }
 0x489   : > { %6242 = vst [vmem:[#allocation29_spill] sm:$0xff] %v5876_v1  ;;  %v1600_v55 = vadd.f32 %v1585_v42, %v1568_v58  ;;  %v1960_v42 = vadd.f32 %v5858_v5, %v5844_v44  ;;  %v1954_v44 = vadd.f32 %v5852_v53, %v5840_v6 }
 0x48a   : > { %v5880_v57 = vpop.f32.mrf.mxu1 }
 0x48b   : > { %6244 = vst [vmem:[#allocation43_spill] sm:$0xff] %v5880_v57  ;;  %v5896_v57 = vpop.permute.xlu0 %2168  ;;  %v2147_v5 = vadd.f32 %v5874_v16, %v1960_v42  ;;  %v6253_v6 = vld [vmem:[#allocation34_spill] sm:$0xff] }
 0x48c   : > { %v5878_v31 = vpop.f32.mrf.mxu0  ;;  %v2145_v53 = vadd.f32 %v6253_v6, %v1954_v44 }
 0x48d   : > { %6243 = vst [vmem:[#allocation38_spill] sm:$0xff] %v5878_v31  ;;  %v1323_v31 = vadd.f32 %v1322_v23, %v1221_v41 }
 0x48e   : > { %v5882_v18 = vpop.f32.mrf.mxu0 }
 0x48f   : > { %6245 = vst [vmem:[#allocation16_spill] sm:$0xff] %v5882_v18  ;;  %v1580_v14 = vpop.permute.xlu0 %1579 }
 0x490   : > { %v5910_v23 = vadd.f32 %v1580_v14, %v5836_v50  ;;  %v5912_v49 = vadd.f32 %v1580_v14, %v1566_v0 }
 0x491   : > { %v5890_v13 = vpop.f32.mrf.mxu0 }
 0x492   : > { %6249 = vst [vmem:[#allocation22_spill] sm:$0xff] %v5890_v13  ;;  %v1570_v13 = vadd.f32 %v1556_v9, %v1323_v31  ;;  %v1952_v31 = vadd.f32 %v5846_v52, %v5838_v43  ;;  %v1605_v50 = vmax.f32 %v5910_v23, 0.0  ;;  %v2891_v23 = vld [vmem:[%s6059_s9] sm:$0xff] }
 0x493   : > { %v2141_v20 = vpop.f32.mrf.mxu0 }
 0x494   : > { %v2144_v43 = vadd.f32 %v5864_v19, %v1952_v31  ;;  %v2159_v19 = vpop.permute.xlu1 %2158 }
 0x496   : > { %v5884_v21 = vpop.f32.mrf.mxu1  ;;  %v5953_v14 = vadd.f32 %v2159_v19, %v2144_v43 }
 0x497   : > { %6246 = vst [vmem:[#allocation32_spill] sm:$0xff] %v5884_v21  ;;  %v1327_v21 = vadd.f32 %v1326_v37, %v1225_v35  ;;  %v1608_v37 = vmax.f32 %v1600_v55, 0.0 }
 0x498   : > { %v5888_v47 = vpop.f32.mrf.mxu1 }
 0x499   : > { %6248 = vst [vmem:[#allocation46_spill] sm:$0xff] %v5888_v47  ;;  %v1569_v47 = vadd.f32 %v1554_v15, %v1321_v17  ;;  %v1571_v18 = vadd.f32 %v1560_v51, %v1327_v21  ;;  %v1602_v17 = vadd.f32 %v1590_v11, %v1570_v13  ;;  %v1604_v15 = vadd.f32 %v1595_v12, %v1572_v46  ;;  %v2860_v46 = vpop.permute.xlu0 %2859 }
 0x49a   : > { %v5923_v21 = vadd.f32 %v1607_v33, %v4072_v32  ;;  %v1966_v32 = vadd.f32 %v5866_v34, %v5850_v30  ;;  %v1958_v30 = vadd.f32 %v5854_v59, %v5842_v3  ;;  %v6250_v34 = vld [vmem:[#allocation16_spill] sm:$0xff]  ;;  %v6255_v3 = vld [vmem:[#allocation38_spill] sm:$0xff]  ;;  %v6256_v33 = vld [vmem:[#allocation35_spill] sm:$0xff] }
 0x49b   : > { %v5892_v26 = vpop.f32.mrf.mxu1  ;;  %v1601_v7 = vadd.f32 %v1590_v11, %v1569_v47  ;;  %v1603_v63 = vadd.f32 %v1595_v12, %v1571_v18  ;;  %v1610_v54 = vmax.f32 %v1602_v17, 0.0  ;;  %v1606_v18 = vmax.f32 %v5912_v49, 0.0  ;;  %v6254_v17 = vld [vmem:[#allocation28_spill] sm:$0xff] }
 0x49c   : > { %v1972_v12 = vadd.f32 %v1971_v62, %v5860_v48  ;;  %v5927_v47 = vadd.f32 %v1608_v37, %v4094_v38  ;;  %v1612_v13 = vmax.f32 %v1604_v15, 0.0  ;;  %v1970_v48 = vadd.f32 %v5870_v60, %v5856_v4  ;;  %v6251_v60 = vld [vmem:[#allocation22_spill] sm:$0xff] }
 0x49d   : > { %v5894_v1 = vpop.f32.mrf.mxu1  ;;  %v1609_v9 = vmax.f32 %v1601_v7, 0.0  ;;  %v1611_v58 = vmax.f32 %v1603_v63, 0.0  ;;  %v5940_v38 = vadd.f32 %v1610_v54, %v4143_v56  ;;  %v1964_v4 = vadd.f32 %v5862_v61, %v5848_v36 }
 0x49e   : > { %v2151_v62 = vadd.f32 %v2141_v20, %v1972_v12  ;;  %v2149_v20 = vadd.f32 %v6250_v34, %v1966_v32  ;;  %v2150_v56 = vadd.f32 %v6251_v60, %v1970_v48  ;;  %v2146_v63 = vadd.f32 %v6254_v17, %v1958_v30  ;;  %v6258_v42 = vld [vmem:[#allocation32_spill] sm:$0xff]  ;;  %v6259_v48 = vld [vmem:[#allocation43_spill] sm:$0xff] }
 0x49f   : > { %v5933_v10 = vadd.f32 %v1609_v9, %v4114_v45  ;;  %v1619_v28 = vadd.f32 %v1611_v58, %v4183_v8  ;;  %v6252_v8 = vld [vmem:[#allocation21_spill] sm:$0xff]  ;;  %v2148_v59 = vadd.f32 %v6255_v3, %v1964_v4  ;;  %v2179_v9 = vadd.f32 %v5916_v2, %v2147_v5 }
 0x4a0   : > { %v5899_v40 = vpop.f32.mrf.mxu0  ;;  %v1620_v7 = vadd.f32 %v1612_v13, %v6252_v8  ;;  %v2183_v36 = vadd.f32 %v6256_v33, %v2151_v62  ;;  %v6257_v54 = vld [vmem:[#allocation46_spill] sm:$0xff]  ;;  %v2181_v13 = vadd.f32 %v5896_v57, %v2149_v20  ;;  %v2177_v8 = vadd.f32 %v2159_v19, %v2145_v53 }
 0x4a1   : > { %v5903_v22 = vpop.f32.mrf.mxu1 }
 0x4a2   : > { %v5905_v41 = vpop.f32.mrf.mxu0  ;;  %v2191_v5 = vmax.f32 %v2183_v36, 0.0 }
 0x4a3   : > { %v5907_v35 = vpop.f32.mrf.mxu1 }
 0x4a4   : > { %v2584_v29 = vpop.f32.mrf.mxu0 }
 0x4a5   : > { %v5914_v24 = vpop.f32.mrf.mxu1  ;;  %v2585_v43 = vadd.f32 %v2584_v29, %v6258_v42 }
 0x4a6   : > { %v2586_v25 = vpop.f32.mrf.mxu0 }
 0x4a7   : > { %v2814_v51 = vpop.f32.mrf.mxu1  ;;  %v2587_v58 = vadd.f32 %v2586_v25, %v6257_v54  ;;  %v2180_v25 = vadd.f32 %v5896_v57, %v2148_v59  ;;  %v2189_v57 = vmax.f32 %v2181_v13, 0.0  ;;  %v2199_v59 = vadd.f32 %v2191_v5, %v1620_v7 }
 0x4a8   : > { %v2590_v11 = vpop.f32.mrf.mxu0 }
 0x4a9   : > { %v2818_v39 = vpop.f32.mrf.mxu1  ;;  %v2591_v61 = vadd.f32 %v2590_v11, %v5892_v26  ;;  %v2581_v26 = vadd.f32 %v5905_v41, %v6259_v48  ;;  %v2178_v41 = vadd.f32 %v5916_v2, %v2146_v63  ;;  %v2188_v17 = vmax.f32 %v2180_v25, 0.0  ;;  %v2893_v48 = vld [vmem:[%s6059_s9 + $0x10] sm:$0xff] }
 0x4aa   : > { %v2592_v52 = vpop.f32.mrf.mxu0  ;;  %v2837_v30 = vadd.f32 %v2818_v39, %v2585_v43  ;;  %v2187_v39 = vmax.f32 %v2179_v9, 0.0  ;;  %v2197_v19 = vadd.f32 %v2189_v57, %v5940_v38 }
 0x4ab   : > { %v2820_v0 = vpop.f32.mrf.mxu1  ;;  %v2593_v16 = vadd.f32 %v2592_v52, %v5894_v1  ;;  %v2182_v1 = vadd.f32 %v6256_v33, %v2150_v56  ;;  %v2836_v34 = vadd.f32 %v2814_v51, %v2581_v26  ;;  %v2855_v56 = vpop.permute.xlu0 %2854  ;;  %v2196_v9 = vadd.f32 %v2188_v17, %v5933_v10 }
 0x4ac   : > { %v2596_v45 = vpop.f32.mrf.mxu0  ;;  %v2838_v11 = vadd.f32 %v2820_v0, %v2587_v58  ;;  %v2869_v51 = vadd.f32 %v2855_v56, %v2837_v30 }
 0x4ad   : > { %v2824_v55 = vpop.f32.mrf.mxu1  ;;  %v2597_v31 = vadd.f32 %v2596_v45, %v5903_v22  ;;  %v6260_v22 = vld [vmem:[#allocation29_spill] sm:$0xff]  ;;  %v2190_v0 = vmax.f32 %v2182_v1, 0.0  ;;  %v6262_v1 = vld [vmem:[#allocation14_spill] sm:$0xff] }
 0x4ae   : > { %v2598_v37 = vpop.f32.mrf.mxu0  ;;  %v2839_v52 = vadd.f32 %v2824_v55, %v2591_v61  ;;  %v2579_v45 = vadd.f32 %v5899_v40, %v6260_v22  ;;  %v2870_v6 = vadd.f32 %v2855_v56, %v2838_v11  ;;  %v2850_v40 = vpop.permute.xlu1 %2849  ;;  %v2877_v54 = vmax.f32 %v2869_v51, 0.0 }
 0x4af   : > { %v2826_v15 = vpop.f32.mrf.mxu1  ;;  %v2599_v62 = vadd.f32 %v2598_v37, %v5907_v35  ;;  %v2868_v33 = vadd.f32 %v2850_v40, %v2836_v34  ;;  %v2186_v37 = vmax.f32 %v2178_v41, 0.0  ;;  %v2198_v2 = vadd.f32 %v2190_v0, %v1619_v28  ;;  %v2900_v26 = vpop.permute.xlu0 %2899 }
 0x4b0   : > { %v2840_v12 = vadd.f32 %v2826_v15, %v2593_v16  ;;  %v2835_v35 = vadd.f32 %v5914_v24, %v2579_v45  ;;  %v2871_v55 = vadd.f32 %v2860_v46, %v2839_v52  ;;  %v2185_v24 = vmax.f32 %v2177_v8, 0.0 }
 0x4b1   : > { %v2830_v32 = vpop.f32.mrf.mxu1  ;;  %v2876_v28 = vmax.f32 %v2868_v33, 0.0  ;;  %v1613_v38 = vadd.f32 %v1605_v50, %v6262_v1  ;;  %v2194_v42 = vadd.f32 %v2186_v37, %v5923_v21  ;;  %v6263_v50 = vmov 0.0   ;;  %v2892_v21 = vld [vmem:[%s6059_s9 + $0x8] sm:$0xff] }
 0x4b2   : > { %v2841_v44 = vadd.f32 %v2830_v32, %v2597_v31  ;;  %v2872_v20 = vadd.f32 %v2860_v46, %v2840_v12  ;;  %v2867_v63 = vadd.f32 %v2850_v40, %v2835_v35  ;;  %v2879_v15 = vmax.f32 %v2871_v55, 0.0  ;;  %v6261_v31 = vld [vmem:[#allocation15_spill] sm:$0xff]  ;;  %v2905_v5 = vpop.permute.xlu1 %2904 }
 0x4b3   : > { %v2832_v4 = vpop.f32.mrf.mxu1  ;;  %v2878_v46 = vmax.f32 %v2870_v6, 0.0  ;;  %v1614_v7 = vadd.f32 %v1606_v18, %v6261_v31  ;;  %v2195_v12 = vadd.f32 %v2187_v39, %v5927_v47  ;;  %v2885_v49 = vadd.f32 %v2877_v54, %v2194_v42  ;;  %v2910_v34 = vpop.permute.xlu0 %2909 }
 0x4b4   : > { %v2873_v29 = vadd.f32 %v5901_v27, %v2841_v44  ;;  %v2842_v60 = vadd.f32 %v2832_v4, %v2599_v62  ;;  %v2880_v36 = vmax.f32 %v2872_v20, 0.0  ;;  %v2887_v43 = vadd.f32 %v2879_v15, %v2196_v9 }
 0x4b5   : > { %v2193_v10 = vadd.f32 %v2185_v24, %v1614_v7  ;;  %v2886_v52 = vadd.f32 %v2878_v46, %v2195_v12 }
 0x4b6   : > { %v2874_v16 = vadd.f32 %v5901_v27, %v2842_v60  ;;  %v2881_v3 = vmax.f32 %v2873_v29, 0.0  ;;  %v2184_v27 = vmax.f32 %v5953_v14, 0.0  ;;  %v2888_v13 = vadd.f32 %v2880_v36, %v2197_v19 }
 0x4b7   : > { %v2875_v14 = vmax.f32 %v2867_v63, 0.0  ;;  %v2884_v18 = vadd.f32 %v2876_v28, %v2193_v10 }
 0x4b8   : > { %v2882_v61 = vmax.f32 %v2874_v16, 0.0  ;;  %v2889_v58 = vadd.f32 %v2881_v3, %v2198_v2  ;;  %v2192_v32 = vadd.f32 %v2184_v27, %v1613_v38 }
 0x4ba   : > { %v2890_v53 = vadd.f32 %v2882_v61, %v2199_v59  ;;  %v2883_v47 = vadd.f32 %v2875_v14, %v2192_v32 }
 0x4bc   : > { %2946 = vmatprep.subr.mxu0 %v2890_v53 }
 0x4bd   : > { %2947 = vmatpush1.msra.mxu0 %v2889_v58 }
 0x4be   : > { %2948 = vmatprep.subr.mxu0 %v2888_v13 }
 0x4bf   : > { %2949 = vmatpush1.msra.mxu0 %v2887_v43 }
 0x4c0   : > { %2950 = vmatprep.subr.mxu0 %v2886_v52 }
 0x4c1   : > { %2951 = vmatpush1.msra.mxu0 %v2885_v49 }
 0x4c2   : > { %2952 = vmatprep.subr.mxu0 %v2884_v18 }
 0x4c3   : > { %2953 = vmatpush1.msra.mxu0 %v2883_v47 }
 0x4c4   : > { %3342 = vmatmul.mubr.msk.f32.vlgmr.msra.gmra.mxu0 %vm2912_vm13, %v2891_v23 }
 0x4c5   : > { %2992 = vmatprep.mubr.f32.mxu0 %v6263_v50 }
 0x4c8   : > { %3343 = vmatmul.mubr.msk.f32.gmra.mxu0 %vm2912_vm13, %v2892_v21 }
 0x4c9   : > { %2998 = vmatprep.mubr.f32.mxu0 %v6263_v50 }
 0x4cc   : > { %3344 = vmatmul.mubr.msk.f32.gmra.mxu0 %vm2912_vm13, %v2893_v48 }
 0x584   : > { %v2988_v11 = vpop.f32.mrf.mxu0 }
 0x585   : > { %v2989_v62 = vadd.f32 %v2988_v11, %v2900_v26 }
 0x586   : > { %v2990_v44 = vpop.f32.mrf.mxu0 }
 0x587   : > { %3005 = vst [vmem:[%s402_s30] sm:$0xff] %v2989_v62  ;;  %v2991_v25 = vadd.f32 %v2990_v44, %v2900_v26 }
 0x588   : > { %v2994_v22 = vpop.f32.mrf.mxu0 }
 0x589   : > { %3006 = vst [vmem:[%s402_s30 + $0x8] sm:$0xff] %v2991_v25  ;;  %v2995_v45 = vadd.f32 %v2994_v22, %v2905_v5 }
 0x58a   : > { %v2996_v30 = vpop.f32.mrf.mxu0 }
 0x58b   : > { %3007 = vst [vmem:[%s402_s30 + $0x10] sm:$0xff] %v2995_v45  ;;  %v2997_v4 = vadd.f32 %v2996_v30, %v2905_v5 }
 0x58c   : > { %v3000_v20 = vpop.f32.mrf.mxu0 }
 0x58d   : > { %3008 = vst [vmem:[%s402_s30 + $0x18] sm:$0xff] %v2997_v4  ;;  %v3001_v29 = vadd.f32 %v3000_v20, %v2910_v34 }
 0x58e   : > { %v3002_v60 = vpop.f32.mrf.mxu0 }
 0x58f   : > { %3009 = vst [vmem:[%s402_s30 + $0x20] sm:$0xff] %v3001_v29  ;;  %v3003_v56 = vadd.f32 %v3002_v60, %v2910_v34 }
 0x591   : > { %3010 = vst [vmem:[%s402_s30 + $0x28] sm:$0xff] %v3003_v56 }
 0x592   : > { %3590 = shalt.err (!%p3587_p10)
}
 0x593   : > { %s3591_s22 = scalar_lea.hbm %s6006_s24, 768  ;;  %s3595_s27 = scalar_lea.hbm %s6061_s11, 1536 }
 0x594   : > { %p3592_p2 = scmp.ne.s32.totalorder %s6006_s24, %s3591_s22  ;;  %p3596_p7 = scmp.lt.s32.totalorder %s6006_s24, %s6061_s11 }
 0x595   : > { %p3597_p0 = scmp.lt.s32.totalorder %s3595_s27, %s3591_s22 }
 0x596   : > { %p3593_p4 = pnand %p3592_p2, %p6264_p12 }
 0x597   : > { %p3598_p6 = por %p3597_p0, %p3596_p7 }
 0x598   : > { %p3594_p9 = pneg %p3593_p4 }
 0x59a   : > { %p3599_p11 = pnand %p3598_p6, %p3594_p9 }
 0x59c   : > { %3602 = shalt.err (!%p3599_p11)
}
 0x59d   : > { %s3658_s21 = smov 256  }
 0x59e   : > { %3353 = dma.vmem_to_hbm [thread:$0]  (%p6264_p12), %s6001_s14, 768, %s6006_s24, %s3012_s15, %s3658_s21, %s3658_s21, %s3645_s19  }
 0x59f PF: > { %s6265_s25 = sld [smem:[#allocation13_spill]]  ;;  %s3040_s16 = sand.u32 1, %s3629_s17  }
 0x5a0   : > { %p6267_p1 = scmp.ge.s32.totalorder %s3641_s20, 2  ;;  %s3041_s12 = scalar_lea.sflag [#allocation6], %s3040_s16 }
 0x5a5   : > { %p6266_p13 = scmp.ne.s32.totalorder %s6265_s25, 0 }
 0x5a7   : > { %p3360_p3 = pnand %p6267_p1, %p6266_p13 }
 0x5a9   : > { %p3361_p5 = pneg %p3360_p3 }
 0x5ab   : > { %3624 = dma.done.wait (%p3361_p5), %s3041_s12, 768  }
 0x5ac   : > { %3626 = vsyncadd (%p3361_p5), %s3041_s12, 4294966528  ;;  %s6268_s20 = sld [smem:[#allocation11_spill]]  ;;  %s6271_s17 = smov %s3633_s18 }
 0x5ad   : > { %s6269_s29 = sld [smem:[#allocation10_spill]] }
 0x5ae   : > { %s6270_s19 = sld [smem:[#allocation12_spill]] }
 0x5b2   : > { %p24_p8 = scmp.ge.s32.totalorder %s6268_s20, 4  }
 0x5b3   : > { %s6272_s18 = smov %s6269_s29 }
 0x5b4   :  { %26 = sbr.rel (!%p24_p8) target bundleno = 5 (0x5), region = 117 }
 0x5b9   :  { %3046 = vsyncpa [#allocation5], 1 }
 0x5ba   :  { %3048 = vsyncpa [#allocation5 + $0x1], 1 }
 0x5bb   :  { %3049 = vsyncpa [#allocation6], 1 }
 0x5bc   :  { %3051 = vsyncpa [#allocation6 + $0x1], 1 }

</bundles_post_ra>
